<compile_context>
chip_gen: v7x
topology: tpu7x:2x2x1
jax: 0.10.0
libtpu: 0.0.40
codegen_flags: <defaults>
</compile_context>

<pallas_src>
import jax
import jax.numpy as jnp
import numpy as np
from jax.experimental import pallas as pl
from jax.experimental.pallas import tpu as pltpu

PAD_ID = 0          # embedding padding_idx (IDs.PAD.value)
LANE = 128          # TPU lane width
SUBLANE = 8         # TPU sublane width
NEG_INF = -1e30     # padded-vocab bias -> exp() underflows to 0 in log_softmax


def _round_up(x, m):
    return ((x + m - 1) // m) * m


def _pad2(w, rows, cols):
    return jnp.pad(w, ((0, rows - w.shape[0]), (0, cols - w.shape[1])))


# ----------------------------------------------------------------------------- kernel

def _attn_context(hq, enc_ref, Wh, We, ba, va):
    """Bahdanau 'concat' attention + context, batched over the batch tile.

    hq:      (BT, D)    query (already projected for amedas/meta heads)
    enc_ref: (T, BT, D) time-major encoder outputs (VMEM ref), T static & small
    Wh, We:  (D, D)     hidden / encoder halves of the original (2D, D) attn weight
    ba, va:  (1, D)
    returns  (BT, D)    context = softmax_T(v . tanh(h Wh + e We + b)) @ enc
    """
    T = enc_ref.shape[0]
    f32 = jnp.float32
    h_term = jnp.dot(hq, Wh, preferred_element_type=f32) + ba                # (BT, D)

    scores = []
    for t in range(T):                                                        # T is static, unrolled
        e_t = jnp.dot(enc_ref[t], We, preferred_element_type=f32)             # (BT, D) GEMM
        energy = jnp.tanh(e_t + h_term)                                       # (BT, D)
        scores.append(jnp.sum(energy * va, axis=-1, keepdims=True))           # (BT, 1)

    m = scores[0]
    for s in scores[1:]:
        m = jnp.maximum(m, s)                                                 # (BT, 1)
    exps = [jnp.exp(s - m) for s in scores]
    denom = exps[0]
    for e in exps[1:]:
        denom = denom + e
    inv = 1.0 / denom                                                         # (BT, 1)

    ctx = (exps[0] * inv) * enc_ref[0]
    for t in range(1, T):
        ctx = ctx + (exps[t] * inv) * enc_ref[t]                              # (BT, D)
    return ctx


def _decoder_kernel(
    # per-batch-tile activations
    we_ref,        # (BT, Ep)      word embedding (dropout = identity)
    h_ref,         # (BT, Hp)      last_hidden[-1]
    gpv_ref,       # (Tg, BT, Hp)  enc_gpv_outputs (time-major)
    am_ref,        # (Ta, BT, Mp)  enc_amedas_outputs
    me_ref,        # (Tm, BT, Mp)  enc_meta_outputs
    # weights (padded / pre-split / fused in the wrapper)
    gpv_Wh_ref, gpv_We_ref, gpv_b_ref, gpv_v_ref,     # (Hp,Hp) x2, (1,Hp) x2
    amme_W_ref, amme_b_ref,                           # (Hp, 2Mp), (1, 2Mp)
    am_Wh_ref, am_We_ref, am_b_ref, am_v_ref,         # (Mp,Mp) x2, (1,Mp) x2
    me_Wh_ref, me_We_ref, me_b_ref, me_v_ref,
    comb_W_ref, comb_b_ref,                           # (Ep+Hp+2Mp, Hp), (1, Hp)
    gru_Wih_ref, gru_Whh_ref, gru_bih_ref, gru_bhh_ref,  # (Hp,3Hp) x2, (1,3Hp) x2
    out_W_ref, out_b_ref,                             # (Hp, Vp), (1, Vp)
    # outputs
    logp_ref,      # (BT, Vp)  log_softmax logits
    newh_ref,      # (BT, Hp)  new GRU hidden state
):
    f32 = jnp.float32
    we = we_ref[...]                               # (BT, Ep)
    h = h_ref[...]                                 # (BT, Hp)
    Hp = h.shape[-1]
    Mp = am_b_ref.shape[-1]

    # --- three attentions -> contexts (batched GEMMs, T unrolled) ---
    gpv_ctx = _attn_context(h, gpv_ref, gpv_Wh_ref[...], gpv_We_ref[...],
                            gpv_b_ref[...], gpv_v_ref[...])                   # (BT, Hp)

    # fused amedas_linear + meta_linear: one (BT,Hp)@(Hp,2Mp) GEMM, aligned lane split
    h_proj = jnp.dot(h, amme_W_ref[...], preferred_element_type=f32) + amme_b_ref[...]
    am_ctx = _attn_context(h_proj[:, :Mp], am_ref, am_Wh_ref[...], am_We_ref[...],
                           am_b_ref[...], am_v_ref[...])                      # (BT, Mp)
    me_ctx = _attn_context(h_proj[:, Mp:], me_ref, me_Wh_ref[...], me_We_ref[...],
                           me_b_ref[...], me_v_ref[...])                      # (BT, Mp)

    # --- attn_combine + ReLU: single GEMM on the concatenated [emb|gpv|am|me] ---
    rnn_in = jnp.concatenate([we, gpv_ctx, am_ctx, me_ctx], axis=-1)          # (BT, Ep+Hp+2Mp)
    rnn_in = jnp.dot(rnn_in, comb_W_ref[...], preferred_element_type=f32) + comb_b_ref[...]
    rnn_in = jnp.maximum(rnn_in, 0.0)                                         # (BT, Hp)

    # --- single-layer GRU cell, gates (r,z,n) fused into two GEMMs ---
    gi = jnp.dot(rnn_in, gru_Wih_ref[...], preferred_element_type=f32) + gru_bih_ref[...]  # (BT,3Hp)
    gh = jnp.dot(h,      gru_Whh_ref[...], preferred_element_type=f32) + gru_bhh_ref[...]  # (BT,3Hp)
    r = jax.nn.sigmoid(gi[:, :Hp] + gh[:, :Hp])
    z = jax.nn.sigmoid(gi[:, Hp:2 * Hp] + gh[:, Hp:2 * Hp])
    n = jnp.tanh(gi[:, 2 * Hp:] + r * gh[:, 2 * Hp:])
    h_new = (1.0 - z) * n + z * h                                             # (BT, Hp)
    newh_ref[...] = h_new

    # --- output projection + stable log_softmax (padded vocab lanes carry -1e30 bias) ---
    logits = jnp.dot(h_new, out_W_ref[...], preferred_element_type=f32) + out_b_ref[...]
    mx = jnp.max(logits, axis=-1, keepdims=True)
    s = logits - mx
    logp_ref[...] = s - jnp.log(jnp.sum(jnp.exp(s), axis=-1, keepdims=True))


# ----------------------------------------------------------------------------- wrapper

_WEIGHT_NAMES = ('gpv_Wh', 'gpv_We', 'gpv_b', 'gpv_v',
                 'amme_W', 'amme_b',
                 'am_Wh', 'am_We', 'am_b', 'am_v',
                 'me_Wh', 'me_We', 'me_b', 'me_v',
                 'comb_W', 'comb_b',
                 'gru_Wih', 'gru_Whh', 'gru_bih', 'gru_bhh',
                 'out_W', 'out_b')


def prepare_kernel_params(p):
    """One-time conversion of model params to padded / fused / pre-split kernel layout."""
    V, E = p['embedding'].shape
    H = p['gpv_b'].shape[-1]
    M = p['am_b'].shape[-1]
    Hp, Mp, Ep, Vp = (_round_up(x, LANE) for x in (H, M, E, V))

    kp = {'embedding': p['embedding']}             # lookup stays outside the kernel
    # gpv attention: split concat weight into hidden / encoder halves, pad to full lanes
    kp['gpv_Wh'] = _pad2(p['gpv_Wa'][:H], Hp, Hp)
    kp['gpv_We'] = _pad2(p['gpv_Wa'][H:], Hp, Hp)
    kp['gpv_b'] = _pad2(p['gpv_b'], 1, Hp)
    kp['gpv_v'] = _pad2(p['gpv_v'], 1, Hp)
    # amedas_linear + meta_linear fused into one (H, 2M) projection
    kp['amme_W'] = jnp.concatenate([_pad2(p['amL_W'], Hp, Mp), _pad2(p['meL_W'], Hp, Mp)], axis=1)
    kp['amme_b'] = jnp.concatenate([_pad2(p['amL_b'], 1, Mp), _pad2(p['meL_b'], 1, Mp)], axis=1)
    for k in ('am', 'me'):
        kp[f'{k}_Wh'] = _pad2(p[f'{k}_Wa'][:M], Mp, Mp)
        kp[f'{k}_We'] = _pad2(p[f'{k}_Wa'][M:], Mp, Mp)
        kp[f'{k}_b'] = _pad2(p[f'{k}_b'], 1, Mp)
        kp[f'{k}_v'] = _pad2(p[f'{k}_v'], 1, Mp)
    # attn_combine: split rows by source ([emb | gpv | amedas | meta]), pad each block
    W = p['comb_W']
    kp['comb_W'] = jnp.concatenate([
        _pad2(W[:E], Ep, Hp),
        _pad2(W[E:E + H], Hp, Hp),
        _pad2(W[E + H:E + H + M], Mp, Hp),
        _pad2(W[E + H + M:], Mp, Hp)], axis=0)
    kp['comb_b'] = _pad2(p['comb_b'], 1, Hp)
    # GRU: fuse the three (r, z, n) gates along the output dim -> aligned in-kernel splits
    kp['gru_Wih'] = jnp.concatenate([_pad2(p['gru_Wih'][g], Hp, Hp) for g in range(3)], axis=1)
    kp['gru_Whh'] = jnp.concatenate([_pad2(p['gru_Whh'][g], Hp, Hp) for g in range(3)], axis=1)
    kp['gru_bih'] = jnp.concatenate([_pad2(p['gru_bih'][g], 1, Hp) for g in range(3)], axis=1)
    kp['gru_bhh'] = jnp.concatenate([_pad2(p['gru_bhh'][g], 1, Hp) for g in range(3)], axis=1)
    # output projection; padded vocab lanes get NEG_INF bias (masked out of log_softmax)
    kp['out_W'] = _pad2(p['out_W'], Hp, Vp)
    kp['out_b'] = jnp.pad(p['out_b'], ((0, 0), (0, Vp - V)), constant_values=NEG_INF)
    return kp, (H, M, E, V)


def token_attn_decoder_forward(kparams, dims, word_input, last_hidden,
                               enc_gpv_outputs, enc_amedas_outputs,
                               enc_meta_outputs, enc_weather_outputs=None):
    """Mirrors TokenAttnDecoderRNN.forward (weather=None). Returns (log_probs, hidden, word_embedded)."""
    del enc_weather_outputs                       # module built with weather=None -> unused
    H, M, E, V = dims
    Hp, Mp, Ep, Vp = (_round_up(x, LANE) for x in (H, M, E, V))

    # glue: embedding lookup (padding row zero) + dropout (identity / eval mode)
    word_embedded = jnp.take(kparams['embedding'], word_input, axis=0)        # (B, E)
    h_last = last_hidden[-1]                                                  # (B, H)

    B = word_input.shape[0]
    BT = min(_round_up(B, SUBLANE), 128)          # batch tile (sublane aligned)
    B_pad = _round_up(B, BT)

    we_p = _pad2(word_embedded, B_pad, Ep)                                    # (B_pad, Ep)
    h_p = _pad2(h_last, B_pad, Hp)                                            # (B_pad, Hp)

    def pad_enc(x, dp):   # (T, B, D) -> (T, B_pad, dp); stays time-major (no transpose)
        return jnp.pad(x, ((0, 0), (0, B_pad - x.shape[1]), (0, dp - x.shape[2])))

    gpv_p = pad_enc(enc_gpv_outputs, Hp)
    am_p = pad_enc(enc_amedas_outputs, Mp)
    me_p = pad_enc(enc_meta_outputs, Mp)
    Tg, Ta, Tm = gpv_p.shape[0], am_p.shape[0], me_p.shape[0]

    weights = [kparams[k] for k in _WEIGHT_NAMES]

    def act_spec(cols):
        return pl.BlockSpec((BT, cols), lambda i: (i, 0))

    def enc_spec(t, cols):
        return pl.BlockSpec((t, BT, cols), lambda i: (0, i, 0))

    def w_spec(w):        # whole weight resident, constant block index
        nd = w.ndim
        return pl.BlockSpec(w.shape, lambda i, nd=nd: (0,) * nd)

    in_specs = ([act_spec(Ep), act_spec(Hp),
                 enc_spec(Tg, Hp), enc_spec(Ta, Mp), enc_spec(Tm, Mp)]
                + [w_spec(w) for w in weights])
    out_specs = (pl.BlockSpec((BT, Vp), lambda i: (i, 0)),
                 pl.BlockSpec((BT, Hp), lambda i: (i, 0)))

    logp_p, newh_p = pl.pallas_call(
        _decoder_kernel,
        grid=(B_pad // BT,),
        in_specs=in_specs,
        out_specs=out_specs,
        out_shape=(jax.ShapeDtypeStruct((B_pad, Vp), jnp.float32),
                   jax.ShapeDtypeStruct((B_pad, Hp), jnp.float32)),
        compiler_params=pltpu.CompilerParams(dimension_semantics=("parallel",)),
    )(we_p, h_p, gpv_p, am_p, me_p, *weights)

    output = logp_p[:B, :V]                       # (B, V) log-probs
    hidden = newh_p[:B, :H][None]                 # (1, B, H), like PyTorch GRU hidden
    return output, hidden, word_embedded[None]    # word_embedded: (1, B, E)


# ----------------------------------------------------------------------------- reference

def reference_forward(params, word_input, last_hidden, enc_gpv, enc_am, enc_meta):
    """Pure-JAX reference mirroring the PyTorch math (time-major encoder inputs)."""
    def attn_ctx(hd, enc, Wa, ba, va):
        T, B, D = enc.shape
        Hrep = jnp.broadcast_to(hd[None], (T, B, D))
        cat = jnp.concatenate([Hrep, enc], axis=-1)          # (T, B, 2D)
        energy = jnp.tanh(cat @ Wa + ba)                     # (T, B, D)
        scores = jnp.sum(energy * va, axis=-1)               # (T, B)
        w = jax.nn.softmax(scores, axis=0)                   # softmax over T
        return jnp.sum(w[..., None] * enc, axis=0)           # (B, D)

    emb = jnp.take(params['embedding'], word_input, axis=0)
    h = last_hidden[-1]
    g = attn_ctx(h, enc_gpv, params['gpv_Wa'], params['gpv_b'], params['gpv_v'])
    ha = h @ params['amL_W'] + params['amL_b']
    a = attn_ctx(ha, enc_am, params['am_Wa'], params['am_b'], params['am_v'])
    hm = h @ params['meL_W'] + params['meL_b']
    m = attn_ctx(hm, enc_meta, params['me_Wa'], params['me_b'], params['me_v'])
    x = jnp.concatenate([emb, g, a, m], axis=-1)
    rnn_in = jax.nn.relu(x @ params['comb_W'] + params['comb_b'])
    Wih, Whh = params['gru_Wih'], params['gru_Whh']
    bih, bhh = params['gru_bih'], params['gru_bhh']
    r = jax.nn.sigmoid(rnn_in @ Wih[0] + bih[0] + h @ Whh[0] + bhh[0])
    z = jax.nn.sigmoid(rnn_in @ Wih[1] + bih[1] + h @ Whh[1] + bhh[1])
    n = jnp.tanh(rnn_in @ Wih[2] + bih[2] + r * (h @ Whh[2] + bhh[2]))
    h_new = (1.0 - z) * n + z * h
    logits = h_new @ params['out_W'] + params['out_b']
    return jax.nn.log_softmax(logits, axis=-1), h_new[None], emb[None]


def init_params(key, H, M, E, V):
    keys = list(jax.random.split(key, 24))
    it = iter(keys)

    def lin_w(fin, fout):
        return (jax.random.uniform(next(it), (fin, fout), jnp.float32, -1.0, 1.0)
                / np.sqrt(fin)).astype(jnp.float32)

    def lin_b(fin, fout):
        return (jax.random.uniform(next(it), (1, fout), jnp.float32, -1.0, 1.0)
                / np.sqrt(fin)).astype(jnp.float32)

    p = {}
    emb = jax.random.normal(next(it), (V, E), jnp.float32)
    p['embedding'] = emb.at[PAD_ID].set(0.0)                 # padding_idx row = 0
    # gpv attention (hidden size H)
    p['gpv_Wa'] = lin_w(2 * H, H); p['gpv_b'] = lin_b(2 * H, H)
    p['gpv_v'] = (jax.random.normal(next(it), (1, H), jnp.float32) / np.sqrt(H)).astype(jnp.float32)
    # amedas_linear + attention (size M)
    p['amL_W'] = lin_w(H, M); p['amL_b'] = lin_b(H, M)
    p['am_Wa'] = lin_w(2 * M, M); p['am_b'] = lin_b(2 * M, M)
    p['am_v'] = (jax.random.normal(next(it), (1, M), jnp.float32) / np.sqrt(M)).astype(jnp.float32)
    # meta_linear + attention (size M)
    p['meL_W'] = lin_w(H, M); p['meL_b'] = lin_b(H, M)
    p['me_Wa'] = lin_w(2 * M, M); p['me_b'] = lin_b(2 * M, M)
    p['me_v'] = (jax.random.normal(next(it), (1, M), jnp.float32) / np.sqrt(M)).astype(jnp.float32)
    # attn_combine Linear(E + H + 2M -> H)
    Din = E + H + 2 * M
    p['comb_W'] = lin_w(Din, H); p['comb_b'] = lin_b(Din, H)
    # GRU (n_layers=1), gate order (r, z, n), per-gate transposed weights
    s = 1.0 / np.sqrt(H)
    p['gru_Wih'] = (jax.random.uniform(next(it), (3, H, H), jnp.float32, -1.0, 1.0) * s).astype(jnp.float32)
    p['gru_Whh'] = (jax.random.uniform(next(it), (3, H, H), jnp.float32, -1.0, 1.0) * s).astype(jnp.float32)
    p['gru_bih'] = (jax.random.uniform(next(it), (3, 1, H), jnp.float32, -1.0, 1.0) * s).astype(jnp.float32)
    p['gru_bhh'] = (jax.random.uniform(next(it), (3, 1, H), jnp.float32, -1.0, 1.0) * s).astype(jnp.float32)
    # output projection Linear(H -> V)
    p['out_W'] = lin_w(H, V); p['out_b'] = lin_b(H, V)
    return p


if __name__ == "__main__":
    B, H, M, E, V = 2, 32, 16, 24, 50          # hidden, meta_amedas_hidden, embed, output sizes
    Tg, Ta, Tm = 8, 6, 4

    key = jax.random.PRNGKey(0)
    k_par, k_in = jax.random.split(key)
    params = init_params(k_par, H, M, E, V)
    kparams, dims = prepare_kernel_params(params)

    ks = jax.random.split(k_in, 4)
    word_input = jnp.array([3, PAD_ID], dtype=jnp.int32)                   # (B,)
    last_hidden = jax.random.normal(ks[0], (1, B, H), jnp.float32)         # (layers, B, H)
    enc_gpv = jax.random.normal(ks[1], (Tg, B, H), jnp.float32)            # (T, B, H)
    enc_amedas = jax.random.normal(ks[2], (Ta, B, M), jnp.float32)         # (T, B, M)
    enc_meta = jax.random.normal(ks[3], (Tm, B, M), jnp.float32)           # (T, B, M)

    out = token_attn_decoder_forward(kparams, dims, word_input, last_hidden,
                                     enc_gpv, enc_amedas, enc_meta, None)
    logp, new_hidden, word_emb = jax.block_until_ready(out)

    ref_logp, ref_hidden, ref_emb = reference_forward(params, word_input, last_hidden,
                                                      enc_gpv, enc_amedas, enc_meta)

    assert logp.shape == (B, V) and new_hidden.shape == (1, B, H) and word_emb.shape == (1, B, E)
    np.testing.assert_allclose(np.asarray(logp), np.asarray(ref_logp), rtol=1e-4, atol=1e-4)
    np.testing.assert_allclose(np.asarray(new_hidden), np.asarray(ref_hidden), rtol=1e-4, atol=1e-4)
    np.testing.assert_allclose(np.asarray(word_emb), np.asarray(ref_emb), rtol=1e-5, atol=1e-5)
    print("KERNEL_OK")
</pallas_src>

<mosaic_0001>
module attributes {stable_mosaic.version = 11 : i64} {
  func.func @_decoder_kernel(%arg0: i32, %arg1: memref<8x128xf32, #tpu.memory_space<vmem>>, %arg2: memref<8x128xf32, #tpu.memory_space<vmem>>, %arg3: memref<8x8x128xf32, #tpu.memory_space<vmem>>, %arg4: memref<6x8x128xf32, #tpu.memory_space<vmem>>, %arg5: memref<4x8x128xf32, #tpu.memory_space<vmem>>, %arg6: memref<128x128xf32, #tpu.memory_space<vmem>>, %arg7: memref<128x128xf32, #tpu.memory_space<vmem>>, %arg8: memref<1x128xf32, #tpu.memory_space<vmem>>, %arg9: memref<1x128xf32, #tpu.memory_space<vmem>>, %arg10: memref<128x256xf32, #tpu.memory_space<vmem>>, %arg11: memref<1x256xf32, #tpu.memory_space<vmem>>, %arg12: memref<128x128xf32, #tpu.memory_space<vmem>>, %arg13: memref<128x128xf32, #tpu.memory_space<vmem>>, %arg14: memref<1x128xf32, #tpu.memory_space<vmem>>, %arg15: memref<1x128xf32, #tpu.memory_space<vmem>>, %arg16: memref<128x128xf32, #tpu.memory_space<vmem>>, %arg17: memref<128x128xf32, #tpu.memory_space<vmem>>, %arg18: memref<1x128xf32, #tpu.memory_space<vmem>>, %arg19: memref<1x128xf32, #tpu.memory_space<vmem>>, %arg20: memref<512x128xf32, #tpu.memory_space<vmem>>, %arg21: memref<1x128xf32, #tpu.memory_space<vmem>>, %arg22: memref<128x384xf32, #tpu.memory_space<vmem>>, %arg23: memref<128x384xf32, #tpu.memory_space<vmem>>, %arg24: memref<1x384xf32, #tpu.memory_space<vmem>>, %arg25: memref<1x384xf32, #tpu.memory_space<vmem>>, %arg26: memref<128x128xf32, #tpu.memory_space<vmem>>, %arg27: memref<1x128xf32, #tpu.memory_space<vmem>>, %arg28: memref<8x128xf32, #tpu.memory_space<vmem>>, %arg29: memref<8x128xf32, #tpu.memory_space<vmem>>) attributes {dimension_semantics = [#tpu.dimension_semantics<parallel>], iteration_bounds = array<i64: 1>, scalar_prefetch = 0 : i64, scratch_operands = 0 : i64, tpu.core_type = #tpu.core_type<tc>, window_params = [{transform_indices = @transform_0, window_bounds = array<i64: 8, 128>}, {transform_indices = @transform_1, window_bounds = array<i64: 8, 128>}, {transform_indices = @transform_2, window_bounds = array<i64: 8, 8, 128>}, {transform_indices = @transform_3, window_bounds = array<i64: 6, 8, 128>}, {transform_indices = @transform_4, window_bounds = array<i64: 4, 8, 128>}, {pipeline_mode = #tpu.pipeline_mode<synchronous>, transform_indices = @transform_5, window_bounds = array<i64: 128, 128>}, {pipeline_mode = #tpu.pipeline_mode<synchronous>, transform_indices = @transform_6, window_bounds = array<i64: 128, 128>}, {pipeline_mode = #tpu.pipeline_mode<synchronous>, transform_indices = @transform_7, window_bounds = array<i64: 1, 128>}, {pipeline_mode = #tpu.pipeline_mode<synchronous>, transform_indices = @transform_8, window_bounds = array<i64: 1, 128>}, {pipeline_mode = #tpu.pipeline_mode<synchronous>, transform_indices = @transform_9, window_bounds = array<i64: 128, 256>}, {pipeline_mode = #tpu.pipeline_mode<synchronous>, transform_indices = @transform_10, window_bounds = array<i64: 1, 256>}, {pipeline_mode = #tpu.pipeline_mode<synchronous>, transform_indices = @transform_11, window_bounds = array<i64: 128, 128>}, {pipeline_mode = #tpu.pipeline_mode<synchronous>, transform_indices = @transform_12, window_bounds = array<i64: 128, 128>}, {pipeline_mode = #tpu.pipeline_mode<synchronous>, transform_indices = @transform_13, window_bounds = array<i64: 1, 128>}, {pipeline_mode = #tpu.pipeline_mode<synchronous>, transform_indices = @transform_14, window_bounds = array<i64: 1, 128>}, {pipeline_mode = #tpu.pipeline_mode<synchronous>, transform_indices = @transform_15, window_bounds = array<i64: 128, 128>}, {pipeline_mode = #tpu.pipeline_mode<synchronous>, transform_indices = @transform_16, window_bounds = array<i64: 128, 128>}, {pipeline_mode = #tpu.pipeline_mode<synchronous>, transform_indices = @transform_17, window_bounds = array<i64: 1, 128>}, {pipeline_mode = #tpu.pipeline_mode<synchronous>, transform_indices = @transform_18, window_bounds = array<i64: 1, 128>}, {pipeline_mode = #tpu.pipeline_mode<synchronous>, transform_indices = @transform_19, window_bounds = array<i64: 512, 128>}, {pipeline_mode = #tpu.pipeline_mode<synchronous>, transform_indices = @transform_20, window_bounds = array<i64: 1, 128>}, {pipeline_mode = #tpu.pipeline_mode<synchronous>, transform_indices = @transform_21, window_bounds = array<i64: 128, 384>}, {pipeline_mode = #tpu.pipeline_mode<synchronous>, transform_indices = @transform_22, window_bounds = array<i64: 128, 384>}, {pipeline_mode = #tpu.pipeline_mode<synchronous>, transform_indices = @transform_23, window_bounds = array<i64: 1, 384>}, {pipeline_mode = #tpu.pipeline_mode<synchronous>, transform_indices = @transform_24, window_bounds = array<i64: 1, 384>}, {pipeline_mode = #tpu.pipeline_mode<synchronous>, transform_indices = @transform_25, window_bounds = array<i64: 128, 128>}, {pipeline_mode = #tpu.pipeline_mode<synchronous>, transform_indices = @transform_26, window_bounds = array<i64: 1, 128>}, {transform_indices = @transform_27, window_bounds = array<i64: 8, 128>}, {transform_indices = @transform_28, window_bounds = array<i64: 8, 128>}]} {
    %c0 = arith.constant 0 : index
    %c0_0 = arith.constant 0 : index
    %0 = vector.load %arg1[%c0, %c0_0] : memref<8x128xf32, #tpu.memory_space<vmem>>, vector<8x128xf32>
    %c0_1 = arith.constant 0 : index
    %c0_2 = arith.constant 0 : index
    %1 = vector.load %arg2[%c0_1, %c0_2] : memref<8x128xf32, #tpu.memory_space<vmem>>, vector<8x128xf32>
    %c0_3 = arith.constant 0 : index
    %c0_4 = arith.constant 0 : index
    %2 = vector.load %arg6[%c0_3, %c0_4] : memref<128x128xf32, #tpu.memory_space<vmem>>, vector<128x128xf32>
    %c0_5 = arith.constant 0 : index
    %c0_6 = arith.constant 0 : index
    %3 = vector.load %arg7[%c0_5, %c0_6] : memref<128x128xf32, #tpu.memory_space<vmem>>, vector<128x128xf32>
    %c0_7 = arith.constant 0 : index
    %c0_8 = arith.constant 0 : index
    %4 = vector.load %arg8[%c0_7, %c0_8] : memref<1x128xf32, #tpu.memory_space<vmem>>, vector<1x128xf32>
    %c0_9 = arith.constant 0 : index
    %c0_10 = arith.constant 0 : index
    %5 = vector.load %arg9[%c0_9, %c0_10] : memref<1x128xf32, #tpu.memory_space<vmem>>, vector<1x128xf32>
    %cst = arith.constant dense<0.000000e+00> : vector<8x128xf32>
    %6 = tpu.matmul %1, %2, %cst {dimension_numbers = #tpu.dot_dimension_numbers<[1], [0], [0], [1], [0, 0, 1, 1], [], []>} : vector<8x128xf32>, vector<128x128xf32>, vector<8x128xf32> -> vector<8x128xf32>
    %7 = vector.broadcast %4 : vector<1x128xf32> to vector<8x128xf32>
    %8 = arith.addf %6, %7 : vector<8x128xf32>
    %c0_11 = arith.constant 0 : index
    %c0_12 = arith.constant 0 : index
    %c0_13 = arith.constant 0 : index
    %9 = vector.load %arg3[%c0_11, %c0_12, %c0_13] : memref<8x8x128xf32, #tpu.memory_space<vmem>>, vector<1x8x128xf32>
    %10 = vector.shape_cast %9 : vector<1x8x128xf32> to vector<8x128xf32>
    %cst_14 = arith.constant dense<0.000000e+00> : vector<8x128xf32>
    %11 = tpu.matmul %10, %3, %cst_14 {dimension_numbers = #tpu.dot_dimension_numbers<[1], [0], [0], [1], [0, 0, 1, 1], [], []>} : vector<8x128xf32>, vector<128x128xf32>, vector<8x128xf32> -> vector<8x128xf32>
    %12 = arith.addf %11, %8 : vector<8x128xf32>
    %13 = math.tanh %12 : vector<8x128xf32>
    %14 = vector.broadcast %5 : vector<1x128xf32> to vector<8x128xf32>
    %15 = arith.mulf %13, %14 : vector<8x128xf32>
    %cst_15 = arith.constant dense<0.000000e+00> : vector<8xf32>
    %16 = vector.multi_reduction <add>, %15, %cst_15 [1] : vector<8x128xf32> to vector<8xf32>
    %17 = vector.shape_cast %16 : vector<8xf32> to vector<8x1xf32>
    %c1 = arith.constant 1 : index
    %c0_16 = arith.constant 0 : index
    %c0_17 = arith.constant 0 : index
    %18 = vector.load %arg3[%c1, %c0_16, %c0_17] : memref<8x8x128xf32, #tpu.memory_space<vmem>>, vector<1x8x128xf32>
    %19 = vector.shape_cast %18 : vector<1x8x128xf32> to vector<8x128xf32>
    %cst_18 = arith.constant dense<0.000000e+00> : vector<8x128xf32>
    %20 = tpu.matmul %19, %3, %cst_18 {dimension_numbers = #tpu.dot_dimension_numbers<[1], [0], [0], [1], [0, 0, 1, 1], [], []>} : vector<8x128xf32>, vector<128x128xf32>, vector<8x128xf32> -> vector<8x128xf32>
    %21 = arith.addf %20, %8 : vector<8x128xf32>
    %22 = math.tanh %21 : vector<8x128xf32>
    %23 = vector.broadcast %5 : vector<1x128xf32> to vector<8x128xf32>
    %24 = arith.mulf %22, %23 : vector<8x128xf32>
    %cst_19 = arith.constant dense<0.000000e+00> : vector<8xf32>
    %25 = vector.multi_reduction <add>, %24, %cst_19 [1] : vector<8x128xf32> to vector<8xf32>
    %26 = vector.shape_cast %25 : vector<8xf32> to vector<8x1xf32>
    %c2 = arith.constant 2 : index
    %c0_20 = arith.constant 0 : index
    %c0_21 = arith.constant 0 : index
    %27 = vector.load %arg3[%c2, %c0_20, %c0_21] : memref<8x8x128xf32, #tpu.memory_space<vmem>>, vector<1x8x128xf32>
    %28 = vector.shape_cast %27 : vector<1x8x128xf32> to vector<8x128xf32>
    %cst_22 = arith.constant dense<0.000000e+00> : vector<8x128xf32>
    %29 = tpu.matmul %28, %3, %cst_22 {dimension_numbers = #tpu.dot_dimension_numbers<[1], [0], [0], [1], [0, 0, 1, 1], [], []>} : vector<8x128xf32>, vector<128x128xf32>, vector<8x128xf32> -> vector<8x128xf32>
    %30 = arith.addf %29, %8 : vector<8x128xf32>
    %31 = math.tanh %30 : vector<8x128xf32>
    %32 = vector.broadcast %5 : vector<1x128xf32> to vector<8x128xf32>
    %33 = arith.mulf %31, %32 : vector<8x128xf32>
    %cst_23 = arith.constant dense<0.000000e+00> : vector<8xf32>
    %34 = vector.multi_reduction <add>, %33, %cst_23 [1] : vector<8x128xf32> to vector<8xf32>
    %35 = vector.shape_cast %34 : vector<8xf32> to vector<8x1xf32>
    %c3 = arith.constant 3 : index
    %c0_24 = arith.constant 0 : index
    %c0_25 = arith.constant 0 : index
    %36 = vector.load %arg3[%c3, %c0_24, %c0_25] : memref<8x8x128xf32, #tpu.memory_space<vmem>>, vector<1x8x128xf32>
    %37 = vector.shape_cast %36 : vector<1x8x128xf32> to vector<8x128xf32>
    %cst_26 = arith.constant dense<0.000000e+00> : vector<8x128xf32>
    %38 = tpu.matmul %37, %3, %cst_26 {dimension_numbers = #tpu.dot_dimension_numbers<[1], [0], [0], [1], [0, 0, 1, 1], [], []>} : vector<8x128xf32>, vector<128x128xf32>, vector<8x128xf32> -> vector<8x128xf32>
    %39 = arith.addf %38, %8 : vector<8x128xf32>
    %40 = math.tanh %39 : vector<8x128xf32>
    %41 = vector.broadcast %5 : vector<1x128xf32> to vector<8x128xf32>
    %42 = arith.mulf %40, %41 : vector<8x128xf32>
    %cst_27 = arith.constant dense<0.000000e+00> : vector<8xf32>
    %43 = vector.multi_reduction <add>, %42, %cst_27 [1] : vector<8x128xf32> to vector<8xf32>
    %44 = vector.shape_cast %43 : vector<8xf32> to vector<8x1xf32>
    %c4 = arith.constant 4 : index
    %c0_28 = arith.constant 0 : index
    %c0_29 = arith.constant 0 : index
    %45 = vector.load %arg3[%c4, %c0_28, %c0_29] : memref<8x8x128xf32, #tpu.memory_space<vmem>>, vector<1x8x128xf32>
    %46 = vector.shape_cast %45 : vector<1x8x128xf32> to vector<8x128xf32>
    %cst_30 = arith.constant dense<0.000000e+00> : vector<8x128xf32>
    %47 = tpu.matmul %46, %3, %cst_30 {dimension_numbers = #tpu.dot_dimension_numbers<[1], [0], [0], [1], [0, 0, 1, 1], [], []>} : vector<8x128xf32>, vector<128x128xf32>, vector<8x128xf32> -> vector<8x128xf32>
    %48 = arith.addf %47, %8 : vector<8x128xf32>
    %49 = math.tanh %48 : vector<8x128xf32>
    %50 = vector.broadcast %5 : vector<1x128xf32> to vector<8x128xf32>
    %51 = arith.mulf %49, %50 : vector<8x128xf32>
    %cst_31 = arith.constant dense<0.000000e+00> : vector<8xf32>
    %52 = vector.multi_reduction <add>, %51, %cst_31 [1] : vector<8x128xf32> to vector<8xf32>
    %53 = vector.shape_cast %52 : vector<8xf32> to vector<8x1xf32>
    %c5 = arith.constant 5 : index
    %c0_32 = arith.constant 0 : index
    %c0_33 = arith.constant 0 : index
    %54 = vector.load %arg3[%c5, %c0_32, %c0_33] : memref<8x8x128xf32, #tpu.memory_space<vmem>>, vector<1x8x128xf32>
    %55 = vector.shape_cast %54 : vector<1x8x128xf32> to vector<8x128xf32>
    %cst_34 = arith.constant dense<0.000000e+00> : vector<8x128xf32>
    %56 = tpu.matmul %55, %3, %cst_34 {dimension_numbers = #tpu.dot_dimension_numbers<[1], [0], [0], [1], [0, 0, 1, 1], [], []>} : vector<8x128xf32>, vector<128x128xf32>, vector<8x128xf32> -> vector<8x128xf32>
    %57 = arith.addf %56, %8 : vector<8x128xf32>
    %58 = math.tanh %57 : vector<8x128xf32>
    %59 = vector.broadcast %5 : vector<1x128xf32> to vector<8x128xf32>
    %60 = arith.mulf %58, %59 : vector<8x128xf32>
    %cst_35 = arith.constant dense<0.000000e+00> : vector<8xf32>
    %61 = vector.multi_reduction <add>, %60, %cst_35 [1] : vector<8x128xf32> to vector<8xf32>
    %62 = vector.shape_cast %61 : vector<8xf32> to vector<8x1xf32>
    %c6 = arith.constant 6 : index
    %c0_36 = arith.constant 0 : index
    %c0_37 = arith.constant 0 : index
    %63 = vector.load %arg3[%c6, %c0_36, %c0_37] : memref<8x8x128xf32, #tpu.memory_space<vmem>>, vector<1x8x128xf32>
    %64 = vector.shape_cast %63 : vector<1x8x128xf32> to vector<8x128xf32>
    %cst_38 = arith.constant dense<0.000000e+00> : vector<8x128xf32>
    %65 = tpu.matmul %64, %3, %cst_38 {dimension_numbers = #tpu.dot_dimension_numbers<[1], [0], [0], [1], [0, 0, 1, 1], [], []>} : vector<8x128xf32>, vector<128x128xf32>, vector<8x128xf32> -> vector<8x128xf32>
    %66 = arith.addf %65, %8 : vector<8x128xf32>
    %67 = math.tanh %66 : vector<8x128xf32>
    %68 = vector.broadcast %5 : vector<1x128xf32> to vector<8x128xf32>
    %69 = arith.mulf %67, %68 : vector<8x128xf32>
    %cst_39 = arith.constant dense<0.000000e+00> : vector<8xf32>
    %70 = vector.multi_reduction <add>, %69, %cst_39 [1] : vector<8x128xf32> to vector<8xf32>
    %71 = vector.shape_cast %70 : vector<8xf32> to vector<8x1xf32>
    %c7 = arith.constant 7 : index
    %c0_40 = arith.constant 0 : index
    %c0_41 = arith.constant 0 : index
    %72 = vector.load %arg3[%c7, %c0_40, %c0_41] : memref<8x8x128xf32, #tpu.memory_space<vmem>>, vector<1x8x128xf32>
    %73 = vector.shape_cast %72 : vector<1x8x128xf32> to vector<8x128xf32>
    %cst_42 = arith.constant dense<0.000000e+00> : vector<8x128xf32>
    %74 = tpu.matmul %73, %3, %cst_42 {dimension_numbers = #tpu.dot_dimension_numbers<[1], [0], [0], [1], [0, 0, 1, 1], [], []>} : vector<8x128xf32>, vector<128x128xf32>, vector<8x128xf32> -> vector<8x128xf32>
    %75 = arith.addf %74, %8 : vector<8x128xf32>
    %76 = math.tanh %75 : vector<8x128xf32>
    %77 = vector.broadcast %5 : vector<1x128xf32> to vector<8x128xf32>
    %78 = arith.mulf %76, %77 : vector<8x128xf32>
    %cst_43 = arith.constant dense<0.000000e+00> : vector<8xf32>
    %79 = vector.multi_reduction <add>, %78, %cst_43 [1] : vector<8x128xf32> to vector<8xf32>
    %80 = vector.shape_cast %79 : vector<8xf32> to vector<8x1xf32>
    %81 = arith.maximumf %17, %26 : vector<8x1xf32>
    %82 = arith.maximumf %81, %35 : vector<8x1xf32>
    %83 = arith.maximumf %82, %44 : vector<8x1xf32>
    %84 = arith.maximumf %83, %53 : vector<8x1xf32>
    %85 = arith.maximumf %84, %62 : vector<8x1xf32>
    %86 = arith.maximumf %85, %71 : vector<8x1xf32>
    %87 = arith.maximumf %86, %80 : vector<8x1xf32>
    %88 = arith.subf %17, %87 : vector<8x1xf32>
    %89 = math.exp %88 : vector<8x1xf32>
    %90 = arith.subf %26, %87 : vector<8x1xf32>
    %91 = math.exp %90 : vector<8x1xf32>
    %92 = arith.subf %35, %87 : vector<8x1xf32>
    %93 = math.exp %92 : vector<8x1xf32>
    %94 = arith.subf %44, %87 : vector<8x1xf32>
    %95 = math.exp %94 : vector<8x1xf32>
    %96 = arith.subf %53, %87 : vector<8x1xf32>
    %97 = math.exp %96 : vector<8x1xf32>
    %98 = arith.subf %62, %87 : vector<8x1xf32>
    %99 = math.exp %98 : vector<8x1xf32>
    %100 = arith.subf %71, %87 : vector<8x1xf32>
    %101 = math.exp %100 : vector<8x1xf32>
    %102 = arith.subf %80, %87 : vector<8x1xf32>
    %103 = math.exp %102 : vector<8x1xf32>
    %104 = arith.addf %89, %91 : vector<8x1xf32>
    %105 = arith.addf %104, %93 : vector<8x1xf32>
    %106 = arith.addf %105, %95 : vector<8x1xf32>
    %107 = arith.addf %106, %97 : vector<8x1xf32>
    %108 = arith.addf %107, %99 : vector<8x1xf32>
    %109 = arith.addf %108, %101 : vector<8x1xf32>
    %110 = arith.addf %109, %103 : vector<8x1xf32>
    %cst_44 = arith.constant 1.000000e+00 : f32
    %111 = vector.broadcast %cst_44 : f32 to vector<8x1xf32>
    %112 = arith.divf %111, %110 : vector<8x1xf32>
    %113 = arith.mulf %89, %112 : vector<8x1xf32>
    %c0_45 = arith.constant 0 : index
    %c0_46 = arith.constant 0 : index
    %c0_47 = arith.constant 0 : index
    %114 = vector.load %arg3[%c0_45, %c0_46, %c0_47] : memref<8x8x128xf32, #tpu.memory_space<vmem>>, vector<1x8x128xf32>
    %115 = vector.shape_cast %114 : vector<1x8x128xf32> to vector<8x128xf32>
    %116 = vector.broadcast %113 : vector<8x1xf32> to vector<8x128xf32>
    %117 = arith.mulf %116, %115 : vector<8x128xf32>
    %118 = arith.mulf %91, %112 : vector<8x1xf32>
    %c1_48 = arith.constant 1 : index
    %c0_49 = arith.constant 0 : index
    %c0_50 = arith.constant 0 : index
    %119 = vector.load %arg3[%c1_48, %c0_49, %c0_50] : memref<8x8x128xf32, #tpu.memory_space<vmem>>, vector<1x8x128xf32>
    %120 = vector.shape_cast %119 : vector<1x8x128xf32> to vector<8x128xf32>
    %121 = vector.broadcast %118 : vector<8x1xf32> to vector<8x128xf32>
    %122 = arith.mulf %121, %120 : vector<8x128xf32>
    %123 = arith.addf %117, %122 : vector<8x128xf32>
    %124 = arith.mulf %93, %112 : vector<8x1xf32>
    %c2_51 = arith.constant 2 : index
    %c0_52 = arith.constant 0 : index
    %c0_53 = arith.constant 0 : index
    %125 = vector.load %arg3[%c2_51, %c0_52, %c0_53] : memref<8x8x128xf32, #tpu.memory_space<vmem>>, vector<1x8x128xf32>
    %126 = vector.shape_cast %125 : vector<1x8x128xf32> to vector<8x128xf32>
    %127 = vector.broadcast %124 : vector<8x1xf32> to vector<8x128xf32>
    %128 = arith.mulf %127, %126 : vector<8x128xf32>
    %129 = arith.addf %123, %128 : vector<8x128xf32>
    %130 = arith.mulf %95, %112 : vector<8x1xf32>
    %c3_54 = arith.constant 3 : index
    %c0_55 = arith.constant 0 : index
    %c0_56 = arith.constant 0 : index
    %131 = vector.load %arg3[%c3_54, %c0_55, %c0_56] : memref<8x8x128xf32, #tpu.memory_space<vmem>>, vector<1x8x128xf32>
    %132 = vector.shape_cast %131 : vector<1x8x128xf32> to vector<8x128xf32>
    %133 = vector.broadcast %130 : vector<8x1xf32> to vector<8x128xf32>
    %134 = arith.mulf %133, %132 : vector<8x128xf32>
    %135 = arith.addf %129, %134 : vector<8x128xf32>
    %136 = arith.mulf %97, %112 : vector<8x1xf32>
    %c4_57 = arith.constant 4 : index
    %c0_58 = arith.constant 0 : index
    %c0_59 = arith.constant 0 : index
    %137 = vector.load %arg3[%c4_57, %c0_58, %c0_59] : memref<8x8x128xf32, #tpu.memory_space<vmem>>, vector<1x8x128xf32>
    %138 = vector.shape_cast %137 : vector<1x8x128xf32> to vector<8x128xf32>
    %139 = vector.broadcast %136 : vector<8x1xf32> to vector<8x128xf32>
    %140 = arith.mulf %139, %138 : vector<8x128xf32>
    %141 = arith.addf %135, %140 : vector<8x128xf32>
    %142 = arith.mulf %99, %112 : vector<8x1xf32>
    %c5_60 = arith.constant 5 : index
    %c0_61 = arith.constant 0 : index
    %c0_62 = arith.constant 0 : index
    %143 = vector.load %arg3[%c5_60, %c0_61, %c0_62] : memref<8x8x128xf32, #tpu.memory_space<vmem>>, vector<1x8x128xf32>
    %144 = vector.shape_cast %143 : vector<1x8x128xf32> to vector<8x128xf32>
    %145 = vector.broadcast %142 : vector<8x1xf32> to vector<8x128xf32>
    %146 = arith.mulf %145, %144 : vector<8x128xf32>
    %147 = arith.addf %141, %146 : vector<8x128xf32>
    %148 = arith.mulf %101, %112 : vector<8x1xf32>
    %c6_63 = arith.constant 6 : index
    %c0_64 = arith.constant 0 : index
    %c0_65 = arith.constant 0 : index
    %149 = vector.load %arg3[%c6_63, %c0_64, %c0_65] : memref<8x8x128xf32, #tpu.memory_space<vmem>>, vector<1x8x128xf32>
    %150 = vector.shape_cast %149 : vector<1x8x128xf32> to vector<8x128xf32>
    %151 = vector.broadcast %148 : vector<8x1xf32> to vector<8x128xf32>
    %152 = arith.mulf %151, %150 : vector<8x128xf32>
    %153 = arith.addf %147, %152 : vector<8x128xf32>
    %154 = arith.mulf %103, %112 : vector<8x1xf32>
    %c7_66 = arith.constant 7 : index
    %c0_67 = arith.constant 0 : index
    %c0_68 = arith.constant 0 : index
    %155 = vector.load %arg3[%c7_66, %c0_67, %c0_68] : memref<8x8x128xf32, #tpu.memory_space<vmem>>, vector<1x8x128xf32>
    %156 = vector.shape_cast %155 : vector<1x8x128xf32> to vector<8x128xf32>
    %157 = vector.broadcast %154 : vector<8x1xf32> to vector<8x128xf32>
    %158 = arith.mulf %157, %156 : vector<8x128xf32>
    %159 = arith.addf %153, %158 : vector<8x128xf32>
    %c0_69 = arith.constant 0 : index
    %c0_70 = arith.constant 0 : index
    %160 = vector.load %arg10[%c0_69, %c0_70] : memref<128x256xf32, #tpu.memory_space<vmem>>, vector<128x256xf32>
    %cst_71 = arith.constant dense<0.000000e+00> : vector<8x256xf32>
    %161 = tpu.matmul %1, %160, %cst_71 {dimension_numbers = #tpu.dot_dimension_numbers<[1], [0], [0], [1], [0, 0, 1, 1], [], []>} : vector<8x128xf32>, vector<128x256xf32>, vector<8x256xf32> -> vector<8x256xf32>
    %c0_72 = arith.constant 0 : index
    %c0_73 = arith.constant 0 : index
    %162 = vector.load %arg11[%c0_72, %c0_73] : memref<1x256xf32, #tpu.memory_space<vmem>>, vector<1x256xf32>
    %163 = vector.broadcast %162 : vector<1x256xf32> to vector<8x256xf32>
    %164 = arith.addf %161, %163 : vector<8x256xf32>
    %165 = vector.extract_strided_slice %164 {offsets = [0, 0], sizes = [8, 128], strides = [1, 1]} : vector<8x256xf32> to vector<8x128xf32>
    %c0_74 = arith.constant 0 : index
    %c0_75 = arith.constant 0 : index
    %166 = vector.load %arg12[%c0_74, %c0_75] : memref<128x128xf32, #tpu.memory_space<vmem>>, vector<128x128xf32>
    %c0_76 = arith.constant 0 : index
    %c0_77 = arith.constant 0 : index
    %167 = vector.load %arg13[%c0_76, %c0_77] : memref<128x128xf32, #tpu.memory_space<vmem>>, vector<128x128xf32>
    %c0_78 = arith.constant 0 : index
    %c0_79 = arith.constant 0 : index
    %168 = vector.load %arg14[%c0_78, %c0_79] : memref<1x128xf32, #tpu.memory_space<vmem>>, vector<1x128xf32>
    %c0_80 = arith.constant 0 : index
    %c0_81 = arith.constant 0 : index
    %169 = vector.load %arg15[%c0_80, %c0_81] : memref<1x128xf32, #tpu.memory_space<vmem>>, vector<1x128xf32>
    %cst_82 = arith.constant dense<0.000000e+00> : vector<8x128xf32>
    %170 = tpu.matmul %165, %166, %cst_82 {dimension_numbers = #tpu.dot_dimension_numbers<[1], [0], [0], [1], [0, 0, 1, 1], [], []>} : vector<8x128xf32>, vector<128x128xf32>, vector<8x128xf32> -> vector<8x128xf32>
    %171 = vector.broadcast %168 : vector<1x128xf32> to vector<8x128xf32>
    %172 = arith.addf %170, %171 : vector<8x128xf32>
    %c0_83 = arith.constant 0 : index
    %c0_84 = arith.constant 0 : index
    %c0_85 = arith.constant 0 : index
    %173 = vector.load %arg4[%c0_83, %c0_84, %c0_85] : memref<6x8x128xf32, #tpu.memory_space<vmem>>, vector<1x8x128xf32>
    %174 = vector.shape_cast %173 : vector<1x8x128xf32> to vector<8x128xf32>
    %cst_86 = arith.constant dense<0.000000e+00> : vector<8x128xf32>
    %175 = tpu.matmul %174, %167, %cst_86 {dimension_numbers = #tpu.dot_dimension_numbers<[1], [0], [0], [1], [0, 0, 1, 1], [], []>} : vector<8x128xf32>, vector<128x128xf32>, vector<8x128xf32> -> vector<8x128xf32>
    %176 = arith.addf %175, %172 : vector<8x128xf32>
    %177 = math.tanh %176 : vector<8x128xf32>
    %178 = vector.broadcast %169 : vector<1x128xf32> to vector<8x128xf32>
    %179 = arith.mulf %177, %178 : vector<8x128xf32>
    %cst_87 = arith.constant dense<0.000000e+00> : vector<8xf32>
    %180 = vector.multi_reduction <add>, %179, %cst_87 [1] : vector<8x128xf32> to vector<8xf32>
    %181 = vector.shape_cast %180 : vector<8xf32> to vector<8x1xf32>
    %c1_88 = arith.constant 1 : index
    %c0_89 = arith.constant 0 : index
    %c0_90 = arith.constant 0 : index
    %182 = vector.load %arg4[%c1_88, %c0_89, %c0_90] : memref<6x8x128xf32, #tpu.memory_space<vmem>>, vector<1x8x128xf32>
    %183 = vector.shape_cast %182 : vector<1x8x128xf32> to vector<8x128xf32>
    %cst_91 = arith.constant dense<0.000000e+00> : vector<8x128xf32>
    %184 = tpu.matmul %183, %167, %cst_91 {dimension_numbers = #tpu.dot_dimension_numbers<[1], [0], [0], [1], [0, 0, 1, 1], [], []>} : vector<8x128xf32>, vector<128x128xf32>, vector<8x128xf32> -> vector<8x128xf32>
    %185 = arith.addf %184, %172 : vector<8x128xf32>
    %186 = math.tanh %185 : vector<8x128xf32>
    %187 = vector.broadcast %169 : vector<1x128xf32> to vector<8x128xf32>
    %188 = arith.mulf %186, %187 : vector<8x128xf32>
    %cst_92 = arith.constant dense<0.000000e+00> : vector<8xf32>
    %189 = vector.multi_reduction <add>, %188, %cst_92 [1] : vector<8x128xf32> to vector<8xf32>
    %190 = vector.shape_cast %189 : vector<8xf32> to vector<8x1xf32>
    %c2_93 = arith.constant 2 : index
    %c0_94 = arith.constant 0 : index
    %c0_95 = arith.constant 0 : index
    %191 = vector.load %arg4[%c2_93, %c0_94, %c0_95] : memref<6x8x128xf32, #tpu.memory_space<vmem>>, vector<1x8x128xf32>
    %192 = vector.shape_cast %191 : vector<1x8x128xf32> to vector<8x128xf32>
    %cst_96 = arith.constant dense<0.000000e+00> : vector<8x128xf32>
    %193 = tpu.matmul %192, %167, %cst_96 {dimension_numbers = #tpu.dot_dimension_numbers<[1], [0], [0], [1], [0, 0, 1, 1], [], []>} : vector<8x128xf32>, vector<128x128xf32>, vector<8x128xf32> -> vector<8x128xf32>
    %194 = arith.addf %193, %172 : vector<8x128xf32>
    %195 = math.tanh %194 : vector<8x128xf32>
    %196 = vector.broadcast %169 : vector<1x128xf32> to vector<8x128xf32>
    %197 = arith.mulf %195, %196 : vector<8x128xf32>
    %cst_97 = arith.constant dense<0.000000e+00> : vector<8xf32>
    %198 = vector.multi_reduction <add>, %197, %cst_97 [1] : vector<8x128xf32> to vector<8xf32>
    %199 = vector.shape_cast %198 : vector<8xf32> to vector<8x1xf32>
    %c3_98 = arith.constant 3 : index
    %c0_99 = arith.constant 0 : index
    %c0_100 = arith.constant 0 : index
    %200 = vector.load %arg4[%c3_98, %c0_99, %c0_100] : memref<6x8x128xf32, #tpu.memory_space<vmem>>, vector<1x8x128xf32>
    %201 = vector.shape_cast %200 : vector<1x8x128xf32> to vector<8x128xf32>
    %cst_101 = arith.constant dense<0.000000e+00> : vector<8x128xf32>
    %202 = tpu.matmul %201, %167, %cst_101 {dimension_numbers = #tpu.dot_dimension_numbers<[1], [0], [0], [1], [0, 0, 1, 1], [], []>} : vector<8x128xf32>, vector<128x128xf32>, vector<8x128xf32> -> vector<8x128xf32>
    %203 = arith.addf %202, %172 : vector<8x128xf32>
    %204 = math.tanh %203 : vector<8x128xf32>
    %205 = vector.broadcast %169 : vector<1x128xf32> to vector<8x128xf32>
    %206 = arith.mulf %204, %205 : vector<8x128xf32>
    %cst_102 = arith.constant dense<0.000000e+00> : vector<8xf32>
    %207 = vector.multi_reduction <add>, %206, %cst_102 [1] : vector<8x128xf32> to vector<8xf32>
    %208 = vector.shape_cast %207 : vector<8xf32> to vector<8x1xf32>
    %c4_103 = arith.constant 4 : index
    %c0_104 = arith.constant 0 : index
    %c0_105 = arith.constant 0 : index
    %209 = vector.load %arg4[%c4_103, %c0_104, %c0_105] : memref<6x8x128xf32, #tpu.memory_space<vmem>>, vector<1x8x128xf32>
    %210 = vector.shape_cast %209 : vector<1x8x128xf32> to vector<8x128xf32>
    %cst_106 = arith.constant dense<0.000000e+00> : vector<8x128xf32>
    %211 = tpu.matmul %210, %167, %cst_106 {dimension_numbers = #tpu.dot_dimension_numbers<[1], [0], [0], [1], [0, 0, 1, 1], [], []>} : vector<8x128xf32>, vector<128x128xf32>, vector<8x128xf32> -> vector<8x128xf32>
    %212 = arith.addf %211, %172 : vector<8x128xf32>
    %213 = math.tanh %212 : vector<8x128xf32>
    %214 = vector.broadcast %169 : vector<1x128xf32> to vector<8x128xf32>
    %215 = arith.mulf %213, %214 : vector<8x128xf32>
    %cst_107 = arith.constant dense<0.000000e+00> : vector<8xf32>
    %216 = vector.multi_reduction <add>, %215, %cst_107 [1] : vector<8x128xf32> to vector<8xf32>
    %217 = vector.shape_cast %216 : vector<8xf32> to vector<8x1xf32>
    %c5_108 = arith.constant 5 : index
    %c0_109 = arith.constant 0 : index
    %c0_110 = arith.constant 0 : index
    %218 = vector.load %arg4[%c5_108, %c0_109, %c0_110] : memref<6x8x128xf32, #tpu.memory_space<vmem>>, vector<1x8x128xf32>
    %219 = vector.shape_cast %218 : vector<1x8x128xf32> to vector<8x128xf32>
    %cst_111 = arith.constant dense<0.000000e+00> : vector<8x128xf32>
    %220 = tpu.matmul %219, %167, %cst_111 {dimension_numbers = #tpu.dot_dimension_numbers<[1], [0], [0], [1], [0, 0, 1, 1], [], []>} : vector<8x128xf32>, vector<128x128xf32>, vector<8x128xf32> -> vector<8x128xf32>
    %221 = arith.addf %220, %172 : vector<8x128xf32>
    %222 = math.tanh %221 : vector<8x128xf32>
    %223 = vector.broadcast %169 : vector<1x128xf32> to vector<8x128xf32>
    %224 = arith.mulf %222, %223 : vector<8x128xf32>
    %cst_112 = arith.constant dense<0.000000e+00> : vector<8xf32>
    %225 = vector.multi_reduction <add>, %224, %cst_112 [1] : vector<8x128xf32> to vector<8xf32>
    %226 = vector.shape_cast %225 : vector<8xf32> to vector<8x1xf32>
    %227 = arith.maximumf %181, %190 : vector<8x1xf32>
    %228 = arith.maximumf %227, %199 : vector<8x1xf32>
    %229 = arith.maximumf %228, %208 : vector<8x1xf32>
    %230 = arith.maximumf %229, %217 : vector<8x1xf32>
    %231 = arith.maximumf %230, %226 : vector<8x1xf32>
    %232 = arith.subf %181, %231 : vector<8x1xf32>
    %233 = math.exp %232 : vector<8x1xf32>
    %234 = arith.subf %190, %231 : vector<8x1xf32>
    %235 = math.exp %234 : vector<8x1xf32>
    %236 = arith.subf %199, %231 : vector<8x1xf32>
    %237 = math.exp %236 : vector<8x1xf32>
    %238 = arith.subf %208, %231 : vector<8x1xf32>
    %239 = math.exp %238 : vector<8x1xf32>
    %240 = arith.subf %217, %231 : vector<8x1xf32>
    %241 = math.exp %240 : vector<8x1xf32>
    %242 = arith.subf %226, %231 : vector<8x1xf32>
    %243 = math.exp %242 : vector<8x1xf32>
    %244 = arith.addf %233, %235 : vector<8x1xf32>
    %245 = arith.addf %244, %237 : vector<8x1xf32>
    %246 = arith.addf %245, %239 : vector<8x1xf32>
    %247 = arith.addf %246, %241 : vector<8x1xf32>
    %248 = arith.addf %247, %243 : vector<8x1xf32>
    %cst_113 = arith.constant 1.000000e+00 : f32
    %249 = vector.broadcast %cst_113 : f32 to vector<8x1xf32>
    %250 = arith.divf %249, %248 : vector<8x1xf32>
    %251 = arith.mulf %233, %250 : vector<8x1xf32>
    %c0_114 = arith.constant 0 : index
    %c0_115 = arith.constant 0 : index
    %c0_116 = arith.constant 0 : index
    %252 = vector.load %arg4[%c0_114, %c0_115, %c0_116] : memref<6x8x128xf32, #tpu.memory_space<vmem>>, vector<1x8x128xf32>
    %253 = vector.shape_cast %252 : vector<1x8x128xf32> to vector<8x128xf32>
    %254 = vector.broadcast %251 : vector<8x1xf32> to vector<8x128xf32>
    %255 = arith.mulf %254, %253 : vector<8x128xf32>
    %256 = arith.mulf %235, %250 : vector<8x1xf32>
    %c1_117 = arith.constant 1 : index
    %c0_118 = arith.constant 0 : index
    %c0_119 = arith.constant 0 : index
    %257 = vector.load %arg4[%c1_117, %c0_118, %c0_119] : memref<6x8x128xf32, #tpu.memory_space<vmem>>, vector<1x8x128xf32>
    %258 = vector.shape_cast %257 : vector<1x8x128xf32> to vector<8x128xf32>
    %259 = vector.broadcast %256 : vector<8x1xf32> to vector<8x128xf32>
    %260 = arith.mulf %259, %258 : vector<8x128xf32>
    %261 = arith.addf %255, %260 : vector<8x128xf32>
    %262 = arith.mulf %237, %250 : vector<8x1xf32>
    %c2_120 = arith.constant 2 : index
    %c0_121 = arith.constant 0 : index
    %c0_122 = arith.constant 0 : index
    %263 = vector.load %arg4[%c2_120, %c0_121, %c0_122] : memref<6x8x128xf32, #tpu.memory_space<vmem>>, vector<1x8x128xf32>
    %264 = vector.shape_cast %263 : vector<1x8x128xf32> to vector<8x128xf32>
    %265 = vector.broadcast %262 : vector<8x1xf32> to vector<8x128xf32>
    %266 = arith.mulf %265, %264 : vector<8x128xf32>
    %267 = arith.addf %261, %266 : vector<8x128xf32>
    %268 = arith.mulf %239, %250 : vector<8x1xf32>
    %c3_123 = arith.constant 3 : index
    %c0_124 = arith.constant 0 : index
    %c0_125 = arith.constant 0 : index
    %269 = vector.load %arg4[%c3_123, %c0_124, %c0_125] : memref<6x8x128xf32, #tpu.memory_space<vmem>>, vector<1x8x128xf32>
    %270 = vector.shape_cast %269 : vector<1x8x128xf32> to vector<8x128xf32>
    %271 = vector.broadcast %268 : vector<8x1xf32> to vector<8x128xf32>
    %272 = arith.mulf %271, %270 : vector<8x128xf32>
    %273 = arith.addf %267, %272 : vector<8x128xf32>
    %274 = arith.mulf %241, %250 : vector<8x1xf32>
    %c4_126 = arith.constant 4 : index
    %c0_127 = arith.constant 0 : index
    %c0_128 = arith.constant 0 : index
    %275 = vector.load %arg4[%c4_126, %c0_127, %c0_128] : memref<6x8x128xf32, #tpu.memory_space<vmem>>, vector<1x8x128xf32>
    %276 = vector.shape_cast %275 : vector<1x8x128xf32> to vector<8x128xf32>
    %277 = vector.broadcast %274 : vector<8x1xf32> to vector<8x128xf32>
    %278 = arith.mulf %277, %276 : vector<8x128xf32>
    %279 = arith.addf %273, %278 : vector<8x128xf32>
    %280 = arith.mulf %243, %250 : vector<8x1xf32>
    %c5_129 = arith.constant 5 : index
    %c0_130 = arith.constant 0 : index
    %c0_131 = arith.constant 0 : index
    %281 = vector.load %arg4[%c5_129, %c0_130, %c0_131] : memref<6x8x128xf32, #tpu.memory_space<vmem>>, vector<1x8x128xf32>
    %282 = vector.shape_cast %281 : vector<1x8x128xf32> to vector<8x128xf32>
    %283 = vector.broadcast %280 : vector<8x1xf32> to vector<8x128xf32>
    %284 = arith.mulf %283, %282 : vector<8x128xf32>
    %285 = arith.addf %279, %284 : vector<8x128xf32>
    %286 = vector.extract_strided_slice %164 {offsets = [0, 128], sizes = [8, 128], strides = [1, 1]} : vector<8x256xf32> to vector<8x128xf32>
    %c0_132 = arith.constant 0 : index
    %c0_133 = arith.constant 0 : index
    %287 = vector.load %arg16[%c0_132, %c0_133] : memref<128x128xf32, #tpu.memory_space<vmem>>, vector<128x128xf32>
    %c0_134 = arith.constant 0 : index
    %c0_135 = arith.constant 0 : index
    %288 = vector.load %arg17[%c0_134, %c0_135] : memref<128x128xf32, #tpu.memory_space<vmem>>, vector<128x128xf32>
    %c0_136 = arith.constant 0 : index
    %c0_137 = arith.constant 0 : index
    %289 = vector.load %arg18[%c0_136, %c0_137] : memref<1x128xf32, #tpu.memory_space<vmem>>, vector<1x128xf32>
    %c0_138 = arith.constant 0 : index
    %c0_139 = arith.constant 0 : index
    %290 = vector.load %arg19[%c0_138, %c0_139] : memref<1x128xf32, #tpu.memory_space<vmem>>, vector<1x128xf32>
    %cst_140 = arith.constant dense<0.000000e+00> : vector<8x128xf32>
    %291 = tpu.matmul %286, %287, %cst_140 {dimension_numbers = #tpu.dot_dimension_numbers<[1], [0], [0], [1], [0, 0, 1, 1], [], []>} : vector<8x128xf32>, vector<128x128xf32>, vector<8x128xf32> -> vector<8x128xf32>
    %292 = vector.broadcast %289 : vector<1x128xf32> to vector<8x128xf32>
    %293 = arith.addf %291, %292 : vector<8x128xf32>
    %c0_141 = arith.constant 0 : index
    %c0_142 = arith.constant 0 : index
    %c0_143 = arith.constant 0 : index
    %294 = vector.load %arg5[%c0_141, %c0_142, %c0_143] : memref<4x8x128xf32, #tpu.memory_space<vmem>>, vector<1x8x128xf32>
    %295 = vector.shape_cast %294 : vector<1x8x128xf32> to vector<8x128xf32>
    %cst_144 = arith.constant dense<0.000000e+00> : vector<8x128xf32>
    %296 = tpu.matmul %295, %288, %cst_144 {dimension_numbers = #tpu.dot_dimension_numbers<[1], [0], [0], [1], [0, 0, 1, 1], [], []>} : vector<8x128xf32>, vector<128x128xf32>, vector<8x128xf32> -> vector<8x128xf32>
    %297 = arith.addf %296, %293 : vector<8x128xf32>
    %298 = math.tanh %297 : vector<8x128xf32>
    %299 = vector.broadcast %290 : vector<1x128xf32> to vector<8x128xf32>
    %300 = arith.mulf %298, %299 : vector<8x128xf32>
    %cst_145 = arith.constant dense<0.000000e+00> : vector<8xf32>
    %301 = vector.multi_reduction <add>, %300, %cst_145 [1] : vector<8x128xf32> to vector<8xf32>
    %302 = vector.shape_cast %301 : vector<8xf32> to vector<8x1xf32>
    %c1_146 = arith.constant 1 : index
    %c0_147 = arith.constant 0 : index
    %c0_148 = arith.constant 0 : index
    %303 = vector.load %arg5[%c1_146, %c0_147, %c0_148] : memref<4x8x128xf32, #tpu.memory_space<vmem>>, vector<1x8x128xf32>
    %304 = vector.shape_cast %303 : vector<1x8x128xf32> to vector<8x128xf32>
    %cst_149 = arith.constant dense<0.000000e+00> : vector<8x128xf32>
    %305 = tpu.matmul %304, %288, %cst_149 {dimension_numbers = #tpu.dot_dimension_numbers<[1], [0], [0], [1], [0, 0, 1, 1], [], []>} : vector<8x128xf32>, vector<128x128xf32>, vector<8x128xf32> -> vector<8x128xf32>
    %306 = arith.addf %305, %293 : vector<8x128xf32>
    %307 = math.tanh %306 : vector<8x128xf32>
    %308 = vector.broadcast %290 : vector<1x128xf32> to vector<8x128xf32>
    %309 = arith.mulf %307, %308 : vector<8x128xf32>
    %cst_150 = arith.constant dense<0.000000e+00> : vector<8xf32>
    %310 = vector.multi_reduction <add>, %309, %cst_150 [1] : vector<8x128xf32> to vector<8xf32>
    %311 = vector.shape_cast %310 : vector<8xf32> to vector<8x1xf32>
    %c2_151 = arith.constant 2 : index
    %c0_152 = arith.constant 0 : index
    %c0_153 = arith.constant 0 : index
    %312 = vector.load %arg5[%c2_151, %c0_152, %c0_153] : memref<4x8x128xf32, #tpu.memory_space<vmem>>, vector<1x8x128xf32>
    %313 = vector.shape_cast %312 : vector<1x8x128xf32> to vector<8x128xf32>
    %cst_154 = arith.constant dense<0.000000e+00> : vector<8x128xf32>
    %314 = tpu.matmul %313, %288, %cst_154 {dimension_numbers = #tpu.dot_dimension_numbers<[1], [0], [0], [1], [0, 0, 1, 1], [], []>} : vector<8x128xf32>, vector<128x128xf32>, vector<8x128xf32> -> vector<8x128xf32>
    %315 = arith.addf %314, %293 : vector<8x128xf32>
    %316 = math.tanh %315 : vector<8x128xf32>
    %317 = vector.broadcast %290 : vector<1x128xf32> to vector<8x128xf32>
    %318 = arith.mulf %316, %317 : vector<8x128xf32>
    %cst_155 = arith.constant dense<0.000000e+00> : vector<8xf32>
    %319 = vector.multi_reduction <add>, %318, %cst_155 [1] : vector<8x128xf32> to vector<8xf32>
    %320 = vector.shape_cast %319 : vector<8xf32> to vector<8x1xf32>
    %c3_156 = arith.constant 3 : index
    %c0_157 = arith.constant 0 : index
    %c0_158 = arith.constant 0 : index
    %321 = vector.load %arg5[%c3_156, %c0_157, %c0_158] : memref<4x8x128xf32, #tpu.memory_space<vmem>>, vector<1x8x128xf32>
    %322 = vector.shape_cast %321 : vector<1x8x128xf32> to vector<8x128xf32>
    %cst_159 = arith.constant dense<0.000000e+00> : vector<8x128xf32>
    %323 = tpu.matmul %322, %288, %cst_159 {dimension_numbers = #tpu.dot_dimension_numbers<[1], [0], [0], [1], [0, 0, 1, 1], [], []>} : vector<8x128xf32>, vector<128x128xf32>, vector<8x128xf32> -> vector<8x128xf32>
    %324 = arith.addf %323, %293 : vector<8x128xf32>
    %325 = math.tanh %324 : vector<8x128xf32>
    %326 = vector.broadcast %290 : vector<1x128xf32> to vector<8x128xf32>
    %327 = arith.mulf %325, %326 : vector<8x128xf32>
    %cst_160 = arith.constant dense<0.000000e+00> : vector<8xf32>
    %328 = vector.multi_reduction <add>, %327, %cst_160 [1] : vector<8x128xf32> to vector<8xf32>
    %329 = vector.shape_cast %328 : vector<8xf32> to vector<8x1xf32>
    %330 = arith.maximumf %302, %311 : vector<8x1xf32>
    %331 = arith.maximumf %330, %320 : vector<8x1xf32>
    %332 = arith.maximumf %331, %329 : vector<8x1xf32>
    %333 = arith.subf %302, %332 : vector<8x1xf32>
    %334 = math.exp %333 : vector<8x1xf32>
    %335 = arith.subf %311, %332 : vector<8x1xf32>
    %336 = math.exp %335 : vector<8x1xf32>
    %337 = arith.subf %320, %332 : vector<8x1xf32>
    %338 = math.exp %337 : vector<8x1xf32>
    %339 = arith.subf %329, %332 : vector<8x1xf32>
    %340 = math.exp %339 : vector<8x1xf32>
    %341 = arith.addf %334, %336 : vector<8x1xf32>
    %342 = arith.addf %341, %338 : vector<8x1xf32>
    %343 = arith.addf %342, %340 : vector<8x1xf32>
    %cst_161 = arith.constant 1.000000e+00 : f32
    %344 = vector.broadcast %cst_161 : f32 to vector<8x1xf32>
    %345 = arith.divf %344, %343 : vector<8x1xf32>
    %346 = arith.mulf %334, %345 : vector<8x1xf32>
    %c0_162 = arith.constant 0 : index
    %c0_163 = arith.constant 0 : index
    %c0_164 = arith.constant 0 : index
    %347 = vector.load %arg5[%c0_162, %c0_163, %c0_164] : memref<4x8x128xf32, #tpu.memory_space<vmem>>, vector<1x8x128xf32>
    %348 = vector.shape_cast %347 : vector<1x8x128xf32> to vector<8x128xf32>
    %349 = vector.broadcast %346 : vector<8x1xf32> to vector<8x128xf32>
    %350 = arith.mulf %349, %348 : vector<8x128xf32>
    %351 = arith.mulf %336, %345 : vector<8x1xf32>
    %c1_165 = arith.constant 1 : index
    %c0_166 = arith.constant 0 : index
    %c0_167 = arith.constant 0 : index
    %352 = vector.load %arg5[%c1_165, %c0_166, %c0_167] : memref<4x8x128xf32, #tpu.memory_space<vmem>>, vector<1x8x128xf32>
    %353 = vector.shape_cast %352 : vector<1x8x128xf32> to vector<8x128xf32>
    %354 = vector.broadcast %351 : vector<8x1xf32> to vector<8x128xf32>
    %355 = arith.mulf %354, %353 : vector<8x128xf32>
    %356 = arith.addf %350, %355 : vector<8x128xf32>
    %357 = arith.mulf %338, %345 : vector<8x1xf32>
    %c2_168 = arith.constant 2 : index
    %c0_169 = arith.constant 0 : index
    %c0_170 = arith.constant 0 : index
    %358 = vector.load %arg5[%c2_168, %c0_169, %c0_170] : memref<4x8x128xf32, #tpu.memory_space<vmem>>, vector<1x8x128xf32>
    %359 = vector.shape_cast %358 : vector<1x8x128xf32> to vector<8x128xf32>
    %360 = vector.broadcast %357 : vector<8x1xf32> to vector<8x128xf32>
    %361 = arith.mulf %360, %359 : vector<8x128xf32>
    %362 = arith.addf %356, %361 : vector<8x128xf32>
    %363 = arith.mulf %340, %345 : vector<8x1xf32>
    %c3_171 = arith.constant 3 : index
    %c0_172 = arith.constant 0 : index
    %c0_173 = arith.constant 0 : index
    %364 = vector.load %arg5[%c3_171, %c0_172, %c0_173] : memref<4x8x128xf32, #tpu.memory_space<vmem>>, vector<1x8x128xf32>
    %365 = vector.shape_cast %364 : vector<1x8x128xf32> to vector<8x128xf32>
    %366 = vector.broadcast %363 : vector<8x1xf32> to vector<8x128xf32>
    %367 = arith.mulf %366, %365 : vector<8x128xf32>
    %368 = arith.addf %362, %367 : vector<8x128xf32>
    %369 = tpu.concatenate %0, %159, %285, %368 in 1 : vector<8x128xf32>, vector<8x128xf32>, vector<8x128xf32>, vector<8x128xf32> -> vector<8x512xf32>
    %c0_174 = arith.constant 0 : index
    %c0_175 = arith.constant 0 : index
    %370 = vector.load %arg20[%c0_174, %c0_175] : memref<512x128xf32, #tpu.memory_space<vmem>>, vector<512x128xf32>
    %cst_176 = arith.constant dense<0.000000e+00> : vector<8x128xf32>
    %371 = tpu.matmul %369, %370, %cst_176 {dimension_numbers = #tpu.dot_dimension_numbers<[1], [0], [0], [1], [0, 0, 1, 1], [], []>} : vector<8x512xf32>, vector<512x128xf32>, vector<8x128xf32> -> vector<8x128xf32>
    %c0_177 = arith.constant 0 : index
    %c0_178 = arith.constant 0 : index
    %372 = vector.load %arg21[%c0_177, %c0_178] : memref<1x128xf32, #tpu.memory_space<vmem>>, vector<1x128xf32>
    %373 = vector.broadcast %372 : vector<1x128xf32> to vector<8x128xf32>
    %374 = arith.addf %371, %373 : vector<8x128xf32>
    %cst_179 = arith.constant 0.000000e+00 : f32
    %375 = vector.broadcast %cst_179 : f32 to vector<8x128xf32>
    %376 = arith.maximumf %374, %375 : vector<8x128xf32>
    %c0_180 = arith.constant 0 : index
    %c0_181 = arith.constant 0 : index
    %377 = vector.load %arg22[%c0_180, %c0_181] : memref<128x384xf32, #tpu.memory_space<vmem>>, vector<128x384xf32>
    %cst_182 = arith.constant dense<0.000000e+00> : vector<8x384xf32>
    %378 = tpu.matmul %376, %377, %cst_182 {dimension_numbers = #tpu.dot_dimension_numbers<[1], [0], [0], [1], [0, 0, 1, 1], [], []>} : vector<8x128xf32>, vector<128x384xf32>, vector<8x384xf32> -> vector<8x384xf32>
    %c0_183 = arith.constant 0 : index
    %c0_184 = arith.constant 0 : index
    %379 = vector.load %arg24[%c0_183, %c0_184] : memref<1x384xf32, #tpu.memory_space<vmem>>, vector<1x384xf32>
    %380 = vector.broadcast %379 : vector<1x384xf32> to vector<8x384xf32>
    %381 = arith.addf %378, %380 : vector<8x384xf32>
    %c0_185 = arith.constant 0 : index
    %c0_186 = arith.constant 0 : index
    %382 = vector.load %arg23[%c0_185, %c0_186] : memref<128x384xf32, #tpu.memory_space<vmem>>, vector<128x384xf32>
    %cst_187 = arith.constant dense<0.000000e+00> : vector<8x384xf32>
    %383 = tpu.matmul %1, %382, %cst_187 {dimension_numbers = #tpu.dot_dimension_numbers<[1], [0], [0], [1], [0, 0, 1, 1], [], []>} : vector<8x128xf32>, vector<128x384xf32>, vector<8x384xf32> -> vector<8x384xf32>
    %c0_188 = arith.constant 0 : index
    %c0_189 = arith.constant 0 : index
    %384 = vector.load %arg25[%c0_188, %c0_189] : memref<1x384xf32, #tpu.memory_space<vmem>>, vector<1x384xf32>
    %385 = vector.broadcast %384 : vector<1x384xf32> to vector<8x384xf32>
    %386 = arith.addf %383, %385 : vector<8x384xf32>
    %387 = vector.extract_strided_slice %381 {offsets = [0, 0], sizes = [8, 128], strides = [1, 1]} : vector<8x384xf32> to vector<8x128xf32>
    %388 = vector.extract_strided_slice %386 {offsets = [0, 0], sizes = [8, 128], strides = [1, 1]} : vector<8x384xf32> to vector<8x128xf32>
    %389 = arith.addf %387, %388 : vector<8x128xf32>
    %390 = arith.negf %389 : vector<8x128xf32>
    %391 = math.exp %390 : vector<8x128xf32>
    %cst_190 = arith.constant 1.000000e+00 : f32
    %392 = vector.broadcast %cst_190 : f32 to vector<8x128xf32>
    %393 = arith.addf %392, %391 : vector<8x128xf32>
    %394 = arith.divf %392, %393 : vector<8x128xf32>
    %395 = vector.extract_strided_slice %381 {offsets = [0, 128], sizes = [8, 128], strides = [1, 1]} : vector<8x384xf32> to vector<8x128xf32>
    %396 = vector.extract_strided_slice %386 {offsets = [0, 128], sizes = [8, 128], strides = [1, 1]} : vector<8x384xf32> to vector<8x128xf32>
    %397 = arith.addf %395, %396 : vector<8x128xf32>
    %398 = arith.negf %397 : vector<8x128xf32>
    %399 = math.exp %398 : vector<8x128xf32>
    %cst_191 = arith.constant 1.000000e+00 : f32
    %400 = vector.broadcast %cst_191 : f32 to vector<8x128xf32>
    %401 = arith.addf %400, %399 : vector<8x128xf32>
    %402 = arith.divf %400, %401 : vector<8x128xf32>
    %403 = vector.extract_strided_slice %381 {offsets = [0, 256], sizes = [8, 128], strides = [1, 1]} : vector<8x384xf32> to vector<8x128xf32>
    %404 = vector.extract_strided_slice %386 {offsets = [0, 256], sizes = [8, 128], strides = [1, 1]} : vector<8x384xf32> to vector<8x128xf32>
    %405 = arith.mulf %394, %404 : vector<8x128xf32>
    %406 = arith.addf %403, %405 : vector<8x128xf32>
    %407 = math.tanh %406 : vector<8x128xf32>
    %cst_192 = arith.constant 1.000000e+00 : f32
    %408 = vector.broadcast %cst_192 : f32 to vector<8x128xf32>
    %409 = arith.subf %408, %402 : vector<8x128xf32>
    %410 = arith.mulf %409, %407 : vector<8x128xf32>
    %411 = arith.mulf %402, %1 : vector<8x128xf32>
    %412 = arith.addf %410, %411 : vector<8x128xf32>
    %c0_193 = arith.constant 0 : index
    %c0_194 = arith.constant 0 : index
    %413 = vector.load %arg29[%c0_193, %c0_194] : memref<8x128xf32, #tpu.memory_space<vmem>>, vector<8x128xf32>
    tpu.vector_store %arg29[%c0_193, %c0_194], %412 {strides = array<i32>} : memref<8x128xf32, #tpu.memory_space<vmem>>, vector<8x128xf32>,
    %c0_195 = arith.constant 0 : index
    %c0_196 = arith.constant 0 : index
    %414 = vector.load %arg26[%c0_195, %c0_196] : memref<128x128xf32, #tpu.memory_space<vmem>>, vector<128x128xf32>
    %cst_197 = arith.constant dense<0.000000e+00> : vector<8x128xf32>
    %415 = tpu.matmul %412, %414, %cst_197 {dimension_numbers = #tpu.dot_dimension_numbers<[1], [0], [0], [1], [0, 0, 1, 1], [], []>} : vector<8x128xf32>, vector<128x128xf32>, vector<8x128xf32> -> vector<8x128xf32>
    %c0_198 = arith.constant 0 : index
    %c0_199 = arith.constant 0 : index
    %416 = vector.load %arg27[%c0_198, %c0_199] : memref<1x128xf32, #tpu.memory_space<vmem>>, vector<1x128xf32>
    %417 = vector.broadcast %416 : vector<1x128xf32> to vector<8x128xf32>
    %418 = arith.addf %415, %417 : vector<8x128xf32>
    %cst_200 = arith.constant dense<0xFF800000> : vector<8xf32>
    %419 = vector.multi_reduction <maximumf>, %418, %cst_200 [1] : vector<8x128xf32> to vector<8xf32>
    %420 = vector.shape_cast %419 : vector<8xf32> to vector<8x1xf32>
    %421 = vector.broadcast %420 : vector<8x1xf32> to vector<8x128xf32>
    %422 = arith.subf %418, %421 : vector<8x128xf32>
    %423 = math.exp %422 : vector<8x128xf32>
    %cst_201 = arith.constant dense<0.000000e+00> : vector<8xf32>
    %424 = vector.multi_reduction <add>, %423, %cst_201 [1] : vector<8x128xf32> to vector<8xf32>
    %425 = vector.shape_cast %424 : vector<8xf32> to vector<8x1xf32>
    %426 = math.log %425 : vector<8x1xf32>
    %427 = vector.broadcast %426 : vector<8x1xf32> to vector<8x128xf32>
    %428 = arith.subf %422, %427 : vector<8x128xf32>
    %c0_202 = arith.constant 0 : index
    %c0_203 = arith.constant 0 : index
    %429 = vector.load %arg28[%c0_202, %c0_203] : memref<8x128xf32, #tpu.memory_space<vmem>>, vector<8x128xf32>
    tpu.vector_store %arg28[%c0_202, %c0_203], %428 {strides = array<i32>} : memref<8x128xf32, #tpu.memory_space<vmem>>, vector<8x128xf32>,
    return
  }
  func.func @transform_0(%arg0: i32) -> (i32, i32) {
    %c0_i32 = arith.constant 0 : i32
    %c0_i32_0 = arith.constant 0 : i32
    return %arg0, %c0_i32 : i32, i32
  }
  func.func @transform_1(%arg0: i32) -> (i32, i32) {
    %c0_i32 = arith.constant 0 : i32
    %c0_i32_0 = arith.constant 0 : i32
    return %arg0, %c0_i32 : i32, i32
  }
  func.func @transform_2(%arg0: i32) -> (i32, i32, i32) {
    %c0_i32 = arith.constant 0 : i32
    %c0_i32_0 = arith.constant 0 : i32
    %c0_i32_1 = arith.constant 0 : i32
    return %c0_i32, %arg0, %c0_i32_0 : i32, i32, i32
  }
  func.func @transform_3(%arg0: i32) -> (i32, i32, i32) {
    %c0_i32 = arith.constant 0 : i32
    %c0_i32_0 = arith.constant 0 : i32
    %c0_i32_1 = arith.constant 0 : i32
    return %c0_i32, %arg0, %c0_i32_0 : i32, i32, i32
  }
  func.func @transform_4(%arg0: i32) -> (i32, i32, i32) {
    %c0_i32 = arith.constant 0 : i32
    %c0_i32_0 = arith.constant 0 : i32
    %c0_i32_1 = arith.constant 0 : i32
    return %c0_i32, %arg0, %c0_i32_0 : i32, i32, i32
  }
  func.func @transform_5(%arg0: i32) -> (i32, i32) {
    %c0_i32 = arith.constant 0 : i32
    %c0_i32_0 = arith.constant 0 : i32
    %c0_i32_1 = arith.constant 0 : i32
    return %c0_i32, %c0_i32_0 : i32, i32
  }
  func.func @transform_6(%arg0: i32) -> (i32, i32) {
    %c0_i32 = arith.constant 0 : i32
    %c0_i32_0 = arith.constant 0 : i32
    %c0_i32_1 = arith.constant 0 : i32
    return %c0_i32, %c0_i32_0 : i32, i32
  }
  func.func @transform_7(%arg0: i32) -> (i32, i32) {
    %c0_i32 = arith.constant 0 : i32
    %c0_i32_0 = arith.constant 0 : i32
    %c0_i32_1 = arith.constant 0 : i32
    return %c0_i32, %c0_i32_0 : i32, i32
  }
  func.func @transform_8(%arg0: i32) -> (i32, i32) {
    %c0_i32 = arith.constant 0 : i32
    %c0_i32_0 = arith.constant 0 : i32
    %c0_i32_1 = arith.constant 0 : i32
    return %c0_i32, %c0_i32_0 : i32, i32
  }
  func.func @transform_9(%arg0: i32) -> (i32, i32) {
    %c0_i32 = arith.constant 0 : i32
    %c0_i32_0 = arith.constant 0 : i32
    %c0_i32_1 = arith.constant 0 : i32
    return %c0_i32, %c0_i32_0 : i32, i32
  }
  func.func @transform_10(%arg0: i32) -> (i32, i32) {
    %c0_i32 = arith.constant 0 : i32
    %c0_i32_0 = arith.constant 0 : i32
    %c0_i32_1 = arith.constant 0 : i32
    return %c0_i32, %c0_i32_0 : i32, i32
  }
  func.func @transform_11(%arg0: i32) -> (i32, i32) {
    %c0_i32 = arith.constant 0 : i32
    %c0_i32_0 = arith.constant 0 : i32
    %c0_i32_1 = arith.constant 0 : i32
    return %c0_i32, %c0_i32_0 : i32, i32
  }
  func.func @transform_12(%arg0: i32) -> (i32, i32) {
    %c0_i32 = arith.constant 0 : i32
    %c0_i32_0 = arith.constant 0 : i32
    %c0_i32_1 = arith.constant 0 : i32
    return %c0_i32, %c0_i32_0 : i32, i32
  }
  func.func @transform_13(%arg0: i32) -> (i32, i32) {
    %c0_i32 = arith.constant 0 : i32
    %c0_i32_0 = arith.constant 0 : i32
    %c0_i32_1 = arith.constant 0 : i32
    return %c0_i32, %c0_i32_0 : i32, i32
  }
  func.func @transform_14(%arg0: i32) -> (i32, i32) {
    %c0_i32 = arith.constant 0 : i32
    %c0_i32_0 = arith.constant 0 : i32
    %c0_i32_1 = arith.constant 0 : i32
    return %c0_i32, %c0_i32_0 : i32, i32
  }
  func.func @transform_15(%arg0: i32) -> (i32, i32) {
    %c0_i32 = arith.constant 0 : i32
    %c0_i32_0 = arith.constant 0 : i32
    %c0_i32_1 = arith.constant 0 : i32
    return %c0_i32, %c0_i32_0 : i32, i32
  }
  func.func @transform_16(%arg0: i32) -> (i32, i32) {
    %c0_i32 = arith.constant 0 : i32
    %c0_i32_0 = arith.constant 0 : i32
    %c0_i32_1 = arith.constant 0 : i32
    return %c0_i32, %c0_i32_0 : i32, i32
  }
  func.func @transform_17(%arg0: i32) -> (i32, i32) {
    %c0_i32 = arith.constant 0 : i32
    %c0_i32_0 = arith.constant 0 : i32
    %c0_i32_1 = arith.constant 0 : i32
    return %c0_i32, %c0_i32_0 : i32, i32
  }
  func.func @transform_18(%arg0: i32) -> (i32, i32) {
    %c0_i32 = arith.constant 0 : i32
    %c0_i32_0 = arith.constant 0 : i32
    %c0_i32_1 = arith.constant 0 : i32
    return %c0_i32, %c0_i32_0 : i32, i32
  }
  func.func @transform_19(%arg0: i32) -> (i32, i32) {
    %c0_i32 = arith.constant 0 : i32
    %c0_i32_0 = arith.constant 0 : i32
    %c0_i32_1 = arith.constant 0 : i32
    return %c0_i32, %c0_i32_0 : i32, i32
  }
  func.func @transform_20(%arg0: i32) -> (i32, i32) {
    %c0_i32 = arith.constant 0 : i32
    %c0_i32_0 = arith.constant 0 : i32
    %c0_i32_1 = arith.constant 0 : i32
    return %c0_i32, %c0_i32_0 : i32, i32
  }
  func.func @transform_21(%arg0: i32) -> (i32, i32) {
    %c0_i32 = arith.constant 0 : i32
    %c0_i32_0 = arith.constant 0 : i32
    %c0_i32_1 = arith.constant 0 : i32
    return %c0_i32, %c0_i32_0 : i32, i32
  }
  func.func @transform_22(%arg0: i32) -> (i32, i32) {
    %c0_i32 = arith.constant 0 : i32
    %c0_i32_0 = arith.constant 0 : i32
    %c0_i32_1 = arith.constant 0 : i32
    return %c0_i32, %c0_i32_0 : i32, i32
  }
  func.func @transform_23(%arg0: i32) -> (i32, i32) {
    %c0_i32 = arith.constant 0 : i32
    %c0_i32_0 = arith.constant 0 : i32
    %c0_i32_1 = arith.constant 0 : i32
    return %c0_i32, %c0_i32_0 : i32, i32
  }
  func.func @transform_24(%arg0: i32) -> (i32, i32) {
    %c0_i32 = arith.constant 0 : i32
    %c0_i32_0 = arith.constant 0 : i32
    %c0_i32_1 = arith.constant 0 : i32
    return %c0_i32, %c0_i32_0 : i32, i32
  }
  func.func @transform_25(%arg0: i32) -> (i32, i32) {
    %c0_i32 = arith.constant 0 : i32
    %c0_i32_0 = arith.constant 0 : i32
    %c0_i32_1 = arith.constant 0 : i32
    return %c0_i32, %c0_i32_0 : i32, i32
  }
  func.func @transform_26(%arg0: i32) -> (i32, i32) {
    %c0_i32 = arith.constant 0 : i32
    %c0_i32_0 = arith.constant 0 : i32
    %c0_i32_1 = arith.constant 0 : i32
    return %c0_i32, %c0_i32_0 : i32, i32
  }
  func.func @transform_27(%arg0: i32) -> (i32, i32) {
    %c0_i32 = arith.constant 0 : i32
    %c0_i32_0 = arith.constant 0 : i32
    return %arg0, %c0_i32 : i32, i32
  }
  func.func @transform_28(%arg0: i32) -> (i32, i32) {
    %c0_i32 = arith.constant 0 : i32
    %c0_i32_0 = arith.constant 0 : i32
    return %arg0, %c0_i32 : i32, i32
  }
}

</mosaic_0001>

<bundles_post_ra>
// kernel: tpu_custom_call.1
= control target key start
LH: loop header
LB: loop body
LE: loop exit
PB: predicated region body
PF: predicated region fallthrough
CT: control target
= control target key end

     0   :  { %s6660_s0 = inlined_call_operand.hbm [shape: f32[8,128], index: 0, kind: input, shape index: {}]   ;;  %s6661_s1 = inlined_call_operand.hbm [shape: f32[8,128], index: 1, kind: input, shape index: {}]   ;;  %s6662_s2 = inlined_call_operand.hbm [shape: f32[8,8,128], index: 2, kind: input, shape index: {}]   ;;  %s6663_s3 = inlined_call_operand.hbm [shape: f32[6,8,128], index: 3, kind: input, shape index: {}]   ;;  %s6664_s4 = inlined_call_operand.hbm [shape: f32[4,8,128], index: 4, kind: input, shape index: {}]   ;;  %s6665_s5 = inlined_call_operand.hbm [shape: f32[128,128], index: 5, kind: input, shape index: {}]   ;;  %s6666_s6 = inlined_call_operand.hbm [shape: f32[128,128], index: 6, kind: input, shape index: {}]   ;;  %s6667_s7 = inlined_call_operand.vmem [shape: f32[1,128], index: 7, kind: input, shape index: {}]   ;;  %s6668_s8 = inlined_call_operand.vmem [shape: f32[1,128], index: 8, kind: input, shape index: {}]   ;;  %s6669_s9 = inlined_call_operand.hbm [shape: f32[128,256], index: 9, kind: input, shape index: {}]   ;;  %s6670_s10 = inlined_call_operand.vmem [shape: f32[1,256], index: 10, kind: input, shape index: {}]   ;;  %s6671_s11 = inlined_call_operand.hbm [shape: f32[128,128], index: 11, kind: input, shape index: {}]   ;;  %s6672_s12 = inlined_call_operand.hbm [shape: f32[128,128], index: 12, kind: input, shape index: {}]   ;;  %s6673_s13 = inlined_call_operand.vmem [shape: f32[1,128], index: 13, kind: input, shape index: {}]   ;;  %s6674_s14 = inlined_call_operand.vmem [shape: f32[1,128], index: 14, kind: input, shape index: {}]   ;;  %s6675_s15 = inlined_call_operand.hbm [shape: f32[128,128], index: 15, kind: input, shape index: {}]   ;;  %s6676_s16 = inlined_call_operand.hbm [shape: f32[128,128], index: 16, kind: input, shape index: {}]   ;;  %s6677_s17 = inlined_call_operand.vmem [shape: f32[1,128], index: 17, kind: input, shape index: {}]   ;;  %s6678_s18 = inlined_call_operand.vmem [shape: f32[1,128], index: 18, kind: input, shape index: {}]   ;;  %s6679_s19 = inlined_call_operand.hbm [shape: f32[512,128], index: 19, kind: input, shape index: {}]   ;;  %s6680_s20 = inlined_call_operand.vmem [shape: f32[1,128], index: 20, kind: input, shape index: {}]   ;;  %s6681_s21 = inlined_call_operand.hbm [shape: f32[128,384], index: 21, kind: input, shape index: {}]   ;;  %s6682_s22 = inlined_call_operand.hbm [shape: f32[128,384], index: 22, kind: input, shape index: {}]   ;;  %s6683_s23 = inlined_call_operand.vmem [shape: f32[1,384], index: 23, kind: input, shape index: {}]   ;;  %s6684_s24 = inlined_call_operand.vmem [shape: f32[1,384], index: 24, kind: input, shape index: {}]   ;;  %s6685_s25 = inlined_call_operand.hbm [shape: f32[128,128], index: 25, kind: input, shape index: {}]   ;;  %s6686_s26 = inlined_call_operand.vmem [shape: f32[1,128], index: 26, kind: input, shape index: {}]   ;;  %s6687_s27 = inlined_call_operand.hbm [shape: f32[8,128], index: 27, kind: output, shape index: {0}]   ;;  %s6688_s28 = inlined_call_operand.hbm [shape: f32[8,128], index: 28, kind: output, shape index: {1}]  }
   0x1   :  { %6705 = sst [smem:[#allocation42_spill]] %s6660_s0 }
   0x2   :  { %6706 = sst [smem:[#allocation43_spill]] %s6661_s1 }
   0x3   :  { %6707 = sst [smem:[#allocation44_spill]] %s6662_s2 }
   0x4   :  { %6708 = sst [smem:[#allocation45_spill]] %s6663_s3 }
   0x5   :  { %6709 = sst [smem:[#allocation46_spill]] %s6664_s4 }
   0x6   :  { %6710 = sst [smem:[#allocation47_spill]] %s6665_s5 }
   0x7   :  { %6711 = sst [smem:[#allocation48_spill]] %s6666_s6 }
   0x8   :  { %6712 = sst [smem:[#allocation49_spill]] %s6667_s7 }
   0x9   :  { %6713 = sst [smem:[#allocation50_spill]] %s6668_s8 }
   0xa   :  { %6714 = sst [smem:[#allocation51_spill]] %s6669_s9 }
   0xb   :  { %6715 = sst [smem:[#allocation52_spill]] %s6670_s10 }
   0xc   :  { %6716 = sst [smem:[#allocation53_spill]] %s6671_s11 }
   0xd   :  { %6717 = sst [smem:[#allocation54_spill]] %s6672_s12 }
   0xe   :  { %6718 = sst [smem:[#allocation55_spill]] %s6686_s26 }
   0xf   :  { %6719 = sst [smem:[#allocation56_spill]] %s6687_s27 }
  0x10   :  { %6720 = sst [smem:[#allocation57_spill]] %s6688_s28 }
  0x11   :  { %34 = vsyncpa [#allocation3], 0 }
  0x12   :  { %35 = vsyncpa [#allocation6], 0 }
  0x13   :  { %36 = vsyncpa [#allocation9], 0 }
  0x14   :  { %37 = vsyncpa [#allocation12], 0 }
  0x15   :  { %38 = vsyncpa [#allocation15], 0 }
  0x16   :  { %39 = vsyncpa [#allocation18], 0 }
  0x17   :  { %40 = vsyncpa [#allocation21], 0 }
  0x18   :  { %41 = vsyncpa [#allocation24], 0 }
  0x19   :  { %42 = vsyncpa [#allocation27], 0 }
  0x1a   :  { %43 = vsyncpa [#allocation4], 0 }
  0x1b   :  { %44 = vsyncpa [#allocation30], 0  ;;  %s5681_s8 = smov [#allocation5]   ;;  %s6721_s3 = sld [smem:[#allocation43_spill]] }
  0x1c   :  { %s61_s5 = sshll.u32 %s5681_s8, 4  ;;  %s62_s5 = int_to_ptr.vmem [resolvable:$true] %s61_s5 }
  0x21   :  { %s5263_s6 = scalar_lea.hbm %s6721_s3, 128 }
  0x22   :  { %p5264_p0 = scmp.ne.s32.totalorder %s6721_s3, %s5263_s6  ;;  %p5267_p1 = scmp.lt.u32.totalorder %s5263_s6, %s6721_s3 }
  0x24   :  { %p5269_p2 = pnand %p5267_p1, %p5264_p0 }
  0x26   :  { %5272 = shalt.err (!%p5269_p2)
}
  0x27   :  { %s5273_s2 = scalar_lea.vmem %s62_s5, 128  ;;  %p5278_p4 = scmp.lt.s32.totalorder %s62_s5, %s62_s5 }
  0x28   :  { %p5274_p3 = scmp.ne.s32.totalorder %s62_s5, %s5273_s2  ;;  %p5279_p5 = scmp.lt.s32.totalorder %s5273_s2, %s5273_s2 }
  0x2a   :  { %p5280_p6 = por %p5279_p5, %p5278_p4 }
  0x2c   :  { %p5281_p7 = pnand %p5280_p6, %p5274_p3 }
  0x2e   :  { %5284 = shalt.err (!%p5281_p7)
}
  0x2f   :  { %64 = dma.hbm_to_vmem [thread:$0]  %s6721_s3, 128, %s62_s5, [#allocation6]  }
  0x30   :  { %s5682_s1 = smov [#allocation8]   ;;  %s5683_s8 = smov [#allocation11]  }
  0x31   :  { %s82_s4 = sshll.u32 %s5682_s1, 4  ;;  %s106_s9 = sshll.u32 %s5683_s8, 4  ;;  %s83_s4 = int_to_ptr.vmem [resolvable:$true] %s82_s4  ;;  %s107_s9 = int_to_ptr.vmem [resolvable:$true] %s106_s9 }
  0x32   :  { %s6722_s10 = sld [smem:[#allocation45_spill]] }
  0x38   :  { %s5285_s0 = scalar_lea.hbm %s6722_s10, 768 }
  0x39   :  { %p5286_p8 = scmp.ne.s32.totalorder %s6722_s10, %s5285_s0  ;;  %p5289_p9 = scmp.lt.u32.totalorder %s5285_s0, %s6722_s10 }
  0x3b   :  { %p5291_p10 = pnand %p5289_p9, %p5286_p8 }
  0x3d   :  { %5294 = shalt.err (!%p5291_p10)
}
  0x3e   :  { %s5295_s5 = scalar_lea.vmem %s83_s4, 768  ;;  %p5300_p12 = scmp.lt.s32.totalorder %s83_s4, %s83_s4 }
  0x3f   :  { %p5296_p11 = scmp.ne.s32.totalorder %s83_s4, %s5295_s5  ;;  %p5301_p13 = scmp.lt.s32.totalorder %s5295_s5, %s5295_s5 }
  0x41   :  { %p5302_p0 = por %p5301_p13, %p5300_p12 }
  0x43   :  { %p5303_p1 = pnand %p5302_p0, %p5296_p11 }
  0x45   :  { %5306 = shalt.err (!%p5303_p1)
}
  0x46   :  { %s6701_s3 = smov 128   ;;  %s6703_s7 = smov 8  }
  0x47   :  { %88 = dma.hbm_to_vmem [thread:$0]  %s6722_s10, 768, %s83_s4, [#allocation9], %s6701_s3, %s6701_s3, %s6703_s7  }
  0x48   :  { %s6723_s30 = sld [smem:[#allocation47_spill]] }
  0x4e   :  { %s5307_s6 = scalar_lea.hbm %s6723_s30, 2048 }
  0x4f   :  { %p5308_p2 = scmp.ne.s32.totalorder %s6723_s30, %s5307_s6  ;;  %p5311_p3 = scmp.lt.u32.totalorder %s5307_s6, %s6723_s30 }
  0x51   :  { %p5313_p4 = pnand %p5311_p3, %p5308_p2 }
  0x53   :  { %5316 = shalt.err (!%p5313_p4)
}
  0x54   :  { %s5317_s5 = scalar_lea.vmem %s107_s9, 2048  ;;  %p5322_p6 = scmp.lt.s32.totalorder %s107_s9, %s107_s9 }
  0x55   :  { %p5318_p5 = scmp.ne.s32.totalorder %s107_s9, %s5317_s5  ;;  %p5323_p7 = scmp.lt.s32.totalorder %s5317_s5, %s5317_s5 }
  0x57   :  { %p5324_p8 = por %p5323_p7, %p5322_p6 }
  0x59   :  { %p5325_p9 = pnand %p5324_p8, %p5318_p5 }
  0x5b   :  { %5328 = shalt.err (!%p5325_p9)
}
  0x5c   :  { %112 = dma.hbm_to_vmem [thread:$0]  %s6723_s30, 2048, %s107_s9, [#allocation12], %s6701_s3, %s6701_s3, %s6703_s7  }
  0x5d   :  { %s5686_s12 = smov [#allocation14]   ;;  %s6724_s6 = sld [smem:[#allocation51_spill]] }
  0x5e   :  { %s134_s1 = sshll.u32 %s5686_s12, 4  ;;  %s135_s1 = int_to_ptr.vmem [resolvable:$true] %s134_s1 }
  0x63   :  { %s5329_s0 = scalar_lea.hbm %s6724_s6, 4096 }
  0x64   :  { %p5330_p10 = scmp.ne.s32.totalorder %s6724_s6, %s5329_s0  ;;  %p5333_p11 = scmp.lt.u32.totalorder %s5329_s0, %s6724_s6 }
  0x66   :  { %p5335_p12 = pnand %p5333_p11, %p5330_p10 }
  0x68   :  { %5338 = shalt.err (!%p5335_p12)
}
  0x69   :  { %s5339_s28 = scalar_lea.vmem %s135_s1, 4096  ;;  %p5344_p0 = scmp.lt.s32.totalorder %s135_s1, %s135_s1 }
  0x6a   :  { %p5340_p13 = scmp.ne.s32.totalorder %s135_s1, %s5339_s28  ;;  %p5345_p1 = scmp.lt.s32.totalorder %s5339_s28, %s5339_s28 }
  0x6c   :  { %p5346_p2 = por %p5345_p1, %p5344_p0 }
  0x6e   :  { %p5347_p3 = pnand %p5346_p2, %p5340_p13 }
  0x70   :  { %5350 = shalt.err (!%p5347_p3)
}
  0x71   :  { %s5687_s9 = smov 256   ;;  %s5688_s30 = smov 16  }
  0x72   :  { %140 = dma.hbm_to_vmem [thread:$0]  %s6724_s6, 4096, %s135_s1, [#allocation15], %s5687_s9, %s5687_s9, %s5688_s30  }
  0x73   :  { %s5689_s12 = smov [#allocation17]   ;;  %s5690_s8 = smov [#allocation20]  }
  0x74   :  { %s160_s27 = sshll.u32 %s5689_s12, 4  ;;  %s188_s11 = sshll.u32 %s5690_s8, 4  ;;  %s161_s27 = int_to_ptr.vmem [resolvable:$true] %s160_s27  ;;  %s5907_s11 = int_to_ptr.vmem [resolvable:$true] %s188_s11 }
  0x75   :  { %s6725_s2 = sld [smem:[#allocation54_spill]] }
  0x7b   :  { %s5351_s28 = scalar_lea.hbm %s6725_s2, 2048 }
  0x7c   :  { %p5352_p4 = scmp.ne.s32.totalorder %s6725_s2, %s5351_s28  ;;  %p5355_p5 = scmp.lt.u32.totalorder %s5351_s28, %s6725_s2 }
  0x7e   :  { %p5357_p6 = pnand %p5355_p5, %p5352_p4 }
  0x80   :  { %5360 = shalt.err (!%p5357_p6)
}
  0x81   :  { %s5361_s1 = scalar_lea.vmem %s161_s27, 2048  ;;  %p5366_p8 = scmp.lt.s32.totalorder %s161_s27, %s161_s27 }
  0x82   :  { %p5362_p7 = scmp.ne.s32.totalorder %s161_s27, %s5361_s1  ;;  %p5367_p9 = scmp.lt.s32.totalorder %s5361_s1, %s5361_s1 }
  0x84   :  { %p5368_p10 = por %p5367_p9, %p5366_p8 }
  0x86   :  { %p5369_p11 = pnand %p5368_p10, %p5362_p7 }
  0x88   :  { %5372 = shalt.err (!%p5369_p11)
}
  0x89   :  { %s6726_s6 = smov 8   ;;  %s6727_s9 = smov 128  }
  0x8a   :  { %166 = dma.hbm_to_vmem [thread:$0]  %s6725_s2, 2048, %s161_s27, [#allocation18], %s6727_s9, %s6727_s9, %s6726_s6  }
  0x8b   :  { %s5373_s26 = scalar_lea.hbm %s6676_s16, 2048 }
  0x8c   :  { %p5374_p12 = scmp.ne.s32.totalorder %s6676_s16, %s5373_s26  ;;  %p5377_p13 = scmp.lt.u32.totalorder %s5373_s26, %s6676_s16 }
  0x8e   :  { %p5379_p0 = pnand %p5377_p13, %p5374_p12 }
  0x90   :  { %5382 = shalt.err (!%p5379_p0)
}
  0x91   :  { %s5383_s29 = scalar_lea.vmem %s5907_s11, 2048  ;;  %p5388_p2 = scmp.lt.s32.totalorder %s5907_s11, %s5907_s11 }
  0x92   :  { %p5384_p1 = scmp.ne.s32.totalorder %s5907_s11, %s5383_s29  ;;  %p5389_p3 = scmp.lt.s32.totalorder %s5383_s29, %s5383_s29 }
  0x94   :  { %p5390_p4 = por %p5389_p3, %p5388_p2 }
  0x96   :  { %p5391_p5 = pnand %p5390_p4, %p5384_p1 }
  0x98   :  { %5394 = shalt.err (!%p5391_p5)
}
  0x99   :  { %194 = dma.hbm_to_vmem [thread:$0]  %s6676_s16, 2048, %s5907_s11, [#allocation21], %s6727_s9, %s6727_s9, %s6726_s6  }
  0x9a   :  { %s5691_s28 = smov [#allocation23]   ;;  %s5395_s4 = scalar_lea.hbm %s6681_s21, 6144 }
  0x9b   :  { %s218_s5 = sshll.u32 %s5691_s28, 4  ;;  %p5396_p6 = scmp.ne.s32.totalorder %s6681_s21, %s5395_s4  ;;  %s219_s5 = int_to_ptr.vmem [resolvable:$true] %s218_s5 }
  0x9c   :  { %p5399_p7 = scmp.lt.u32.totalorder %s5395_s4, %s6681_s21 }
  0x9e   :  { %p5401_p8 = pnand %p5399_p7, %p5396_p6 }
  0xa0   :  { %5404 = shalt.err (!%p5401_p8)
}
  0xa1   :  { %s5405_s12 = scalar_lea.vmem %s219_s5, 6144  ;;  %p5410_p10 = scmp.lt.s32.totalorder %s219_s5, %s219_s5 }
  0xa2   :  { %p5406_p9 = scmp.ne.s32.totalorder %s219_s5, %s5405_s12  ;;  %p5411_p11 = scmp.lt.s32.totalorder %s5405_s12, %s5405_s12 }
  0xa4   :  { %p5412_p12 = por %p5411_p11, %p5410_p10 }
  0xa6   :  { %p5413_p13 = pnand %p5412_p12, %p5406_p9 }
  0xa8   :  { %5416 = shalt.err (!%p5413_p13)
}
  0xa9   :  { %s5692_s16 = smov 384   ;;  %s5693_s11 = smov 24  }
  0xaa   :  { %224 = dma.hbm_to_vmem [thread:$0]  %s6681_s21, 6144, %s219_s5, [#allocation24], %s5692_s16, %s5692_s16, %s5693_s11  }
  0xab   :  { %s5694_s29 = smov [#allocation2]   ;;  %s5695_s2 = smov [#allocation7]  }
  0xac   :  { %s51_s27 = sshll.u32 %s5694_s29, 4  ;;  %s70_s28 = sshll.u32 %s5695_s2, 4  ;;  %s52_s27 = int_to_ptr.vmem [resolvable:$true] %s51_s27  ;;  %s71_s28 = int_to_ptr.vmem [resolvable:$true] %s70_s28 }
  0xad   :  { %s6728_s4 = sld [smem:[#allocation42_spill]] }
  0xb3   :  { %s5417_s3 = scalar_lea.hbm %s6728_s4, 128 }
  0xb4   :  { %p5418_p0 = scmp.ne.s32.totalorder %s6728_s4, %s5417_s3  ;;  %p5421_p1 = scmp.lt.u32.totalorder %s5417_s3, %s6728_s4 }
  0xb6   :  { %p5423_p2 = pnand %p5421_p1, %p5418_p0 }
  0xb8   :  { %5426 = shalt.err (!%p5423_p2)
}
  0xb9   :  { %s5427_s21 = scalar_lea.vmem %s52_s27, 128  ;;  %p5432_p4 = scmp.lt.s32.totalorder %s52_s27, %s52_s27 }
  0xba   :  { %p5428_p3 = scmp.ne.s32.totalorder %s52_s27, %s5427_s21  ;;  %p5433_p5 = scmp.lt.s32.totalorder %s5427_s21, %s5427_s21 }
  0xbc   :  { %p5434_p6 = por %p5433_p5, %p5432_p4 }
  0xbe   :  { %p5435_p7 = pnand %p5434_p6, %p5428_p3 }
  0xc0   :  { %5438 = shalt.err (!%p5435_p7)
}
  0xc1   :  { %54 = dma.hbm_to_vmem [thread:$0]  %s6728_s4, 128, %s52_s27, [#allocation3]  }
  0xc2   :  { %s6729_s2 = sld [smem:[#allocation44_spill]] }
  0xc8   :  { %s5439_s1 = scalar_lea.hbm %s6729_s2, 1024 }
  0xc9   :  { %p5440_p8 = scmp.ne.s32.totalorder %s6729_s2, %s5439_s1  ;;  %p5443_p9 = scmp.lt.u32.totalorder %s5439_s1, %s6729_s2 }
  0xcb   :  { %p5445_p10 = pnand %p5443_p9, %p5440_p8 }
  0xcd   :  { %5448 = shalt.err (!%p5445_p10)
}
  0xce   :  { %s5449_s7 = scalar_lea.vmem %s71_s28, 1024  ;;  %p5454_p12 = scmp.lt.s32.totalorder %s71_s28, %s71_s28 }
  0xcf   :  { %p5450_p11 = scmp.ne.s32.totalorder %s71_s28, %s5449_s7  ;;  %p5455_p13 = scmp.lt.s32.totalorder %s5449_s7, %s5449_s7 }
  0xd1   :  { %p5456_p0 = por %p5455_p13, %p5454_p12 }
  0xd3   :  { %p5457_p1 = pnand %p5456_p0, %p5450_p11 }
  0xd5   :  { %5460 = shalt.err (!%p5457_p1)
}
  0xd6   :  { %76 = dma.hbm_to_vmem [thread:$0]  %s6729_s2, 1024, %s71_s28, [#allocation6], %s6727_s9, %s6727_s9, %s6726_s6  }
  0xd7   :  { %s5696_s12 = smov [#allocation10]   ;;  %s5697_s5 = smov [#allocation13]  }
  0xd8   :  { %s94_s21 = sshll.u32 %s5696_s12, 4  ;;  %s118_s8 = sshll.u32 %s5697_s5, 4  ;;  %s95_s21 = int_to_ptr.vmem [resolvable:$true] %s94_s21  ;;  %s119_s8 = int_to_ptr.vmem [resolvable:$true] %s118_s8 }
  0xd9   :  { %s6730_s1 = sld [smem:[#allocation46_spill]] }
  0xdf   :  { %s5461_s30 = scalar_lea.hbm %s6730_s1, 512 }
  0xe0   :  { %p5462_p2 = scmp.ne.s32.totalorder %s6730_s1, %s5461_s30  ;;  %p5465_p3 = scmp.lt.u32.totalorder %s5461_s30, %s6730_s1 }
  0xe2   :  { %p5467_p4 = pnand %p5465_p3, %p5462_p2 }
  0xe4   :  { %5470 = shalt.err (!%p5467_p4)
}
  0xe5   :  { %s5471_s28 = scalar_lea.vmem %s95_s21, 512  ;;  %p5476_p6 = scmp.lt.s32.totalorder %s95_s21, %s95_s21 }
  0xe6   :  { %p5472_p5 = scmp.ne.s32.totalorder %s95_s21, %s5471_s28  ;;  %p5477_p7 = scmp.lt.s32.totalorder %s5471_s28, %s5471_s28 }
  0xe8   :  { %p5478_p8 = por %p5477_p7, %p5476_p6 }
  0xea   :  { %p5479_p9 = pnand %p5478_p8, %p5472_p5 }
  0xec   :  { %5482 = shalt.err (!%p5479_p9)
}
  0xed   :  { %100 = dma.hbm_to_vmem [thread:$0]  %s6730_s1, 512, %s95_s21, [#allocation9], %s6727_s9, %s6727_s9, %s6726_s6  }
  0xee   :  { %s6731_s5 = sld [smem:[#allocation48_spill]] }
  0xf4   :  { %s5483_s0 = scalar_lea.hbm %s6731_s5, 2048 }
  0xf5   :  { %p5484_p10 = scmp.ne.s32.totalorder %s6731_s5, %s5483_s0  ;;  %p5487_p11 = scmp.lt.u32.totalorder %s5483_s0, %s6731_s5 }
  0xf7   :  { %p5489_p12 = pnand %p5487_p11, %p5484_p10 }
  0xf9   :  { %5492 = shalt.err (!%p5489_p12)
}
  0xfa   :  { %s5493_s26 = scalar_lea.vmem %s119_s8, 2048  ;;  %p5498_p0 = scmp.lt.s32.totalorder %s119_s8, %s119_s8 }
  0xfb   :  { %p5494_p13 = scmp.ne.s32.totalorder %s119_s8, %s5493_s26  ;;  %p5499_p1 = scmp.lt.s32.totalorder %s5493_s26, %s5493_s26 }
  0xfd   :  { %p5500_p2 = por %p5499_p1, %p5498_p0 }
  0xff   :  { %p5501_p3 = pnand %p5500_p2, %p5494_p13 }
 0x101   :  { %5504 = shalt.err (!%p5501_p3)
}
 0x102   :  { %124 = dma.hbm_to_vmem [thread:$0]  %s6731_s5, 2048, %s119_s8, [#allocation12], %s6727_s9, %s6727_s9, %s6726_s6  }
 0x103   :  { %s5698_s7 = smov [#allocation16]   ;;  %s5699_s2 = smov [#allocation19]  }
 0x104   :  { %s148_s28 = sshll.u32 %s5698_s7, 4  ;;  %s176_s27 = sshll.u32 %s5699_s2, 4  ;;  %s149_s28 = int_to_ptr.vmem [resolvable:$true] %s148_s28  ;;  %s177_s27 = int_to_ptr.vmem [resolvable:$true] %s176_s27 }
 0x105   :  { %s6732_s0 = sld [smem:[#allocation53_spill]] }
 0x10b   :  { %s5505_s29 = scalar_lea.hbm %s6732_s0, 2048 }
 0x10c   :  { %p5506_p4 = scmp.ne.s32.totalorder %s6732_s0, %s5505_s29  ;;  %p5509_p5 = scmp.lt.u32.totalorder %s5505_s29, %s6732_s0 }
 0x10e   :  { %p5511_p6 = pnand %p5509_p5, %p5506_p4 }
 0x110   :  { %5514 = shalt.err (!%p5511_p6)
}
 0x111   :  { %s5515_s8 = scalar_lea.vmem %s149_s28, 2048  ;;  %p5520_p8 = scmp.lt.s32.totalorder %s149_s28, %s149_s28 }
 0x112   :  { %p5516_p7 = scmp.ne.s32.totalorder %s149_s28, %s5515_s8  ;;  %p5521_p9 = scmp.lt.s32.totalorder %s5515_s8, %s5515_s8 }
 0x114   :  { %p5522_p10 = por %p5521_p9, %p5520_p8 }
 0x116   :  { %p5523_p11 = pnand %p5522_p10, %p5516_p7 }
 0x118   :  { %5526 = shalt.err (!%p5523_p11)
}
 0x119   :  { %154 = dma.hbm_to_vmem [thread:$0]  %s6732_s0, 2048, %s149_s28, [#allocation15], %s6727_s9, %s6727_s9, %s6726_s6  }
 0x11a   :  { %s5527_s2 = scalar_lea.hbm %s6675_s15, 2048 }
 0x11b   :  { %p5528_p12 = scmp.ne.s32.totalorder %s6675_s15, %s5527_s2  ;;  %p5531_p13 = scmp.lt.u32.totalorder %s5527_s2, %s6675_s15 }
 0x11d   :  { %p5533_p0 = pnand %p5531_p13, %p5528_p12 }
 0x11f   :  { %5536 = shalt.err (!%p5533_p0)
}
 0x120   :  { %s5537_s3 = scalar_lea.vmem %s177_s27, 2048  ;;  %p5542_p2 = scmp.lt.s32.totalorder %s177_s27, %s177_s27 }
 0x121   :  { %p5538_p1 = scmp.ne.s32.totalorder %s177_s27, %s5537_s3  ;;  %p5543_p3 = scmp.lt.s32.totalorder %s5537_s3, %s5537_s3 }
 0x123   :  { %p5544_p4 = por %p5543_p3, %p5542_p2 }
 0x125   :  { %p5545_p5 = pnand %p5544_p4, %p5538_p1 }
 0x127   :  { %5548 = shalt.err (!%p5545_p5)
}
 0x128   :  { %182 = dma.hbm_to_vmem [thread:$0]  %s6675_s15, 2048, %s177_s27, [#allocation18], %s6727_s9, %s6727_s9, %s6726_s6  }
 0x129   :  { %s5700_s10 = smov [#allocation22]   ;;  %s5701_s8 = smov [#allocation25]  }
 0x12a   :  { %s204_s26 = sshll.u32 %s5700_s10, 4  ;;  %s230_s5 = sshll.u32 %s5701_s8, 4  ;;  %s205_s26 = int_to_ptr.vmem [resolvable:$true] %s204_s26  ;;  %s231_s5 = int_to_ptr.vmem [resolvable:$true] %s230_s5 }
 0x12b   :  { %s5549_s7 = scalar_lea.hbm %s6679_s19, 8192 }
 0x12c   :  { %p5550_p6 = scmp.ne.s32.totalorder %s6679_s19, %s5549_s7  ;;  %p5553_p7 = scmp.lt.u32.totalorder %s5549_s7, %s6679_s19 }
 0x12e   :  { %p5555_p8 = pnand %p5553_p7, %p5550_p6 }
 0x130   :  { %5558 = shalt.err (!%p5555_p8)
}
 0x131   :  { %s5559_s15 = scalar_lea.vmem %s205_s26, 8192  ;;  %p5564_p10 = scmp.lt.s32.totalorder %s205_s26, %s205_s26 }
 0x132   :  { %p5560_p9 = scmp.ne.s32.totalorder %s205_s26, %s5559_s15  ;;  %p5565_p11 = scmp.lt.s32.totalorder %s5559_s15, %s5559_s15 }
 0x134   :  { %p5566_p12 = por %p5565_p11, %p5564_p10 }
 0x136   :  { %p5567_p13 = pnand %p5566_p12, %p5560_p9 }
 0x138   :  { %5570 = shalt.err (!%p5567_p13)
}
 0x139   :  { %210 = dma.hbm_to_vmem [thread:$0]  %s6679_s19, 8192, %s205_s26, [#allocation21], %s6727_s9, %s6727_s9, %s6726_s6  }
 0x13a   :  { %s5571_s0 = scalar_lea.hbm %s6682_s22, 6144 }
 0x13b   :  { %p5572_p0 = scmp.ne.s32.totalorder %s6682_s22, %s5571_s0  ;;  %p5575_p1 = scmp.lt.u32.totalorder %s5571_s0, %s6682_s22 }
 0x13d   :  { %p5577_p2 = pnand %p5575_p1, %p5572_p0 }
 0x13f   :  { %5580 = shalt.err (!%p5577_p2)
}
 0x140   :  { %s5581_s7 = scalar_lea.vmem %s231_s5, 6144  ;;  %p5586_p4 = scmp.lt.s32.totalorder %s231_s5, %s231_s5 }
 0x141   :  { %p5582_p3 = scmp.ne.s32.totalorder %s231_s5, %s5581_s7  ;;  %p5587_p5 = scmp.lt.s32.totalorder %s5581_s7, %s5581_s7 }
 0x143   :  { %p5588_p6 = por %p5587_p5, %p5586_p4 }
 0x145   :  { %p5589_p7 = pnand %p5588_p6, %p5582_p3 }
 0x147   :  { %5592 = shalt.err (!%p5589_p7)
}
 0x148   :  { %236 = dma.hbm_to_vmem [thread:$0]  %s6682_s22, 6144, %s231_s5, [#allocation24], %s5692_s16, %s5692_s16, %s5693_s11  }
 0x149   :  { %s5702_s2 = smov [#allocation26]   ;;  %s5593_s15 = scalar_lea.hbm %s6685_s25, 2048 }
 0x14a   :  { %s246_s4 = sshll.u32 %s5702_s2, 4  ;;  %p5594_p8 = scmp.ne.s32.totalorder %s6685_s25, %s5593_s15  ;;  %s247_s4 = int_to_ptr.vmem [resolvable:$true] %s246_s4 }
 0x14b   :  { %p5597_p9 = scmp.lt.u32.totalorder %s5593_s15, %s6685_s25 }
 0x14d   :  { %p5599_p10 = pnand %p5597_p9, %p5594_p8 }
 0x14f   :  { %5602 = shalt.err (!%p5599_p10)
}
 0x150   :  { %s5603_s0 = scalar_lea.vmem %s247_s4, 2048  ;;  %p5608_p12 = scmp.lt.s32.totalorder %s247_s4, %s247_s4 }
 0x151   :  { %p5604_p11 = scmp.ne.s32.totalorder %s247_s4, %s5603_s0  ;;  %p5609_p13 = scmp.lt.s32.totalorder %s5603_s0, %s5603_s0 }
 0x153   :  { %p5610_p0 = por %p5609_p13, %p5608_p12 }
 0x155   :  { %p5611_p1 = pnand %p5610_p0, %p5604_p11 }
 0x157   :  { %5614 = shalt.err (!%p5611_p1)
}
 0x158   :  { %252 = dma.hbm_to_vmem [thread:$0]  %s6685_s25, 2048, %s247_s4, [#allocation27], %s6727_s9, %s6727_s9, %s6726_s6  }
 0x159   :  { %5659 = dma.done.wait [#allocation3], 128  }
 0x15a   :  { %5660 = vsyncadd [#allocation3], 4294967168 }
 0x15b   :  { %5661 = dma.done.wait [#allocation6], 1152  }
 0x15c   :  { %5662 = vsyncadd [#allocation6], 4294966144 }
 0x15d   :  { %5663 = dma.done.wait [#allocation9], 1280  }
 0x15e   :  { %5664 = vsyncadd [#allocation9], 4294966016 }
 0x15f   :  { %5665 = dma.done.wait [#allocation12], 4096  }
 0x160   :  { %5666 = vsyncadd [#allocation12], 4294963200 }
 0x161   :  { %5667 = dma.done.wait [#allocation15], 6144  }
 0x162   :  { %5668 = vsyncadd [#allocation15], 4294961152 }
 0x163   :  { %5669 = dma.done.wait [#allocation18], 4096  }
 0x164   :  { %5670 = vsyncadd [#allocation18], 4294963200 }
 0x165   :  { %5671 = dma.done.wait [#allocation21], 10240  }
 0x166   :  { %5672 = vsyncadd [#allocation21], 4294957056 }
 0x167   :  { %5673 = dma.done.wait [#allocation24], 12288  }
 0x168   :  { %5674 = vsyncadd [#allocation24], 4294955008 }
 0x169   :  { %5675 = dma.done.wait [#allocation27], 2048  }
 0x16a   :  { %5676 = vsyncadd [#allocation27], 4294965248  ;;  %v5703_v0 = vmov 0.0|0.0   ;;  %vm5704_vm0 = vmmov 0   ;;  %v5705_v1 = vmov 0.0   ;;  %v305_v2 = vld [vmem:[#allocation11] sm:$0xff] }
 0x16b   :  { %4389 = vmatprep.subr.bf16.mxu0 %v5703_v0  ;;  %4413 = vmatprep.subr.bf16.mxu1 %v5703_v0  ;;  %v306_v3 = vld [vmem:[#allocation11 + $0x8] sm:$0xff]  ;;  %v321_v4 = vld [vmem:[#allocation13] sm:$0xff]  ;;  %v307_v7 = vld [vmem:[#allocation11 + $0x10] sm:$0xff]  ;;  %s6733_s9 = sld [smem:[#allocation49_spill]]  ;;  %s6734_s10 = sld [smem:[#allocation50_spill]] }
 0x16c   :  { %3581 = vmatprep.mubr.msk.f32.mxu0 %vm5704_vm0, %v5705_v1  ;;  %3616 = vmatprep.mubr.msk.f32.mxu1 %vm5704_vm0, %v5705_v1  ;;  %v4390_v5 = vpack.c.bf16 %v306_v3, %v305_v2  ;;  %v322_v6 = vld [vmem:[#allocation13 + $0x8] sm:$0xff]  ;;  %v308_v8 = vld [vmem:[#allocation11 + $0x18] sm:$0xff]  ;;  %v323_v10 = vld [vmem:[#allocation13 + $0x10] sm:$0xff]  ;;  %s6735_s1 = sld [smem:[#allocation52_spill]]  ;;  %s6736_s30 = sld [smem:[#allocation55_spill]] }
 0x16d   :  { %v6097_v9 = vpack.c.bf16 %v322_v6, %v321_v4  ;;  %v324_v11 = vld [vmem:[#allocation13 + $0x18] sm:$0xff]  ;;  %v4393_v12 = vpack.c.bf16 %v308_v8, %v307_v7  ;;  %v309_v14 = vld [vmem:[#allocation11 + $0x20] sm:$0xff]  ;;  %v310_v15 = vld [vmem:[#allocation11 + $0x28] sm:$0xff]  ;;  %s5706_s3 = smov [#allocation29]  }
 0x16e   :  { %4391 = vmatpush3.bf16.msra.mxu0 %v4390_v5  ;;  %v6101_v13 = vpack.c.bf16 %v324_v11, %v323_v10  ;;  %v325_v16 = vld [vmem:[#allocation13 + $0x20] sm:$0xff]  ;;  %v326_v17 = vld [vmem:[#allocation13 + $0x28] sm:$0xff]  ;;  %v4396_v18 = vpack.c.bf16 %v310_v15, %v309_v14  ;;  %v311_v20 = vld [vmem:[#allocation11 + $0x30] sm:$0xff]  ;;  %s3040_s28 = sshll.u32 %s5706_s3, 4  ;;  %s3041_s28 = int_to_ptr.vmem [resolvable:$true] %s3040_s28 }
 0x16f   :  { %4415 = vmatpush3.bf16.msra.mxu1 %v6097_v9  ;;  %4392 = vmatprep.subr.bf16.mxu0 %v5703_v0  ;;  %v6106_v19 = vpack.c.bf16 %v326_v17, %v325_v16  ;;  %v312_v21 = vld [vmem:[#allocation11 + $0x38] sm:$0xff]  ;;  %v327_v22 = vld [vmem:[#allocation13 + $0x30] sm:$0xff]  ;;  %v313_v26 = vld [vmem:[#allocation11 + $0x40] sm:$0xff]  ;;  %s5615_s0 = scalar_lea.vmem %s3041_s28, 128  ;;  %p5620_p3 = scmp.lt.s32.totalorder %s3041_s28, %s3041_s28 }
 0x170   :  { %4416 = vmatprep.subr.bf16.mxu1 %v5703_v0  ;;  %v328_v23 = vld [vmem:[#allocation13 + $0x38] sm:$0xff]  ;;  %v4399_v24 = vpack.c.bf16 %v312_v21, %v311_v20  ;;  %v314_v27 = vld [vmem:[#allocation11 + $0x48] sm:$0xff]  ;;  %v329_v28 = vld [vmem:[#allocation13 + $0x40] sm:$0xff]  ;;  %p5616_p2 = scmp.ne.s32.totalorder %s3041_s28, %s5615_s0  ;;  %p5621_p4 = scmp.lt.s32.totalorder %s5615_s0, %s5615_s0 }
 0x171   :  { %v6111_v25 = vpack.c.bf16 %v328_v23, %v327_v22  ;;  %v330_v29 = vld [vmem:[#allocation13 + $0x48] sm:$0xff]  ;;  %v4402_v30 = vpack.c.bf16 %v314_v27, %v313_v26  ;;  %v315_v32 = vld [vmem:[#allocation11 + $0x50] sm:$0xff]  ;;  %v316_v33 = vld [vmem:[#allocation11 + $0x58] sm:$0xff] }
 0x172   :  { %4394 = vmatpush3.bf16.msra.mxu0 %v4393_v12  ;;  %v6116_v31 = vpack.c.bf16 %v330_v29, %v329_v28  ;;  %v331_v34 = vld [vmem:[#allocation13 + $0x50] sm:$0xff]  ;;  %v332_v35 = vld [vmem:[#allocation13 + $0x58] sm:$0xff]  ;;  %v4405_v36 = vpack.c.bf16 %v316_v33, %v315_v32  ;;  %v317_v38 = vld [vmem:[#allocation11 + $0x60] sm:$0xff]  ;;  %p5622_p5 = por %p5621_p4, %p5620_p3 }
 0x173   :  { %4418 = vmatpush3.bf16.msra.mxu1 %v6101_v13  ;;  %4395 = vmatprep.subr.bf16.mxu0 %v5703_v0  ;;  %v6121_v37 = vpack.c.bf16 %v332_v35, %v331_v34  ;;  %v318_v39 = vld [vmem:[#allocation11 + $0x68] sm:$0xff]  ;;  %v333_v40 = vld [vmem:[#allocation13 + $0x60] sm:$0xff]  ;;  %v319_v44 = vld [vmem:[#allocation11 + $0x70] sm:$0xff] }
 0x174   :  { %4419 = vmatprep.subr.bf16.mxu1 %v5703_v0  ;;  %v334_v41 = vld [vmem:[#allocation13 + $0x68] sm:$0xff]  ;;  %v4408_v42 = vpack.c.bf16 %v318_v39, %v317_v38  ;;  %v320_v45 = vld [vmem:[#allocation11 + $0x78] sm:$0xff]  ;;  %v335_v46 = vld [vmem:[#allocation13 + $0x70] sm:$0xff]  ;;  %p5623_p6 = pnand %p5622_p5, %p5616_p2 }
 0x175   :  { %v6126_v43 = vpack.c.bf16 %v334_v41, %v333_v40  ;;  %v336_v47 = vld [vmem:[#allocation13 + $0x78] sm:$0xff]  ;;  %v4411_v48 = vpack.c.bf16 %v320_v45, %v319_v44  ;;  %v6134_v50 = vld [vmem:[#allocation5] sm:$0xff]  ;;  %v415_v51 = vld [vmem:[#allocation7] sm:$0xff] }
 0x176   :  { %4397 = vmatpush3.bf16.msra.mxu0 %v4396_v18  ;;  %v6131_v49 = vpack.c.bf16 %v336_v47, %v335_v46  ;;  %v497_v52 = vld [vmem:[#allocation7 + $0x8] sm:$0xff]  ;;  %v573_v53 = vld [vmem:[#allocation7 + $0x10] sm:$0xff]  ;;  %v649_v54 = vld [vmem:[#allocation7 + $0x18] sm:$0xff] }
 0x177   :  { %4421 = vmatpush3.bf16.msra.mxu1 %v6106_v19  ;;  %4398 = vmatprep.subr.bf16.mxu0 %v5703_v0  ;;  %v725_v55 = vld [vmem:[#allocation7 + $0x20] sm:$0xff]  ;;  %v1092_v56 = vld [vmem:[#allocation14 + $0x8] sm:$0xff]  ;;  %v1094_v57 = vld [vmem:[#allocation14 + $0x18] sm:$0xff] }
 0x178   :  { %4422 = vmatprep.subr.bf16.mxu1 %v5703_v0  ;;  %v4605_v58 = vpack.c.bf16 %v1094_v57, %v1092_v56  ;;  %v1091_v59 = vld [vmem:[#allocation14] sm:$0xff]  ;;  %v1093_v60 = vld [vmem:[#allocation14 + $0x10] sm:$0xff]  ;;  %v1096_v61 = vld [vmem:[#allocation14 + $0x28] sm:$0xff] }
 0x179   :  { %v1098_v62 = vld [vmem:[#allocation14 + $0x38] sm:$0xff]  ;;  %v877_v2 = vld [vmem:[#allocation7 + $0x30] sm:$0xff]  ;;  %v4607_v3 = vpack.c.bf16 %v1093_v60, %v1091_v59  ;;  %v1097_v6 = vld [vmem:[#allocation14 + $0x30] sm:$0xff] }
 0x17a   :  { %4400 = vmatpush3.bf16.msra.mxu0 %v4399_v24  ;;  %v801_v63 = vld [vmem:[#allocation7 + $0x28] sm:$0xff]  ;;  %v4609_v4 = vpack.c.bf16 %v1098_v62, %v1096_v61  ;;  %v1095_v5 = vld [vmem:[#allocation14 + $0x20] sm:$0xff]  ;;  %v1100_v7 = vld [vmem:[#allocation14 + $0x48] sm:$0xff] }
 0x17b   :  { %4424 = vmatpush3.bf16.msra.mxu1 %v6111_v25  ;;  %4401 = vmatprep.subr.bf16.mxu0 %v5703_v0  ;;  %v1102_v8 = vld [vmem:[#allocation14 + $0x58] sm:$0xff]  ;;  %v4611_v10 = vpack.c.bf16 %v1097_v6, %v1095_v5  ;;  %v1099_v12 = vld [vmem:[#allocation14 + $0x40] sm:$0xff]  ;;  %v1101_v14 = vld [vmem:[#allocation14 + $0x50] sm:$0xff] }
 0x17c   :  { %4425 = vmatprep.subr.bf16.mxu1 %v5703_v0  ;;  %v4613_v11 = vpack.c.bf16 %v1102_v8, %v1100_v7  ;;  %v1104_v15 = vld [vmem:[#allocation14 + $0x68] sm:$0xff]  ;;  %v1106_v16 = vld [vmem:[#allocation14 + $0x78] sm:$0xff]  ;;  %v1103_v18 = vld [vmem:[#allocation14 + $0x60] sm:$0xff] }
 0x17d   :  { %v4617_v17 = vpack.c.bf16 %v1106_v16, %v1104_v15  ;;  %v1105_v20 = vld [vmem:[#allocation14 + $0x70] sm:$0xff]  ;;  %v1108_v21 = vld [vmem:[#allocation14 + $0x88] sm:$0xff]  ;;  %v1110_v22 = vld [vmem:[#allocation14 + $0x98] sm:$0xff] }
 0x17e   :  { %4403 = vmatpush3.bf16.msra.mxu0 %v4402_v30  ;;  %v4619_v23 = vpack.c.bf16 %v1105_v20, %v1103_v18  ;;  %v4621_v24 = vpack.c.bf16 %v1110_v22, %v1108_v21  ;;  %v1107_v26 = vld [vmem:[#allocation14 + $0x80] sm:$0xff]  ;;  %v1112_v27 = vld [vmem:[#allocation14 + $0xa8] sm:$0xff]  ;;  %v1114_v28 = vld [vmem:[#allocation14 + $0xb8] sm:$0xff] }
 0x17f   :  { %4427 = vmatpush3.bf16.msra.mxu1 %v6116_v31  ;;  %4404 = vmatprep.subr.bf16.mxu0 %v5703_v0  ;;  %v4625_v30 = vpack.c.bf16 %v1114_v28, %v1112_v27  ;;  %v1111_v32 = vld [vmem:[#allocation14 + $0xa0] sm:$0xff]  ;;  %v1116_v33 = vld [vmem:[#allocation14 + $0xc8] sm:$0xff]  ;;  %v1118_v34 = vld [vmem:[#allocation14 + $0xd8] sm:$0xff] }
 0x180   :  { %4428 = vmatprep.subr.bf16.mxu1 %v5703_v0  ;;  %v1115_v38 = vld [vmem:[#allocation14 + $0xc0] sm:$0xff]  ;;  %v1120_v39 = vld [vmem:[#allocation14 + $0xe8] sm:$0xff]  ;;  %v1122_v40 = vld [vmem:[#allocation14 + $0xf8] sm:$0xff] }
 0x181   :  { %v1119_v44 = vld [vmem:[#allocation14 + $0xe0] sm:$0xff]  ;;  %v1223_v47 = vld [vmem:[#allocation17 + $0x8] sm:$0xff]  ;;  %v1232_v60 = vld [vmem:[#allocation17 + $0x50] sm:$0xff] }
 0x182   :  { %4406 = vmatpush3.bf16.msra.mxu0 %v4405_v36  ;;  %v4629_v36 = vpack.c.bf16 %v1118_v34, %v1116_v33  ;;  %v1222_v46 = vld [vmem:[#allocation17] sm:$0xff]  ;;  %v1233_v61 = vld [vmem:[#allocation17 + $0x58] sm:$0xff]  ;;  %v1316_v7 = vld [vmem:[#allocation8] sm:$0xff] }
 0x183   :  { %4430 = vmatpush3.bf16.msra.mxu1 %v6121_v37  ;;  %4407 = vmatprep.subr.bf16.mxu0 %v5703_v0  ;;  %v1230_v57 = vld [vmem:[#allocation17 + $0x40] sm:$0xff]  ;;  %v6294_v62 = vpack.c.bf16 %v1233_v61, %v1232_v60  ;;  %v1237_v5 = vld [vmem:[#allocation17 + $0x78] sm:$0xff]  ;;  %v1212_v18 = vld [vmem:[#allocation16 + $0x30] sm:$0xff] }
 0x184   :  { %4431 = vmatprep.subr.bf16.mxu1 %v5703_v0  ;;  %v1206_v8 = vld [vmem:[#allocation16] sm:$0xff]  ;;  %v1213_v20 = vld [vmem:[#allocation16 + $0x38] sm:$0xff] }
 0x185   :  { %v1210_v16 = vld [vmem:[#allocation16 + $0x20] sm:$0xff]  ;;  %v4647_v22 = vpack.c.bf16 %v1213_v20, %v1212_v18  ;;  %v1217_v27 = vld [vmem:[#allocation16 + $0x58] sm:$0xff]  ;;  %v1838_v20 = vld [vmem:[#allocation19 + $0x70] sm:$0xff] }
 0x186   :  { %4409 = vmatpush3.bf16.msra.mxu0 %v4408_v42  ;;  %v4633_v42 = vpack.c.bf16 %v1122_v40, %v1120_v39  ;;  %v1474_v21 = vld [vmem:[#allocation8 + $0x10] sm:$0xff]  ;;  %v1221_v33 = vld [vmem:[#allocation16 + $0x78] sm:$0xff] }
 0x187   :  { %4433 = vmatpush3.bf16.msra.mxu1 %v6126_v43  ;;  %4410 = vmatprep.subr.bf16.mxu0 %v5703_v0  ;;  %v1831_v60 = vld [vmem:[#allocation19 + $0x38] sm:$0xff] }
 0x188   :  { %4434 = vmatprep.subr.bf16.mxu1 %v5703_v0 }
 0x18a   :  { %4412 = vmatpush3.bf16.msra.mxu0 %v4411_v48  ;;  %v6267_v48 = vpack.c.bf16 %v1223_v47, %v1222_v46  ;;  %v1826_v46 = vld [vmem:[#allocation19 + $0x10] sm:$0xff]  ;;  %v1827_v47 = vld [vmem:[#allocation19 + $0x18] sm:$0xff] }
 0x18b   :  { %4436 = vmatpush3.bf16.msra.mxu1 %v6131_v49  ;;  %4437 = vmatprep.subr.bf16.mxu0 %v5703_v0 }
 0x18c   :  { %4461 = vmatprep.subr.bf16.mxu1 %v5703_v0 }
 0x18d   :  { %3582 = vmatmul.mubr.f32.vlgmr.msra.gmra.mrb[0].mxu0 %v6134_v50 }
 0x18e   :  { %3617 = vmatmul.mubr.f32.vlgmr.msra.gmra.mrb[0].mxu1 %v415_v51  ;;  %4439 = vmatpush3.bf16.msra.mxu0 %v6097_v9  ;;  %v1224_v51 = vld [vmem:[#allocation17 + $0x10] sm:$0xff] }
 0x18f   :  { %4463 = vmatpush3.bf16.msra.mxu1 %v6097_v9  ;;  %4440 = vmatprep.subr.bf16.mxu0 %v5703_v0 }
 0x190   :  { %4464 = vmatprep.subr.bf16.mxu1 %v5703_v0  ;;  %3651 = vmatprep.mubr.msk.f32.mxu0 %vm5704_vm0, %v5705_v1 }
 0x191   :  { %3686 = vmatprep.mubr.msk.f32.mxu1 %vm5704_vm0, %v5705_v1 }
 0x192   :  { %4442 = vmatpush3.bf16.msra.mxu0 %v6101_v13 }
 0x193   :  { %4466 = vmatpush3.bf16.msra.mxu1 %v6101_v13  ;;  %4443 = vmatprep.subr.bf16.mxu0 %v5703_v0 }
 0x194   :  { %4467 = vmatprep.subr.bf16.mxu1 %v5703_v0 }
 0x196   :  { %4445 = vmatpush3.bf16.msra.mxu0 %v6106_v19 }
 0x197   :  { %4469 = vmatpush3.bf16.msra.mxu1 %v6106_v19  ;;  %4446 = vmatprep.subr.bf16.mxu0 %v5703_v0 }
 0x198   :  { %4470 = vmatprep.subr.bf16.mxu1 %v5703_v0 }
 0x19a   :  { %4448 = vmatpush3.bf16.msra.mxu0 %v6111_v25 }
 0x19b   :  { %4472 = vmatpush3.bf16.msra.mxu1 %v6111_v25  ;;  %4449 = vmatprep.subr.bf16.mxu0 %v5703_v0 }
 0x19c   :  { %4473 = vmatprep.subr.bf16.mxu1 %v5703_v0 }
 0x19e   :  { %4451 = vmatpush3.bf16.msra.mxu0 %v6116_v31 }
 0x19f   :  { %4475 = vmatpush3.bf16.msra.mxu1 %v6116_v31  ;;  %4452 = vmatprep.subr.bf16.mxu0 %v5703_v0 }
 0x1a0   :  { %4476 = vmatprep.subr.bf16.mxu1 %v5703_v0 }
 0x1a2   :  { %4454 = vmatpush3.bf16.msra.mxu0 %v6121_v37 }
 0x1a3   :  { %4478 = vmatpush3.bf16.msra.mxu1 %v6121_v37  ;;  %4455 = vmatprep.subr.bf16.mxu0 %v5703_v0 }
 0x1a4   :  { %4479 = vmatprep.subr.bf16.mxu1 %v5703_v0 }
 0x1a6   :  { %4457 = vmatpush3.bf16.msra.mxu0 %v6126_v43 }
 0x1a7   :  { %4481 = vmatpush3.bf16.msra.mxu1 %v6126_v43  ;;  %4458 = vmatprep.subr.bf16.mxu0 %v5703_v0 }
 0x1a8   :  { %4482 = vmatprep.subr.bf16.mxu1 %v5703_v0 }
 0x1aa   :  { %4460 = vmatpush3.bf16.msra.mxu0 %v6131_v49 }
 0x1ab   :  { %4484 = vmatpush3.bf16.msra.mxu1 %v6131_v49  ;;  %4485 = vmatprep.subr.bf16.mxu0 %v5703_v0 }
 0x1ac   :  { %4509 = vmatprep.subr.bf16.mxu1 %v5703_v0 }
 0x1ad   :  { %3652 = vmatmul.mubr.f32.vlgmr.msra.gmra.mrb[2].mxu0 %v497_v52  ;;  %v1226_v52 = vld [vmem:[#allocation17 + $0x20] sm:$0xff] }
 0x1ae   :  { %3687 = vmatmul.mubr.f32.vlgmr.msra.gmra.mrb[2].mxu1 %v573_v53  ;;  %4487 = vmatpush3.bf16.msra.mxu0 %v6097_v9  ;;  %v1227_v53 = vld [vmem:[#allocation17 + $0x28] sm:$0xff] }
 0x1af   :  { %4511 = vmatpush3.bf16.msra.mxu1 %v6097_v9  ;;  %4488 = vmatprep.subr.bf16.mxu0 %v5703_v0 }
 0x1b0   :  { %4512 = vmatprep.subr.bf16.mxu1 %v5703_v0  ;;  %3721 = vmatprep.mubr.msk.f32.mxu0 %vm5704_vm0, %v5705_v1 }
 0x1b1   :  { %3756 = vmatprep.mubr.msk.f32.mxu1 %vm5704_vm0, %v5705_v1 }
 0x1b2   :  { %4490 = vmatpush3.bf16.msra.mxu0 %v6101_v13 }
 0x1b3   :  { %4514 = vmatpush3.bf16.msra.mxu1 %v6101_v13  ;;  %4491 = vmatprep.subr.bf16.mxu0 %v5703_v0 }
 0x1b4   :  { %4515 = vmatprep.subr.bf16.mxu1 %v5703_v0 }
 0x1b6   :  { %4493 = vmatpush3.bf16.msra.mxu0 %v6106_v19 }
 0x1b7   :  { %4517 = vmatpush3.bf16.msra.mxu1 %v6106_v19  ;;  %4494 = vmatprep.subr.bf16.mxu0 %v5703_v0 }
 0x1b8   :  { %4518 = vmatprep.subr.bf16.mxu1 %v5703_v0 }
 0x1ba   :  { %4496 = vmatpush3.bf16.msra.mxu0 %v6111_v25 }
 0x1bb   :  { %4520 = vmatpush3.bf16.msra.mxu1 %v6111_v25  ;;  %4497 = vmatprep.subr.bf16.mxu0 %v5703_v0 }
 0x1bc   :  { %4521 = vmatprep.subr.bf16.mxu1 %v5703_v0 }
 0x1be   :  { %4499 = vmatpush3.bf16.msra.mxu0 %v6116_v31 }
 0x1bf   :  { %4523 = vmatpush3.bf16.msra.mxu1 %v6116_v31  ;;  %4500 = vmatprep.subr.bf16.mxu0 %v5703_v0 }
 0x1c0   :  { %4524 = vmatprep.subr.bf16.mxu1 %v5703_v0 }
 0x1c2   :  { %4502 = vmatpush3.bf16.msra.mxu0 %v6121_v37 }
 0x1c3   :  { %4526 = vmatpush3.bf16.msra.mxu1 %v6121_v37  ;;  %4503 = vmatprep.subr.bf16.mxu0 %v5703_v0 }
 0x1c4   :  { %4527 = vmatprep.subr.bf16.mxu1 %v5703_v0 }
 0x1c6   :  { %4505 = vmatpush3.bf16.msra.mxu0 %v6126_v43 }
 0x1c7   :  { %4529 = vmatpush3.bf16.msra.mxu1 %v6126_v43  ;;  %4506 = vmatprep.subr.bf16.mxu0 %v5703_v0 }
 0x1c8   :  { %4530 = vmatprep.subr.bf16.mxu1 %v5703_v0 }
 0x1ca   :  { %4508 = vmatpush3.bf16.msra.mxu0 %v6131_v49 }
 0x1cb   :  { %4532 = vmatpush3.bf16.msra.mxu1 %v6131_v49  ;;  %4533 = vmatprep.subr.bf16.mxu0 %v5703_v0 }
 0x1cc   :  { %4557 = vmatprep.subr.bf16.mxu1 %v5703_v0 }
 0x1cd   :  { %3722 = vmatmul.mubr.f32.vlgmr.msra.gmra.mrb[4].mxu0 %v649_v54  ;;  %v6282_v54 = vpack.c.bf16 %v1227_v53, %v1226_v52  ;;  %v4809_v52 = vpack.c.bf16 %v1827_v47, %v1826_v46 }
 0x1ce   :  { %3757 = vmatmul.mubr.f32.vlgmr.msra.gmra.mrb[4].mxu1 %v725_v55  ;;  %4535 = vmatpush3.bf16.msra.mxu0 %v6097_v9  ;;  %v1229_v55 = vld [vmem:[#allocation17 + $0x38] sm:$0xff] }
 0x1cf   :  { %4559 = vmatpush3.bf16.msra.mxu1 %v6097_v9  ;;  %4536 = vmatprep.subr.bf16.mxu0 %v5703_v0 }
 0x1d0   :  { %4560 = vmatprep.subr.bf16.mxu1 %v5703_v0  ;;  %3791 = vmatprep.mubr.msk.f32.mxu0 %vm5704_vm0, %v5705_v1 }
 0x1d1   :  { %3826 = vmatprep.mubr.msk.f32.mxu1 %vm5704_vm0, %v5705_v1 }
 0x1d2   :  { %4538 = vmatpush3.bf16.msra.mxu0 %v6101_v13 }
 0x1d3   :  { %4562 = vmatpush3.bf16.msra.mxu1 %v6101_v13  ;;  %4539 = vmatprep.subr.bf16.mxu0 %v5703_v0 }
 0x1d4   :  { %4563 = vmatprep.subr.bf16.mxu1 %v5703_v0 }
 0x1d6   :  { %4541 = vmatpush3.bf16.msra.mxu0 %v6106_v19 }
 0x1d7   :  { %4565 = vmatpush3.bf16.msra.mxu1 %v6106_v19  ;;  %4542 = vmatprep.subr.bf16.mxu0 %v5703_v0 }
 0x1d8   :  { %4566 = vmatprep.subr.bf16.mxu1 %v5703_v0 }
 0x1da   :  { %4544 = vmatpush3.bf16.msra.mxu0 %v6111_v25 }
 0x1db   :  { %4568 = vmatpush3.bf16.msra.mxu1 %v6111_v25  ;;  %4545 = vmatprep.subr.bf16.mxu0 %v5703_v0 }
 0x1dc   :  { %4569 = vmatprep.subr.bf16.mxu1 %v5703_v0 }
 0x1de   :  { %4547 = vmatpush3.bf16.msra.mxu0 %v6116_v31 }
 0x1df   :  { %4571 = vmatpush3.bf16.msra.mxu1 %v6116_v31  ;;  %4548 = vmatprep.subr.bf16.mxu0 %v5703_v0 }
 0x1e0   :  { %4572 = vmatprep.subr.bf16.mxu1 %v5703_v0 }
 0x1e2   :  { %4550 = vmatpush3.bf16.msra.mxu0 %v6121_v37 }
 0x1e3   :  { %4574 = vmatpush3.bf16.msra.mxu1 %v6121_v37  ;;  %4551 = vmatprep.subr.bf16.mxu0 %v5703_v0 }
 0x1e4   :  { %4575 = vmatprep.subr.bf16.mxu1 %v5703_v0 }
 0x1e6   :  { %4553 = vmatpush3.bf16.msra.mxu0 %v6126_v43 }
 0x1e7   :  { %4577 = vmatpush3.bf16.msra.mxu1 %v6126_v43  ;;  %4554 = vmatprep.subr.bf16.mxu0 %v5703_v0 }
 0x1e8   :  { %4578 = vmatprep.subr.bf16.mxu1 %v5703_v0 }
 0x1ea   :  { %4556 = vmatpush3.bf16.msra.mxu0 %v6131_v49 }
 0x1eb   :  { %4580 = vmatpush3.bf16.msra.mxu1 %v6131_v49  ;;  %4581 = vmatprep.subr.bf16.mxu0 %v5703_v0 }
 0x1ec   :  { %4606 = vmatprep.subr.bf16.mxu1 %v4605_v58  ;;  %v1231_v58 = vld [vmem:[#allocation17 + $0x48] sm:$0xff] }
 0x1ed   :  { %3792 = vmatmul.mubr.f32.vlgmr.msra.gmra.mrb[6].mxu0 %v801_v63  ;;  %v6290_v59 = vpack.c.bf16 %v1231_v58, %v1230_v57  ;;  %v1234_v63 = vld [vmem:[#allocation17 + $0x60] sm:$0xff]  ;;  %v1830_v58 = vld [vmem:[#allocation19 + $0x30] sm:$0xff] }
 0x1ee   :  { %3827 = vmatmul.mubr.f32.vlgmr.msra.gmra.mrb[6].mxu1 %v877_v2  ;;  %4583 = vmatpush3.bf16.msra.mxu0 %v6097_v9  ;;  %v4615_v9 = vpack.c.bf16 %v1101_v14, %v1099_v12  ;;  %v1235_v2 = vld [vmem:[#allocation17 + $0x68] sm:$0xff]  ;;  %v1208_v12 = vld [vmem:[#allocation16 + $0x10] sm:$0xff]  ;;  %v1209_v14 = vld [vmem:[#allocation16 + $0x18] sm:$0xff]  ;;  %v4815_v61 = vpack.c.bf16 %v1831_v60, %v1830_v58 }
 0x1ef   :  { %4608 = vmatpush1.bf16.msra.mxu1 %v4607_v3  ;;  %4584 = vmatprep.subr.bf16.mxu0 %v5703_v0  ;;  %v6298_v3 = vpack.c.bf16 %v1235_v2, %v1234_v63  ;;  %v4641_v15 = vpack.c.bf16 %v1209_v14, %v1208_v12  ;;  %v1832_v63 = vld [vmem:[#allocation19 + $0x40] sm:$0xff]  ;;  %v1833_v2 = vld [vmem:[#allocation19 + $0x48] sm:$0xff] }
 0x1f0   :  { %4610 = vmatprep.subr.bf16.mxu1 %v4609_v4  ;;  %3861 = vmatprep.mubr.msk.f32.mxu0 %vm5704_vm0, %v5705_v1  ;;  %v1236_v4 = vld [vmem:[#allocation17 + $0x70] sm:$0xff]  ;;  %v1837_v12 = vld [vmem:[#allocation19 + $0x68] sm:$0xff]  ;;  %v1840_v60 = vld [vmem:[#allocation20] sm:$0xff] }
 0x1f1   :  { %1199 = vmatprep.mubr.f32.mxu1 %v5705_v1  ;;  %v6302_v6 = vpack.c.bf16 %v1237_v5, %v1236_v4  ;;  %v4818_v4 = vpack.c.bf16 %v1833_v2, %v1832_v63  ;;  %v1834_v5 = vld [vmem:[#allocation19 + $0x50] sm:$0xff] }
 0x1f2   :  { %4586 = vmatpush3.bf16.msra.mxu0 %v6101_v13  ;;  %v1109_v13 = vld [vmem:[#allocation14 + $0x90] sm:$0xff] }
 0x1f3   :  { %4612 = vmatpush1.bf16.msra.mxu1 %v4611_v10  ;;  %4587 = vmatprep.subr.bf16.mxu0 %v5703_v0  ;;  %v4623_v29 = vpack.c.bf16 %v1109_v13, %v1107_v26  ;;  %v1207_v10 = vld [vmem:[#allocation16 + $0x8] sm:$0xff]  ;;  %v1216_v13 = vld [vmem:[#allocation16 + $0x50] sm:$0xff] }
 0x1f4   :  { %4614 = vmatprep.subr.bf16.mxu1 %v4613_v11  ;;  %v4638_v11 = vpack.c.bf16 %v1207_v10, %v1206_v8  ;;  %v4653_v28 = vpack.c.bf16 %v1217_v27, %v1216_v13 }
 0x1f6   :  { %4589 = vmatpush3.bf16.msra.mxu0 %v6106_v19  ;;  %v1113_v19 = vld [vmem:[#allocation14 + $0xb0] sm:$0xff] }
 0x1f7   :  { %4616 = vmatpush1.bf16.msra.mxu1 %v4615_v9  ;;  %4590 = vmatprep.subr.bf16.mxu0 %v5703_v0  ;;  %v4627_v35 = vpack.c.bf16 %v1113_v19, %v1111_v32  ;;  %v1211_v9 = vld [vmem:[#allocation16 + $0x28] sm:$0xff]  ;;  %v1220_v19 = vld [vmem:[#allocation16 + $0x70] sm:$0xff] }
 0x1f8   :  { %4618 = vmatprep.subr.bf16.mxu1 %v4617_v17  ;;  %v4644_v17 = vpack.c.bf16 %v1211_v9, %v1210_v16  ;;  %v4659_v34 = vpack.c.bf16 %v1221_v33, %v1220_v19 }
 0x1fa   :  { %4592 = vmatpush3.bf16.msra.mxu0 %v6111_v25  ;;  %v1117_v25 = vld [vmem:[#allocation14 + $0xd0] sm:$0xff] }
 0x1fb   :  { %4620 = vmatpush1.bf16.msra.mxu1 %v4619_v23  ;;  %4593 = vmatprep.subr.bf16.mxu0 %v5703_v0  ;;  %v4631_v41 = vpack.c.bf16 %v1117_v25, %v1115_v38  ;;  %v1214_v23 = vld [vmem:[#allocation16 + $0x40] sm:$0xff] }
 0x1fc   :  { %4622 = vmatprep.subr.bf16.mxu1 %v4621_v24  ;;  %v1215_v24 = vld [vmem:[#allocation16 + $0x48] sm:$0xff] }
 0x1fd   :  { %v4650_v26 = vpack.c.bf16 %v1215_v24, %v1214_v23 }
 0x1fe   :  { %4595 = vmatpush3.bf16.msra.mxu0 %v6116_v31  ;;  %v1121_v31 = vld [vmem:[#allocation14 + $0xf0] sm:$0xff] }
 0x1ff   :  { %4624 = vmatpush1.bf16.msra.mxu1 %v4623_v29  ;;  %4596 = vmatprep.subr.bf16.mxu0 %v5703_v0  ;;  %v4635_v45 = vpack.c.bf16 %v1121_v31, %v1119_v44  ;;  %v1218_v29 = vld [vmem:[#allocation16 + $0x60] sm:$0xff]  ;;  %v1825_v44 = vld [vmem:[#allocation19 + $0x8] sm:$0xff]  ;;  %v1626_v31 = vld [vmem:[#allocation8 + $0x20] sm:$0xff] }
 0x200   :  { %4626 = vmatprep.subr.bf16.mxu1 %v4625_v30  ;;  %v1219_v30 = vld [vmem:[#allocation16 + $0x68] sm:$0xff] }
 0x201   :  { %v4656_v32 = vpack.c.bf16 %v1219_v30, %v1218_v29 }
 0x202   :  { %4598 = vmatpush3.bf16.msra.mxu0 %v6121_v37  ;;  %v6265_v37 = vld [vmem:[#allocation7 + $0x38] sm:$0xff] }
 0x203   :  { %4628 = vmatpush1.bf16.msra.mxu1 %v4627_v35  ;;  %4599 = vmatprep.subr.bf16.mxu0 %v5703_v0  ;;  %v3061_v35 = vld [vmem:[%s6733_s9] ss:$0 sm:$0xff] }
 0x204   :  { %4630 = vmatprep.subr.bf16.mxu1 %v4629_v36 }
 0x206   :  { %4601 = vmatpush3.bf16.msra.mxu0 %v6126_v43  ;;  %v1225_v43 = vld [vmem:[#allocation17 + $0x18] sm:$0xff] }
 0x207   :  { %4632 = vmatpush1.bf16.msra.mxu1 %v4631_v41  ;;  %4602 = vmatprep.subr.bf16.mxu0 %v5703_v0 }
 0x208   :  { %4634 = vmatprep.subr.bf16.mxu1 %v4633_v42  ;;  %v1824_v42 = vld [vmem:[#allocation19] sm:$0xff] }
 0x20a   :  { %4604 = vmatpush3.bf16.msra.mxu0 %v6131_v49  ;;  %v6276_v49 = vpack.c.bf16 %v1225_v43, %v1224_v51  ;;  %v6360_v51 = vld [vmem:[%s6734_s10] ss:$0 sm:$0xff] }
 0x20b   :  { %4636 = vmatpush1.bf16.msra.mxu1 %v4635_v45  ;;  %4637 = vmatprep.subr.bf16.mxu0 %v5703_v0  ;;  %v4806_v45 = vpack.c.bf16 %v1825_v44, %v1824_v42 }
 0x20c   :  { %4661 = vmatprep.subr.bf16.mxu1 %v5703_v0 }
 0x20d   :  { %3862 = vmatmul.mubr.f32.vlgmr.msra.gmra.mrb[8].mxu0 %v6265_v37 }
 0x20e   :  { %1200 = vmatmul.mubr.f32.vlgmr.msra.gmra.mrb[8].mxu1 %v6134_v50  ;;  %3896 = vmatprep.mubr.msk.f32.mxu0 %vm5704_vm0, %v5705_v1  ;;  %v1228_v50 = vld [vmem:[#allocation17 + $0x30] sm:$0xff] }
 0x20f   :  { %4663 = vmatpush3.bf16.msra.mxu1 %v6267_v48  ;;  %3931 = vmatprep.mubr.msk.f32.mxu1 %vm5704_vm0, %v5705_v1  ;;  %v6286_v56 = vpack.c.bf16 %v1229_v55, %v1228_v50  ;;  %v1828_v50 = vld [vmem:[#allocation19 + $0x20] sm:$0xff]  ;;  %v1829_v55 = vld [vmem:[#allocation19 + $0x28] sm:$0xff] }
 0x210   :  { %4664 = vmatprep.subr.bf16.mxu1 %v5703_v0  ;;  %4639 = vmatpush3.bf16.msra.mxu0 %v4638_v11  ;;  %v4812_v57 = vpack.c.bf16 %v1829_v55, %v1828_v50  ;;  %v1836_v11 = vld [vmem:[#allocation19 + $0x60] sm:$0xff] }
 0x211   :  { %4640 = vmatprep.subr.bf16.mxu0 %v5703_v0  ;;  %v4824_v18 = vpack.c.bf16 %v1837_v12, %v1836_v11  ;;  %v1123_v50 = vld [vmem:[%s6735_s1] sm:$0x3]  ;;  %v1842_v12 = vld [vmem:[#allocation20 + $0x10] sm:$0xff] }
 0x213   :  { %4666 = vmatpush3.bf16.msra.mxu1 %v6276_v49 }
 0x214   :  { %4667 = vmatprep.subr.bf16.mxu1 %v5703_v0  ;;  %4642 = vmatpush3.bf16.msra.mxu0 %v4641_v15 }
 0x215   :  { %4643 = vmatprep.subr.bf16.mxu0 %v5703_v0 }
 0x217   :  { %4669 = vmatpush3.bf16.msra.mxu1 %v6282_v54 }
 0x218   :  { %4670 = vmatprep.subr.bf16.mxu1 %v5703_v0  ;;  %4645 = vmatpush3.bf16.msra.mxu0 %v4644_v17 }
 0x219   :  { %4646 = vmatprep.subr.bf16.mxu0 %v5703_v0 }
 0x21b   :  { %4672 = vmatpush3.bf16.msra.mxu1 %v6286_v56 }
 0x21c   :  { %4673 = vmatprep.subr.bf16.mxu1 %v5703_v0  ;;  %4648 = vmatpush3.bf16.msra.mxu0 %v4647_v22 }
 0x21d   :  { %4649 = vmatprep.subr.bf16.mxu0 %v5703_v0 }
 0x21f   :  { %4675 = vmatpush3.bf16.msra.mxu1 %v6290_v59 }
 0x220   :  { %4676 = vmatprep.subr.bf16.mxu1 %v5703_v0  ;;  %4651 = vmatpush3.bf16.msra.mxu0 %v4650_v26 }
 0x221   :  { %4652 = vmatprep.subr.bf16.mxu0 %v5703_v0 }
 0x223   :  { %4678 = vmatpush3.bf16.msra.mxu1 %v6294_v62 }
 0x224   :  { %4679 = vmatprep.subr.bf16.mxu1 %v5703_v0  ;;  %4654 = vmatpush3.bf16.msra.mxu0 %v4653_v28 }
 0x225   :  { %4655 = vmatprep.subr.bf16.mxu0 %v5703_v0 }
 0x227   :  { %4681 = vmatpush3.bf16.msra.mxu1 %v6298_v3 }
 0x228   :  { %4682 = vmatprep.subr.bf16.mxu1 %v5703_v0  ;;  %4657 = vmatpush3.bf16.msra.mxu0 %v4656_v32 }
 0x229   :  { %4658 = vmatprep.subr.bf16.mxu0 %v5703_v0 }
 0x22b   :  { %4684 = vmatpush3.bf16.msra.mxu1 %v6302_v6 }
 0x22c   :  { %4709 = vmatprep.subr.bf16.mxu1 %v5703_v0  ;;  %4660 = vmatpush3.bf16.msra.mxu0 %v4659_v34 }
 0x22d   :  { %4685 = vmatprep.subr.bf16.mxu0 %v5703_v0 }
 0x22e   :  { %3932 = vmatmul.mubr.f32.vlgmr.msra.gmra.mrb[10].mxu1 %v1316_v7  ;;  %v1835_v7 = vld [vmem:[#allocation19 + $0x58] sm:$0xff] }
 0x22f   :  { %4711 = vmatpush3.bf16.msra.mxu1 %v6267_v48  ;;  %4001 = vmatprep.mubr.msk.f32.mxu1 %vm5704_vm0, %v5705_v1  ;;  %v4821_v8 = vpack.c.bf16 %v1835_v7, %v1834_v5 }
 0x230   :  { %4712 = vmatprep.subr.bf16.mxu1 %v5703_v0 }
 0x233   :  { %4714 = vmatpush3.bf16.msra.mxu1 %v6276_v49 }
 0x234   :  { %4715 = vmatprep.subr.bf16.mxu1 %v5703_v0 }
 0x237   :  { %4717 = vmatpush3.bf16.msra.mxu1 %v6282_v54 }
 0x238   :  { %4718 = vmatprep.subr.bf16.mxu1 %v5703_v0 }
 0x23b   :  { %4720 = vmatpush3.bf16.msra.mxu1 %v6286_v56 }
 0x23c   :  { %4721 = vmatprep.subr.bf16.mxu1 %v5703_v0 }
 0x23f   :  { %4723 = vmatpush3.bf16.msra.mxu1 %v6290_v59 }
 0x240   :  { %4724 = vmatprep.subr.bf16.mxu1 %v5703_v0 }
 0x243   :  { %4726 = vmatpush3.bf16.msra.mxu1 %v6294_v62 }
 0x244   :  { %4727 = vmatprep.subr.bf16.mxu1 %v5703_v0 }
 0x247   :  { %4729 = vmatpush3.bf16.msra.mxu1 %v6298_v3 }
 0x248   :  { %4730 = vmatprep.subr.bf16.mxu1 %v5703_v0 }
 0x24b   :  { %4732 = vmatpush3.bf16.msra.mxu1 %v6302_v6 }
 0x24c   :  { %4757 = vmatprep.subr.bf16.mxu1 %v5703_v0 }
 0x24e   :  { %4002 = vmatmul.mubr.f32.vlgmr.msra.gmra.mrb[12].mxu1 %v1474_v21  ;;  %v1839_v21 = vld [vmem:[#allocation19 + $0x78] sm:$0xff] }
 0x24f   :  { %4759 = vmatpush3.bf16.msra.mxu1 %v6267_v48  ;;  %4071 = vmatprep.mubr.msk.f32.mxu1 %vm5704_vm0, %v5705_v1  ;;  %v4827_v22 = vpack.c.bf16 %v1839_v21, %v1838_v20 }
 0x250   :  { %4760 = vmatprep.subr.bf16.mxu1 %v5703_v0 }
 0x253   :  { %4762 = vmatpush3.bf16.msra.mxu1 %v6276_v49 }
 0x254   :  { %4763 = vmatprep.subr.bf16.mxu1 %v5703_v0 }
 0x257   :  { %4765 = vmatpush3.bf16.msra.mxu1 %v6282_v54 }
 0x258   :  { %4766 = vmatprep.subr.bf16.mxu1 %v5703_v0 }
 0x25b   :  { %4768 = vmatpush3.bf16.msra.mxu1 %v6286_v56 }
 0x25c   :  { %4769 = vmatprep.subr.bf16.mxu1 %v5703_v0 }
 0x25f   :  { %4771 = vmatpush3.bf16.msra.mxu1 %v6290_v59 }
 0x260   :  { %v411_v36 = vpop.f32.mrb[0].mxu0  ;;  %4772 = vmatprep.subr.bf16.mxu1 %v5703_v0 }
 0x261   :  { %v6347_v38 = vadd.f32 %v3061_v35, %v411_v36  ;;  %v482_v25 = vpop.f32.mrb[0].mxu1  ;;  %v3583_v39 = vpop.f32.mrb[1].mxu0 }
 0x262   :  { %v3618_v40 = vpop.f32.mrb[1].mxu1 }
 0x263   :  { %v483_v41 = vadd.f32 %v482_v25, %v6347_v38  ;;  %4774 = vmatpush3.bf16.msra.mxu1 %v6294_v62 }
 0x264   :  { %4775 = vmatprep.subr.bf16.mxu1 %v5703_v0 }
 0x265   :  { %5158 = vtanh.f32 %v483_v41 }
 0x267   :  { %4777 = vmatpush3.bf16.msra.mxu1 %v6298_v3 }
 0x268   :  { %4778 = vmatprep.subr.bf16.mxu1 %v5703_v0 }
 0x26b   :  { %4780 = vmatpush3.bf16.msra.mxu1 %v6302_v6 }
 0x26c   :  { %4805 = vmatprep.subr.bf16.mxu1 %v5703_v0 }
 0x26e   :  { %4072 = vmatmul.mubr.f32.vlgmr.msra.gmra.mrb[14].mxu1 %v1626_v31 }
 0x26f   :  { %v5159_v43 = vpop.eup %5158  ;;  %4807 = vmatpush3.bf16.msra.mxu1 %v4806_v45  ;;  %4141 = vmatprep.mubr.msk.f32.mxu1 %vm5704_vm0, %v5705_v1 }
 0x270   :  { %v493_v53 = vmul.f32 %v5159_v43, %v6360_v51  ;;  %4808 = vmatprep.subr.bf16.mxu1 %v5703_v0  ;;  %v1125_v43 = vlaneseq }
 0x272   :  { %494 = vadd.xlane.f32.xlu0 %v493_v53 }
 0x273   :  { %4810 = vmatpush3.bf16.msra.mxu1 %v4809_v52  ;;  %v6385_v52 = vshrl.u32 %v1125_v43, 7 }
 0x274   :  { %4811 = vmatprep.subr.bf16.mxu1 %v5703_v0 }
 0x275   :  { %v6388_v53 = vsub.s32 0, %v6385_v52  ;;  %v6394_v55 = vsub.s32 1, %v6385_v52 }
 0x277   :  { %4813 = vmatpush3.bf16.msra.mxu1 %v4812_v57  ;;  %v1128_v57 = vrot.slane %v1123_v50, %v6388_v53  ;;  %v1132_v58 = vrot.slane %v1123_v50, %v6394_v55 }
 0x278   :  { %4814 = vmatprep.subr.bf16.mxu1 %v5703_v0 }
 0x27b   :  { %4816 = vmatpush3.bf16.msra.mxu1 %v4815_v61  ;;  %v1841_v61 = vld [vmem:[#allocation20 + $0x8] sm:$0xff] }
 0x27c   :  { %4817 = vmatprep.subr.bf16.mxu1 %v5703_v0 }
 0x27f   :  { %4819 = vmatpush3.bf16.msra.mxu1 %v4818_v4 }
 0x280   :  { %v564_v10 = vpop.f32.mrb[2].mxu0  ;;  %4820 = vmatprep.subr.bf16.mxu1 %v5703_v0 }
 0x281   :  { %v565_v14 = vadd.f32 %v564_v10, %v6347_v38  ;;  %v640_v15 = vpop.f32.mrb[2].mxu1  ;;  %v3653_v16 = vpop.f32.mrb[3].mxu0  ;;  %v6399_v10 = vpack.c.bf16 %v1841_v61, %v1840_v60 }
 0x282   :  { %v641_v9 = vadd.f32 %v640_v15, %v6347_v38  ;;  %v3688_v17 = vpop.f32.mrb[3].mxu1  ;;  %v1845_v16 = vld [vmem:[#allocation20 + $0x28] sm:$0xff] }
 0x283   :  { %5160 = vtanh.f32 %v565_v14  ;;  %4822 = vmatpush3.bf16.msra.mxu1 %v4821_v8  ;;  %v1843_v14 = vld [vmem:[#allocation20 + $0x18] sm:$0xff]  ;;  %v1846_v17 = vld [vmem:[#allocation20 + $0x30] sm:$0xff] }
 0x284   :  { %5162 = vtanh.f32 %v641_v9  ;;  %4823 = vmatprep.subr.bf16.mxu1 %v5703_v0  ;;  %v6404_v15 = vpack.c.bf16 %v1843_v14, %v1842_v12 }
 0x287   :  { %4825 = vmatpush3.bf16.msra.mxu1 %v4824_v18  ;;  %v1847_v18 = vld [vmem:[#allocation20 + $0x38] sm:$0xff] }
 0x288   :  { %4826 = vmatprep.subr.bf16.mxu1 %v5703_v0  ;;  %v6420_v21 = vpack.c.bf16 %v1847_v18, %v1846_v17 }
 0x28b   :  { %4828 = vmatpush3.bf16.msra.mxu1 %v4827_v22 }
 0x28c   :  { %4853 = vmatprep.subr.bf16.mxu1 %v5703_v0 }
 0x28d   :  { %v5161_v23 = vpop.eup %5160 }
 0x28e   :  { %v5163_v24 = vpop.eup %5162  ;;  %v569_v26 = vmul.f32 %v5161_v23, %v6360_v51  ;;  %v1848_v23 = vld [vmem:[#allocation20 + $0x40] sm:$0xff] }
 0x28f   :  { %v645_v13 = vmul.f32 %v5163_v24, %v6360_v51  ;;  %v1849_v24 = vld [vmem:[#allocation20 + $0x48] sm:$0xff] }
 0x290   :  { %570 = vadd.xlane.f32.xlu0 %v569_v26  ;;  %v6427_v26 = vpack.c.bf16 %v1849_v24, %v1848_v23 }
 0x291   :  { %646 = vadd.xlane.f32.xlu1 %v645_v13  ;;  %v1850_v13 = vld [vmem:[#allocation20 + $0x50] sm:$0xff] }
 0x2a0   :  { %v716_v27 = vpop.f32.mrb[4].mxu0 }
 0x2a1   :  { %v717_v28 = vadd.f32 %v716_v27, %v6347_v38  ;;  %v792_v29 = vpop.f32.mrb[4].mxu1  ;;  %v3723_v30 = vpop.f32.mrb[5].mxu0  ;;  %v1851_v27 = vld [vmem:[#allocation20 + $0x58] sm:$0xff] }
 0x2a2   :  { %v793_v32 = vadd.f32 %v792_v29, %v6347_v38  ;;  %v3758_v19 = vpop.f32.mrb[5].mxu1  ;;  %v1853_v29 = vld [vmem:[#allocation20 + $0x68] sm:$0xff] }
 0x2a3   :  { %5164 = vtanh.f32 %v717_v28  ;;  %v1852_v28 = vld [vmem:[#allocation20 + $0x60] sm:$0xff]  ;;  %v1855_v19 = vld [vmem:[#allocation20 + $0x78] sm:$0xff] }
 0x2a4   :  { %5166 = vtanh.f32 %v793_v32  ;;  %v6439_v30 = vpack.c.bf16 %v1853_v29, %v1852_v28  ;;  %v1854_v32 = vld [vmem:[#allocation20 + $0x70] sm:$0xff] }
 0x2ad   :  { %v5165_v33 = vpop.eup %5164 }
 0x2ae   :  { %v5167_v34 = vpop.eup %5166  ;;  %v721_v35 = vmul.f32 %v5165_v33, %v6360_v51  ;;  %v6445_v33 = vpack.c.bf16 %v1855_v19, %v1854_v32 }
 0x2af   :  { %v797_v36 = vmul.f32 %v5167_v34, %v6360_v51  ;;  %v1398_v34 = vld [vmem:[#allocation8 + $0x8] sm:$0xff] }
 0x2b0   :  { %722 = vadd.xlane.f32.xlu1 %v721_v35  ;;  %v2016_v35 = vld [vmem:[#allocation10 + $0x8] sm:$0xff] }
 0x2b1   :  { %798 = vadd.xlane.f32.xlu0 %v797_v36 }
 0x2c0   :  { %v868_v25 = vpop.f32.mrb[6].mxu0 }
 0x2c1   :  { %v869_v39 = vadd.f32 %v868_v25, %v6347_v38  ;;  %v944_v40 = vpop.f32.mrb[6].mxu1  ;;  %v3793_v41 = vpop.f32.mrb[7].mxu0 }
 0x2c2   :  { %v945_v42 = vadd.f32 %v944_v40, %v6347_v38  ;;  %v3828_v44 = vpop.f32.mrb[7].mxu1  ;;  %v6493_v41 = vld [vmem:[#allocation10 + $0x18] sm:$0xff] }
 0x2c3   :  { %5168 = vtanh.f32 %v869_v39  ;;  %v6487_v39 = vld [vmem:[#allocation8 + $0x18] sm:$0xff] }
 0x2c4   :  { %5170 = vtanh.f32 %v945_v42 }
 0x2cd   :  { %v5169_v31 = vpop.eup %5168 }
 0x2ce   :  { %v5171_v45 = vpop.eup %5170  ;;  %v873_v46 = vmul.f32 %v5169_v31, %v6360_v51 }
 0x2cf   :  { %v949_v47 = vmul.f32 %v5171_v45, %v6360_v51 }
 0x2d0   :  { %874 = vadd.xlane.f32.xlu1 %v873_v46 }
 0x2d1   :  { %950 = vadd.xlane.f32.xlu0 %v949_v47 }
 0x2e0   :  { %v1020_v63 = vpop.f32.mrb[8].mxu0 }
 0x2e1   :  { %v1021_v2 = vadd.f32 %v1020_v63, %v6347_v38  ;;  %v1201_v4 = vpop.f32.mrb[8].mxu1  ;;  %v3863_v5 = vpop.f32.mrb[9].mxu0  ;;  %v1844_v38 = vld [vmem:[#allocation20 + $0x20] sm:$0xff] }
 0x2e2   :  { %v1202_v7 = vadd.f32 %v1201_v4, %v1128_v57  ;;  %v1203_v8 = vpop.f32.mrb[9].mxu1  ;;  %v6414_v9 = vpack.c.bf16 %v1845_v16, %v1844_v38 }
 0x2e3   :  { %5172 = vtanh.f32 %v1021_v2  ;;  %v1204_v11 = vadd.f32 %v1203_v8, %v1132_v58 }
 0x2e4   :  { %3897 = vmatmul.mubr.f32.vlgmr.msra.gmra.mrb[10].mxu0 %v1202_v7  ;;  %v6558_v7 = vld [vmem:[#allocation10 + $0x10] sm:$0xff] }
 0x2e5   :  { %4687 = vmatpush3.bf16.msra.mxu0 %v6267_v48  ;;  %4142 = vmatmul.mubr.f32.vlgmr.msra.gmra.mrb[16].mxu1 %v1204_v11 }
 0x2e6   :  { %4855 = vmatpush3.bf16.msra.mxu1 %v6399_v10  ;;  %4688 = vmatprep.subr.bf16.mxu0 %v5703_v0 }
 0x2e7   :  { %4856 = vmatprep.subr.bf16.mxu1 %v5703_v0  ;;  %3966 = vmatprep.mubr.msk.f32.mxu0 %vm5704_vm0, %v5705_v1 }
 0x2e8   :  { %4211 = vmatprep.mubr.msk.f32.mxu1 %vm5704_vm0, %v5705_v1 }
 0x2e9   :  { %4690 = vmatpush3.bf16.msra.mxu0 %v6276_v49 }
 0x2ea   :  { %4858 = vmatpush3.bf16.msra.mxu1 %v6404_v15  ;;  %4691 = vmatprep.subr.bf16.mxu0 %v5703_v0 }
 0x2eb   :  { %4859 = vmatprep.subr.bf16.mxu1 %v5703_v0 }
 0x2ed   :  { %v5173_v20 = vpop.eup %5172  ;;  %4693 = vmatpush3.bf16.msra.mxu0 %v6282_v54 }
 0x2ee   :  { %4861 = vmatpush3.bf16.msra.mxu1 %v6414_v9  ;;  %4694 = vmatprep.subr.bf16.mxu0 %v5703_v0  ;;  %v1025_v22 = vmul.f32 %v5173_v20, %v6360_v51  ;;  %v6433_v51 = vpack.c.bf16 %v1851_v27, %v1850_v13 }
 0x2ef   :  { %4862 = vmatprep.subr.bf16.mxu1 %v5703_v0 }
 0x2f0   :  { %1026 = vadd.xlane.f32.xlu1 %v1025_v22 }
 0x2f1   :  { %4696 = vmatpush3.bf16.msra.mxu0 %v6286_v56 }
 0x2f2   :  { %4864 = vmatpush3.bf16.msra.mxu1 %v6420_v21  ;;  %4697 = vmatprep.subr.bf16.mxu0 %v5703_v0 }
 0x2f3   :  { %4865 = vmatprep.subr.bf16.mxu1 %v5703_v0 }
 0x2f5   :  { %4699 = vmatpush3.bf16.msra.mxu0 %v6290_v59 }
 0x2f6   :  { %4867 = vmatpush3.bf16.msra.mxu1 %v6427_v26  ;;  %4700 = vmatprep.subr.bf16.mxu0 %v5703_v0 }
 0x2f7   :  { %4868 = vmatprep.subr.bf16.mxu1 %v5703_v0 }
 0x2f9   :  { %4702 = vmatpush3.bf16.msra.mxu0 %v6294_v62 }
 0x2fa   :  { %4870 = vmatpush3.bf16.msra.mxu1 %v6433_v51  ;;  %4703 = vmatprep.subr.bf16.mxu0 %v5703_v0 }
 0x2fb   :  { %4871 = vmatprep.subr.bf16.mxu1 %v5703_v0 }
 0x2fd   :  { %4705 = vmatpush3.bf16.msra.mxu0 %v6298_v3 }
 0x2fe   :  { %4873 = vmatpush3.bf16.msra.mxu1 %v6439_v30  ;;  %4706 = vmatprep.subr.bf16.mxu0 %v5703_v0 }
 0x2ff   :  { %4874 = vmatprep.subr.bf16.mxu1 %v5703_v0 }
 0x301   :  { %4708 = vmatpush3.bf16.msra.mxu0 %v6302_v6  ;;  %v6483_v36 = vpop.f32.mrb[10].mxu1 }
 0x302   :  { %4876 = vmatpush3.bf16.msra.mxu1 %v6445_v33  ;;  %4733 = vmatprep.subr.bf16.mxu0 %v5703_v0  ;;  %v3933_v25 = vpop.f32.mrb[11].mxu1 }
 0x303   :  { %4901 = vmatprep.subr.bf16.mxu1 %v5703_v0 }
 0x304   :  { %3967 = vmatmul.mubr.f32.vlgmr.msra.gmra.mrb[12].mxu0 %v1398_v34 }
 0x305   :  { %4735 = vmatpush3.bf16.msra.mxu0 %v6267_v48  ;;  %4212 = vmatmul.mubr.f32.vlgmr.msra.gmra.mrb[18].mxu1 %v2016_v35 }
 0x306   :  { %4903 = vmatpush3.bf16.msra.mxu1 %v6399_v10  ;;  %4736 = vmatprep.subr.bf16.mxu0 %v5703_v0 }
 0x307   :  { %4904 = vmatprep.subr.bf16.mxu1 %v5703_v0  ;;  %4036 = vmatprep.mubr.msk.f32.mxu0 %vm5704_vm0, %v5705_v1 }
 0x308   :  { %4281 = vmatprep.mubr.msk.f32.mxu1 %vm5704_vm0, %v5705_v1 }
 0x309   :  { %4738 = vmatpush3.bf16.msra.mxu0 %v6276_v49 }
 0x30a   :  { %4906 = vmatpush3.bf16.msra.mxu1 %v6404_v15  ;;  %4739 = vmatprep.subr.bf16.mxu0 %v5703_v0 }
 0x30b   :  { %4907 = vmatprep.subr.bf16.mxu1 %v5703_v0 }
 0x30d   :  { %4741 = vmatpush3.bf16.msra.mxu0 %v6282_v54 }
 0x30e   :  { %4909 = vmatpush3.bf16.msra.mxu1 %v6414_v9  ;;  %4742 = vmatprep.subr.bf16.mxu0 %v5703_v0 }
 0x30f   :  { %4910 = vmatprep.subr.bf16.mxu1 %v5703_v0 }
 0x311   :  { %4744 = vmatpush3.bf16.msra.mxu0 %v6286_v56 }
 0x312   :  { %4912 = vmatpush3.bf16.msra.mxu1 %v6420_v21  ;;  %4745 = vmatprep.subr.bf16.mxu0 %v5703_v0 }
 0x313   :  { %4913 = vmatprep.subr.bf16.mxu1 %v5703_v0 }
 0x315   :  { %4747 = vmatpush3.bf16.msra.mxu0 %v6290_v59 }
 0x316   :  { %4915 = vmatpush3.bf16.msra.mxu1 %v6427_v26  ;;  %4748 = vmatprep.subr.bf16.mxu0 %v5703_v0 }
 0x317   :  { %4916 = vmatprep.subr.bf16.mxu1 %v5703_v0 }
 0x319   :  { %4750 = vmatpush3.bf16.msra.mxu0 %v6294_v62 }
 0x31a   :  { %4918 = vmatpush3.bf16.msra.mxu1 %v6433_v51  ;;  %4751 = vmatprep.subr.bf16.mxu0 %v5703_v0 }
 0x31b   :  { %4919 = vmatprep.subr.bf16.mxu1 %v5703_v0 }
 0x31d   :  { %4753 = vmatpush3.bf16.msra.mxu0 %v6298_v3 }
 0x31e   :  { %4921 = vmatpush3.bf16.msra.mxu1 %v6439_v30  ;;  %4754 = vmatprep.subr.bf16.mxu0 %v5703_v0 }
 0x31f   :  { %4922 = vmatprep.subr.bf16.mxu1 %v5703_v0 }
 0x321   :  { %4756 = vmatpush3.bf16.msra.mxu0 %v6302_v6  ;;  %v6489_v40 = vpop.f32.mrb[12].mxu1 }
 0x322   :  { %4924 = vmatpush3.bf16.msra.mxu1 %v6445_v33  ;;  %4781 = vmatprep.subr.bf16.mxu0 %v5703_v0  ;;  %v4003_v42 = vpop.f32.mrb[13].mxu1 }
 0x324   :  { %4037 = vmatmul.mubr.f32.vlgmr.msra.gmra.mrb[14].mxu0 %v6487_v39 }
 0x325   :  { %4783 = vmatpush3.bf16.msra.mxu0 %v6267_v48  ;;  %4282 = vmatmul.mubr.f32.vlgmr.msra.gmra.mrb[20].mxu1 %v6493_v41  ;;  %v6514_v48 = vld [vmem:[#allocation8 + $0x28] sm:$0xff] }
 0x326   :  { %4784 = vmatprep.subr.bf16.mxu0 %v5703_v0  ;;  %4106 = vmatprep.mubr.msk.f32.mxu0 %vm5704_vm0, %v5705_v1 }
 0x329   :  { %4786 = vmatpush3.bf16.msra.mxu0 %v6276_v49 }
 0x32a   :  { %4787 = vmatprep.subr.bf16.mxu0 %v5703_v0 }
 0x32d   :  { %4789 = vmatpush3.bf16.msra.mxu0 %v6282_v54 }
 0x32e   :  { %4790 = vmatprep.subr.bf16.mxu0 %v5703_v0 }
 0x331   :  { %4792 = vmatpush3.bf16.msra.mxu0 %v6286_v56  ;;  %v6537_v56 = vld [vmem:[#allocation10] sm:$0xff] }
 0x332   :  { %4793 = vmatprep.subr.bf16.mxu0 %v5703_v0 }
 0x335   :  { %4795 = vmatpush3.bf16.msra.mxu0 %v6290_v59  ;;  %v495_v59 = vpop.xlane.xlu0 %494 }
 0x336   :  { %4796 = vmatprep.subr.bf16.mxu0 %v5703_v0 }
 0x339   :  { %4798 = vmatpush3.bf16.msra.mxu0 %v6294_v62  ;;  %v571_v62 = vpop.xlane.xlu0 %570 }
 0x33a   :  { %4799 = vmatprep.subr.bf16.mxu0 %v5703_v0 }
 0x33d   :  { %4801 = vmatpush3.bf16.msra.mxu0 %v6298_v3  ;;  %v647_v3 = vpop.xlane.xlu1 %646 }
 0x33e   :  { %4802 = vmatprep.subr.bf16.mxu0 %v5703_v0  ;;  %v799_v46 = vpop.xlane.xlu0 %798 }
 0x341   :  { %4804 = vmatpush3.bf16.msra.mxu0 %v6302_v6  ;;  %v6516_v49 = vpop.f32.mrb[14].mxu1  ;;  %v1028_v6 = vmax.f32 %v495_v59, %v571_v62  ;;  %v723_v44 = vpop.xlane.xlu1 %722 }
 0x342   :  { %4829 = vmatprep.subr.bf16.mxu0 %v5703_v0  ;;  %v4073_v54 = vpop.f32.mrb[15].mxu1 }
 0x343   :  { %v1029_v31 = vmax.f32 %v1028_v6, %v647_v3 }
 0x344   :  { %4107 = vmatmul.mubr.f32.vlgmr.msra.gmra.mrb[16].mxu0 %v6514_v48 }
 0x345   :  { %4831 = vmatpush3.bf16.msra.mxu0 %v6399_v10  ;;  %4176 = vmatprep.mubr.msk.f32.mxu0 %vm5704_vm0, %v5705_v1  ;;  %v1030_v45 = vmax.f32 %v1029_v31, %v723_v44 }
 0x346   :  { %4832 = vmatprep.subr.bf16.mxu0 %v5703_v0 }
 0x347   :  { %v1031_v43 = vmax.f32 %v1030_v45, %v799_v46  ;;  %v5252_v45 = vld [vmem:[#allocation7 + $0x10] sm:$0xff] }
 0x349   :  { %4834 = vmatpush3.bf16.msra.mxu0 %v6404_v15 }
 0x34a   :  { %4835 = vmatprep.subr.bf16.mxu0 %v5703_v0 }
 0x34d   :  { %4837 = vmatpush3.bf16.msra.mxu0 %v6414_v9 }
 0x34e   :  { %4838 = vmatprep.subr.bf16.mxu0 %v5703_v0 }
 0x351   :  { %4840 = vmatpush3.bf16.msra.mxu0 %v6420_v21 }
 0x352   :  { %4841 = vmatprep.subr.bf16.mxu0 %v5703_v0 }
 0x355   :  { %4843 = vmatpush3.bf16.msra.mxu0 %v6427_v26 }
 0x356   :  { %4844 = vmatprep.subr.bf16.mxu0 %v5703_v0 }
 0x359   :  { %4846 = vmatpush3.bf16.msra.mxu0 %v6433_v51 }
 0x35a   :  { %4847 = vmatprep.subr.bf16.mxu0 %v5703_v0 }
 0x35d   :  { %4849 = vmatpush3.bf16.msra.mxu0 %v6439_v30  ;;  %v875_v47 = vpop.xlane.xlu1 %874 }
 0x35e   :  { %4850 = vmatprep.subr.bf16.mxu0 %v5703_v0  ;;  %v1032_v50 = vmax.f32 %v1031_v43, %v875_v47  ;;  %v951_v57 = vpop.xlane.xlu0 %950 }
 0x360   :  { %v1033_v58 = vmax.f32 %v1032_v50, %v951_v57  ;;  %v5253_v50 = vld [vmem:[#allocation7 + $0x18] sm:$0xff] }
 0x361   :  { %4852 = vmatpush3.bf16.msra.mxu0 %v6445_v33 }
 0x362   :  { %4877 = vmatprep.subr.bf16.mxu0 %v5703_v0 }
 0x364   :  { %4177 = vmatmul.mubr.f32.vlgmr.msra.gmra.mrb[18].mxu0 %v6537_v56 }
 0x365   :  { %4879 = vmatpush3.bf16.msra.mxu0 %v6399_v10  ;;  %4246 = vmatprep.mubr.msk.f32.mxu0 %vm5704_vm0, %v5705_v1 }
 0x366   :  { %4880 = vmatprep.subr.bf16.mxu0 %v5703_v0 }
 0x369   :  { %4882 = vmatpush3.bf16.msra.mxu0 %v6404_v15 }
 0x36a   :  { %4883 = vmatprep.subr.bf16.mxu0 %v5703_v0 }
 0x36d   :  { %4885 = vmatpush3.bf16.msra.mxu0 %v6414_v9 }
 0x36e   :  { %4886 = vmatprep.subr.bf16.mxu0 %v5703_v0 }
 0x371   :  { %4888 = vmatpush3.bf16.msra.mxu0 %v6420_v21 }
 0x372   :  { %4889 = vmatprep.subr.bf16.mxu0 %v5703_v0 }
 0x375   :  { %4891 = vmatpush3.bf16.msra.mxu0 %v6427_v26 }
 0x376   :  { %4892 = vmatprep.subr.bf16.mxu0 %v5703_v0 }
 0x379   :  { %4894 = vmatpush3.bf16.msra.mxu0 %v6433_v51 }
 0x37a   :  { %4895 = vmatprep.subr.bf16.mxu0 %v5703_v0 }
 0x37d   :  { %4897 = vmatpush3.bf16.msra.mxu0 %v6439_v30  ;;  %v1027_v60 = vpop.xlane.xlu1 %1026 }
 0x37e   :  { %v1034_v61 = vmax.f32 %v1033_v58, %v1027_v60  ;;  %4898 = vmatprep.subr.bf16.mxu0 %v5703_v0 }
 0x380   :  { %v1035_v63 = vsub.f32 %v495_v59, %v1034_v61  ;;  %v1038_v2 = vsub.f32 %v571_v62, %v1034_v61  ;;  %v1041_v4 = vsub.f32 %v647_v3, %v1034_v61  ;;  %v1044_v5 = vsub.f32 %v723_v44, %v1034_v61  ;;  %v5250_v59 = vld [vmem:[#allocation7] sm:$0xff]  ;;  %v5251_v3 = vld [vmem:[#allocation7 + $0x8] sm:$0xff] }
 0x381   :  { %4900 = vmatpush3.bf16.msra.mxu0 %v6445_v33  ;;  %v1047_v12 = vsub.f32 %v799_v46, %v1034_v61  ;;  %v1050_v15 = vsub.f32 %v875_v47, %v1034_v61  ;;  %v1053_v16 = vsub.f32 %v951_v57, %v1034_v61  ;;  %v1056_v17 = vsub.f32 %v1027_v60, %v1034_v61  ;;  %v5254_v61 = vld [vmem:[#allocation7 + $0x20] sm:$0xff] }
 0x382   :  { %v1036_v8 = vmul.f32 1.442695, %v1035_v63  ;;  %v1039_v10 = vmul.f32 1.442695, %v1038_v2  ;;  %v1042_v11 = vmul.f32 1.442695, %v1041_v4 }
 0x383   :  { %v1045_v14 = vmul.f32 1.442695, %v1044_v5  ;;  %v1048_v38 = vmul.f32 1.442695, %v1047_v12  ;;  %v1051_v9 = vmul.f32 1.442695, %v1050_v15 }
 0x384   :  { %5174 = vpow2.f32 %v1036_v8  ;;  %4247 = vmatmul.mubr.f32.vlgmr.msra.gmra.mrb[20].mxu0 %v6558_v7  ;;  %v1054_v18 = vmul.f32 1.442695, %v1053_v16  ;;  %v1057_v20 = vmul.f32 1.442695, %v1056_v17  ;;  %v5255_v5 = vld [vmem:[#allocation7 + $0x28] sm:$0xff] }
 0x385   :  { %5176 = vpow2.f32 %v1039_v10 }
 0x386   :  { %5178 = vpow2.f32 %v1042_v11  ;;  %v3063_v11 = vld [vmem:[%s6673_s13] ss:$0 sm:$0xff] }
 0x387   :  { %5180 = vpow2.f32 %v1045_v14  ;;  %v5256_v14 = vld [vmem:[#allocation7 + $0x30] sm:$0xff] }
 0x388   :  { %5182 = vpow2.f32 %v1048_v38 }
 0x389   :  { %5184 = vpow2.f32 %v1051_v9 }
 0x38a   :  { %5186 = vpow2.f32 %v1054_v18 }
 0x38b   :  { %5188 = vpow2.f32 %v1057_v20 }
 0x38e   :  { %v5175_v21 = vpop.eup %5174 }
 0x38f   :  { %v5177_v22 = vpop.eup %5176 }
 0x390   :  { %v1059_v23 = vadd.f32 %v5177_v22, %v5175_v21  ;;  %v5179_v24 = vpop.eup %5178 }
 0x391   :  { %v5181_v13 = vpop.eup %5180 }
 0x392   :  { %v1060_v26 = vadd.f32 %v5179_v24, %v1059_v23  ;;  %v5183_v51 = vpop.eup %5182 }
 0x393   :  { %v5185_v29 = vpop.eup %5184 }
 0x394   :  { %v1061_v27 = vadd.f32 %v5181_v13, %v1060_v26  ;;  %v5187_v32 = vpop.eup %5186 }
 0x395   :  { %v5189_v33 = vpop.eup %5188 }
 0x396   :  { %v1062_v28 = vadd.f32 %v5183_v51, %v1061_v27 }
 0x398   :  { %v1063_v30 = vadd.f32 %v5185_v29, %v1062_v28 }
 0x39a   :  { %v1064_v19 = vadd.f32 %v5187_v32, %v1063_v30 }
 0x39c   :  { %v1065_v34 = vadd.f32 %v5189_v33, %v1064_v19 }
 0x39e   :  { %5190 = vrcp.f32 %v1065_v34 }
 0x3a8   :  { %v5191_v35 = vpop.eup %5190 }
 0x3a9   :  { %v1068_v25 = vmul.f32 %v5191_v35, %v5175_v21  ;;  %v1070_v42 = vmul.f32 %v5191_v35, %v5177_v22  ;;  %v1073_v54 = vmul.f32 %v5191_v35, %v5179_v24  ;;  %v1076_v44 = vmul.f32 %v5191_v35, %v5181_v13  ;;  %v3064_v13 = vld [vmem:[%s6674_s14] ss:$0 sm:$0xff] }
 0x3aa   :  { %v1079_v47 = vmul.f32 %v5191_v35, %v5183_v51  ;;  %v1082_v58 = vmul.f32 %v5191_v35, %v5185_v29  ;;  %v1085_v2 = vmul.f32 %v5191_v35, %v5187_v32  ;;  %v1088_v10 = vmul.f32 %v5191_v35, %v5189_v33 }
 0x3ab   :  { %v1069_v62 = vmul.f32 %v5250_v59, %v1068_v25  ;;  %v1071_v6 = vmul.f32 %v5251_v3, %v1070_v42  ;;  %v1074_v46 = vmul.f32 %v5252_v45, %v1073_v54  ;;  %v1077_v57 = vmul.f32 %v5253_v50, %v1076_v44 }
 0x3ac   :  { %v1080_v63 = vmul.f32 %v5254_v61, %v1079_v47  ;;  %v1083_v8 = vmul.f32 %v5255_v5, %v1082_v58  ;;  %v1086_v15 = vmul.f32 %v5256_v14, %v1085_v2  ;;  %v1089_v9 = vmul.f32 %v1088_v10, %v6265_v37 }
 0x3ad   :  { %v1072_v31 = vadd.f32 %v1071_v6, %v1069_v62 }
 0x3af   :  { %v1075_v43 = vadd.f32 %v1074_v46, %v1072_v31 }
 0x3b1   :  { %v1078_v60 = vadd.f32 %v1077_v57, %v1075_v43 }
 0x3b3   :  { %v1081_v4 = vadd.f32 %v1080_v63, %v1078_v60  ;;  %v3066_v60 = vld [vmem:[%s6678_s18] ss:$0 sm:$0xff] }
 0x3b5   :  { %v1084_v12 = vadd.f32 %v1083_v8, %v1081_v4 }
 0x3b7   :  { %v1312_v38 = vpop.f32.mrb[10].mxu0  ;;  %v1087_v16 = vadd.f32 %v1086_v15, %v1084_v12 }
 0x3b8   :  { %v1313_v17 = vadd.f32 %v3063_v11, %v1312_v38  ;;  %v3898_v18 = vpop.f32.mrb[11].mxu0  ;;  %v1930_v20 = vpop.f32.mrb[16].mxu1 }
 0x3b9   :  { %v4143_v21 = vpop.f32.mrb[17].mxu1  ;;  %v1090_v22 = vadd.f32 %v1089_v9, %v1087_v16  ;;  %v2290_v9 = vld [vmem:[#allocation22 + $0x80] sm:$0xff] }
 0x3ba   :  { %v1384_v23 = vadd.f32 %v6483_v36, %v1313_v17  ;;  %v1542_v24 = vadd.f32 %v6489_v40, %v1313_v17  ;;  %v1694_v26 = vadd.f32 %v6516_v49, %v1313_v17  ;;  %v3065_v40 = vld [vmem:[%s6677_s17] ss:$0 sm:$0xff]  ;;  %v2275_v21 = vld [vmem:[#allocation22 + $0x8] sm:$0xff] }
 0x3bb   :  { %2409 = vmatprep.mubr.f32.mxu0 %v1090_v22  ;;  %v1931_v30 = vadd.f32 %v3065_v40, %v1930_v20  ;;  %v2274_v20 = vld [vmem:[#allocation22] sm:$0xff] }
 0x3bc   :  { %5192 = vtanh.f32 %v1384_v23  ;;  %v4927_v22 = vpack.c.bf16 %v2275_v21, %v2274_v20  ;;  %v2322_v23 = vld [vmem:[#allocation22 + $0x180] sm:$0xff]  ;;  %v2301_v20 = vld [vmem:[#allocation22 + $0xd8] sm:$0xff] }
 0x3bd   :  { %5194 = vtanh.f32 %v1542_v24  ;;  %v2323_v24 = vld [vmem:[#allocation22 + $0x188] sm:$0xff] }
 0x3be   :  { %5196 = vtanh.f32 %v1694_v26  ;;  %v4957_v26 = vpack.c.bf16 %v2323_v24, %v2322_v23  ;;  %v2314_v23 = vld [vmem:[#allocation22 + $0x140] sm:$0xff]  ;;  %v2315_v24 = vld [vmem:[#allocation22 + $0x148] sm:$0xff] }
 0x3c0   :  { %4958 = vmatprep.subr.bf16.mxu1 %v4957_v26  ;;  %v2284_v26 = vld [vmem:[#allocation22 + $0x50] sm:$0xff] }
 0x3c6   :  { %v5193_v37 = vpop.eup %5192 }
 0x3c7   :  { %v1394_v27 = vmul.f32 %v5193_v37, %v3064_v13  ;;  %v5195_v51 = vpop.eup %5194  ;;  %v2293_v37 = vld [vmem:[#allocation22 + $0x98] sm:$0xff] }
 0x3c8   :  { %v1546_v28 = vmul.f32 %v5195_v51, %v3064_v13  ;;  %v5197_v29 = vpop.eup %5196 }
 0x3c9   :  { %1395 = vadd.xlane.f32.xlu0 %v1394_v27  ;;  %v1698_v36 = vmul.f32 %v5197_v29, %v3064_v13  ;;  %v2306_v27 = vld [vmem:[#allocation22 + $0x100] sm:$0xff]  ;;  %v2276_v29 = vld [vmem:[#allocation22 + $0x10] sm:$0xff] }
 0x3cd   :  { %1547 = vadd.xlane.f32.xlu0 %v1546_v28  ;;  %v2307_v28 = vld [vmem:[#allocation22 + $0x108] sm:$0xff] }
 0x3ce   :  { %v4959_v40 = vpack.c.bf16 %v2307_v28, %v2306_v27  ;;  %v2333_v27 = vld [vmem:[#allocation22 + $0x1d8] sm:$0xff] }
 0x3d0   :  { %4960 = vmatpush3.bf16.msra.mxu1 %v4959_v40  ;;  %v2316_v40 = vld [vmem:[#allocation22 + $0x150] sm:$0xff] }
 0x3d1   :  { %1699 = vadd.xlane.f32.xlu0 %v1698_v36  ;;  %v2277_v36 = vld [vmem:[#allocation22 + $0x18] sm:$0xff] }
 0x3d7   :  { %v1465_v49 = vpop.f32.mrb[12].mxu0 }
 0x3d8   :  { %v1466_v32 = vadd.f32 %v1465_v49, %v1313_v17  ;;  %v3968_v19 = vpop.f32.mrb[13].mxu0  ;;  %v2083_v33 = vpop.f32.mrb[18].mxu1  ;;  %v2324_v49 = vld [vmem:[#allocation22 + $0x190] sm:$0xff] }
 0x3d9   :  { %v2084_v34 = vadd.f32 %v2083_v33, %v1931_v30  ;;  %v4213_v35 = vpop.f32.mrb[19].mxu1  ;;  %v2294_v33 = vld [vmem:[#allocation22 + $0xa0] sm:$0xff] }
 0x3da   :  { %5198 = vtanh.f32 %v1466_v32  ;;  %v2325_v32 = vld [vmem:[#allocation22 + $0x198] sm:$0xff]  ;;  %v2308_v35 = vld [vmem:[#allocation22 + $0x110] sm:$0xff] }
 0x3db   :  { %v4961_v19 = vpack.c.bf16 %v2325_v32, %v2324_v49  ;;  %v2317_v32 = vld [vmem:[#allocation22 + $0x158] sm:$0xff] }
 0x3dd   :  { %4962 = vmatprep.subr.bf16.mxu1 %v4961_v19  ;;  %v2286_v19 = vld [vmem:[#allocation22 + $0x60] sm:$0xff] }
 0x3e4   :  { %v5199_v25 = vpop.eup %5198 }
 0x3e5   :  { %v1470_v42 = vmul.f32 %v5199_v25, %v3064_v13 }
 0x3e7   :  { %1471 = vadd.xlane.f32.xlu1 %v1470_v42  ;;  %v2309_v42 = vld [vmem:[#allocation22 + $0x118] sm:$0xff] }
 0x3f7   :  { %v1617_v54 = vpop.f32.mrb[14].mxu0 }
 0x3f8   :  { %v1618_v59 = vadd.f32 %v1617_v54, %v1313_v17  ;;  %v4038_v62 = vpop.f32.mrb[15].mxu0  ;;  %v2235_v3 = vpop.f32.mrb[20].mxu1  ;;  %v2278_v54 = vld [vmem:[#allocation22 + $0x20] sm:$0xff] }
 0x3f9   :  { %v2236_v6 = vadd.f32 %v2235_v3, %v1931_v30  ;;  %v4283_v44 = vpop.f32.mrb[21].mxu1  ;;  %v4963_v62 = vpack.c.bf16 %v2309_v42, %v2308_v35  ;;  %v2335_v35 = vld [vmem:[#allocation22 + $0x1e8] sm:$0xff]  ;;  %v2305_v42 = vld [vmem:[#allocation22 + $0xf8] sm:$0xff] }
 0x3fa   :  { %5200 = vtanh.f32 %v1618_v59  ;;  %v2279_v59 = vld [vmem:[#allocation22 + $0x28] sm:$0xff] }
 0x3fb   :  { %v4935_v3 = vpack.c.bf16 %v2279_v59, %v2278_v54  ;;  %v2327_v44 = vld [vmem:[#allocation22 + $0x1a8] sm:$0xff]  ;;  %4964 = vmatpush3.bf16.msra.mxu1 %v4963_v62  ;;  %v4979_v54 = vpack.c.bf16 %v2317_v32, %v2316_v40  ;;  %v2318_v62 = vld [vmem:[#allocation22 + $0x160] sm:$0xff]  ;;  %v2517_v32 = vld [vmem:[#allocation23 + $0xf8] sm:$0xff] }
 0x404   :  { %v5201_v31 = vpop.eup %5200 }
 0x405   :  { %v1622_v45 = vmul.f32 %v5201_v31, %v3064_v13 }
 0x407   :  { %1623 = vadd.xlane.f32.xlu1 %v1622_v45  ;;  %v2296_v45 = vld [vmem:[#allocation22 + $0xb0] sm:$0xff] }
 0x417   :  { %v1769_v46 = vpop.f32.mrb[16].mxu0 }
 0x418   :  { %v1770_v47 = vadd.f32 %v1769_v46, %v1313_v17  ;;  %v4108_v43 = vpop.f32.mrb[17].mxu0  ;;  %v2291_v17 = vld [vmem:[#allocation22 + $0x88] sm:$0xff]  ;;  %v2297_v46 = vld [vmem:[#allocation22 + $0xb8] sm:$0xff] }
 0x419   :  { %v4925_v18 = vpack.c.bf16 %v2291_v17, %v2290_v9  ;;  %v4937_v43 = vpack.c.bf16 %v2297_v46, %v2296_v45  ;;  %v2331_v17 = vld [vmem:[#allocation22 + $0x1c8] sm:$0xff]  ;;  %v2289_v45 = vld [vmem:[#allocation22 + $0x78] sm:$0xff]  ;;  %v2336_v46 = vld [vmem:[#allocation22 + $0x1f0] sm:$0xff] }
 0x41a   :  { %5202 = vtanh.f32 %v1770_v47  ;;  %v2310_v47 = vld [vmem:[#allocation22 + $0x120] sm:$0xff] }
 0x41b   :  { %5204 = vtanh.f32 %v2084_v34  ;;  %4926 = vmatprep.subr.bf16.mxu0 %v4925_v18  ;;  %v2295_v34 = vld [vmem:[#allocation22 + $0xa8] sm:$0xff]  ;;  %v2300_v18 = vld [vmem:[#allocation22 + $0xd0] sm:$0xff] }
 0x41c   :  { %5206 = vtanh.f32 %v2236_v6  ;;  %4928 = vmatpush3.bf16.msra.mxu0 %v4927_v22  ;;  %v4933_v25 = vpack.c.bf16 %v2295_v34, %v2294_v33  ;;  %v2326_v6 = vld [vmem:[#allocation22 + $0x1a0] sm:$0xff]  ;;  %v4945_v22 = vpack.c.bf16 %v2301_v20, %v2300_v18  ;;  %v2287_v33 = vld [vmem:[#allocation22 + $0x68] sm:$0xff] }
 0x41d   :  { %v4965_v31 = vpack.c.bf16 %v2327_v44, %v2326_v6  ;;  %v2334_v34 = vld [vmem:[#allocation22 + $0x1e0] sm:$0xff]  ;;  %v4951_v59 = vpack.c.bf16 %v2287_v33, %v2286_v19  ;;  %v2319_v44 = vld [vmem:[#allocation22 + $0x168] sm:$0xff]  ;;  %v2520_v19 = vld [vmem:[#allocation23 + $0x110] sm:$0xff] }
 0x41e   :  { %v2502_v18 = vld [vmem:[#allocation23 + $0x80] sm:$0xff]  ;;  %v2516_v33 = vld [vmem:[#allocation23 + $0xf0] sm:$0xff] }
 0x41f   :  { %4966 = vmatprep.subr.bf16.mxu1 %v4965_v31  ;;  %v2288_v31 = vld [vmem:[#allocation22 + $0x70] sm:$0xff]  ;;  %v2498_v20 = vld [vmem:[#allocation23 + $0x60] sm:$0xff] }
 0x424   :  { %v5203_v50 = vpop.eup %5202 }
 0x425   :  { %v1774_v57 = vmul.f32 %v5203_v50, %v3064_v13  ;;  %v5205_v58 = vpop.eup %5204  ;;  %v2292_v13 = vld [vmem:[#allocation22 + $0x90] sm:$0xff]  ;;  %v2311_v50 = vld [vmem:[#allocation22 + $0x128] sm:$0xff] }
 0x426   :  { %v2088_v61 = vmul.f32 %v5205_v58, %v3066_v60  ;;  %v5207_v63 = vpop.eup %5206  ;;  %v4929_v51 = vpack.c.bf16 %v2293_v37, %v2292_v13  ;;  %v2281_v58 = vld [vmem:[#allocation22 + $0x38] sm:$0xff]  ;;  %v2332_v37 = vld [vmem:[#allocation22 + $0x1d0] sm:$0xff] }
 0x427   :  { %1775 = vadd.xlane.f32.xlu1 %v1774_v57  ;;  %v2240_v2 = vmul.f32 %v5207_v63, %v3066_v60  ;;  %v2280_v57 = vld [vmem:[#allocation22 + $0x30] sm:$0xff]  ;;  %v2285_v13 = vld [vmem:[#allocation22 + $0x58] sm:$0xff] }
 0x428   :  { %4930 = vmatprep.subr.bf16.mxu0 %v4929_v51  ;;  %v2328_v63 = vld [vmem:[#allocation22 + $0x1b0] sm:$0xff]  ;;  %v4975_v51 = vpack.c.bf16 %v2315_v24, %v2314_v23  ;;  %v4947_v28 = vpack.c.bf16 %v2285_v13, %v2284_v26  ;;  %v2505_v24 = vld [vmem:[#allocation23 + $0x98] sm:$0xff] }
 0x429   :  { %v2508_v26 = vld [vmem:[#allocation23 + $0xb0] sm:$0xff] }
 0x42a   :  { %v2504_v13 = vld [vmem:[#allocation23 + $0x90] sm:$0xff] }
 0x42b   :  { %2089 = vadd.xlane.f32.xlu1 %v2088_v61  ;;  %v4939_v61 = vpack.c.bf16 %v2281_v58, %v2280_v57  ;;  %v2320_v58 = vld [vmem:[#allocation22 + $0x170] sm:$0xff] }
 0x42f   :  { %2241 = vadd.xlane.f32.xlu1 %v2240_v2  ;;  %v2329_v2 = vld [vmem:[#allocation22 + $0x1b8] sm:$0xff] }
 0x437   :  { %v2001_v4 = vpop.f32.mrb[18].mxu0 }
 0x438   :  { %v2002_v5 = vadd.f32 %v2001_v4, %v1931_v30  ;;  %v4178_v8 = vpop.f32.mrb[19].mxu0  ;;  %v2298_v4 = vld [vmem:[#allocation22 + $0xc0] sm:$0xff] }
 0x439   :  { %v2299_v8 = vld [vmem:[#allocation22 + $0xc8] sm:$0xff] }
 0x43a   :  { %5208 = vtanh.f32 %v2002_v5  ;;  %v4969_v5 = vpack.c.bf16 %v2329_v2, %v2328_v63  ;;  %v2487_v2 = vld [vmem:[#allocation23 + $0x8] sm:$0xff] }
 0x444   :  { %v5209_v10 = vpop.eup %5208 }
 0x445   :  { %v2012_v11 = vmul.f32 %v5209_v10, %v3066_v60  ;;  %v2312_v10 = vld [vmem:[#allocation22 + $0x130] sm:$0xff] }
 0x447   :  { %2013 = vadd.xlane.f32.xlu0 %v2012_v11  ;;  %v2313_v11 = vld [vmem:[#allocation22 + $0x138] sm:$0xff] }
 0x457   :  { %v2159_v12 = vpop.f32.mrb[20].mxu0 }
 0x458   :  { %v2160_v14 = vadd.f32 %v2159_v12, %v1931_v30  ;;  %v4248_v15 = vpop.f32.mrb[21].mxu0  ;;  %v4931_v30 = vpack.c.bf16 %v2277_v36, %v2276_v29  ;;  %v4941_v12 = vpack.c.bf16 %v2299_v8, %v2298_v4  ;;  %v2302_v29 = vld [vmem:[#allocation22 + $0xe0] sm:$0xff]  ;;  %v2303_v36 = vld [vmem:[#allocation22 + $0xe8] sm:$0xff] }
 0x459   :  { %v2282_v15 = vld [vmem:[#allocation22 + $0x40] sm:$0xff]  ;;  %v4949_v49 = vpack.c.bf16 %v2303_v36, %v2302_v29 }
 0x45a   :  { %5210 = vtanh.f32 %v2160_v14  ;;  %4932 = vmatpush3.bf16.msra.mxu0 %v4931_v30  ;;  %v4971_v14 = vpack.c.bf16 %v2313_v11, %v2312_v10  ;;  %v4977_v30 = vpack.c.bf16 %v2333_v27, %v2332_v37  ;;  %v2490_v4 = vld [vmem:[#allocation23 + $0x20] sm:$0xff]  ;;  %v2489_v10 = vld [vmem:[#allocation23 + $0x18] sm:$0xff]  ;;  %v5001_v37 = vpack.c.bf16 %v2508_v26, %v2505_v24  ;;  %v2507_v27 = vld [vmem:[#allocation23 + $0xa8] sm:$0xff] }
 0x45b   :  { %4934 = vmatprep.subr.bf16.mxu0 %v4933_v25  ;;  %v2304_v25 = vld [vmem:[#allocation22 + $0xf0] sm:$0xff]  ;;  %v4989_v8 = vpack.c.bf16 %v2490_v4, %v2487_v2  ;;  %v2514_v29 = vld [vmem:[#allocation23 + $0xe0] sm:$0xff] }
 0x45c   :  { %v4953_v6 = vpack.c.bf16 %v2305_v42, %v2304_v25  ;;  %v2510_v36 = vld [vmem:[#allocation23 + $0xc0] sm:$0xff]  ;;  %v1396_v42 = vpop.xlane.xlu0 %1395 }
 0x45e   :  { %4936 = vmatpush3.bf16.msra.mxu0 %v4935_v3  ;;  %v4981_v3 = vpack.c.bf16 %v2335_v35, %v2334_v34  ;;  %v2519_v34 = vld [vmem:[#allocation23 + $0x108] sm:$0xff]  ;;  %v5009_v35 = vpack.c.bf16 %v2520_v19, %v2517_v32  ;;  %v2526_v19 = vld [vmem:[#allocation23 + $0x140] sm:$0xff] }
 0x45f   :  { %4938 = vmatprep.subr.bf16.mxu0 %v4937_v43  ;;  %v4983_v43 = vpack.c.bf16 %v2319_v44, %v2318_v62  ;;  %v5011_v25 = vpack.c.bf16 %v2519_v34, %v2516_v33  ;;  %v2523_v32 = vld [vmem:[#allocation23 + $0x128] sm:$0xff] }
 0x460   :  { %v1548_v62 = vpop.xlane.xlu0 %1547  ;;  %v5013_v34 = vpack.c.bf16 %v2526_v19, %v2523_v32  ;;  %v2515_v32 = vld [vmem:[#allocation23 + $0xe8] sm:$0xff] }
 0x462   :  { %4940 = vmatpush3.bf16.msra.mxu0 %v4939_v61  ;;  %v303_v61 = vld [vmem:[#allocation2] sm:$0xff] }
 0x463   :  { %4942 = vmatprep.subr.bf16.mxu0 %v4941_v12  ;;  %v2493_v12 = vld [vmem:[#allocation23 + $0x38] sm:$0xff] }
 0x464   :  { %v5211_v38 = vpop.eup %5210 }
 0x465   :  { %v2164_v16 = vmul.f32 %v5211_v38, %v3066_v60  ;;  %v4967_v60 = vpack.c.bf16 %v2311_v50, %v2310_v47  ;;  %v2283_v38 = vld [vmem:[#allocation22 + $0x48] sm:$0xff]  ;;  %v2337_v47 = vld [vmem:[#allocation22 + $0x1f8] sm:$0xff]  ;;  %v4955_v50 = vpack.c.bf16 %v2289_v45, %v2288_v31  ;;  %v1700_v31 = vpop.xlane.xlu0 %1699 }
 0x466   :  { %v4943_v9 = vpack.c.bf16 %v2283_v38, %v2282_v15  ;;  %v4985_v57 = vpack.c.bf16 %v2337_v47, %v2336_v46  ;;  %v2492_v15 = vld [vmem:[#allocation23 + $0x30] sm:$0xff] }
 0x467   :  { %2165 = vadd.xlane.f32.xlu0 %v2164_v16  ;;  %4968 = vmatpush3.bf16.msra.mxu1 %v4967_v60  ;;  %v2330_v16 = vld [vmem:[#allocation22 + $0x1c0] sm:$0xff]  ;;  %v2321_v60 = vld [vmem:[#allocation22 + $0x178] sm:$0xff] }
 0x468   :  { %4970 = vmatprep.subr.bf16.mxu1 %v4969_v5  ;;  %v4973_v21 = vpack.c.bf16 %v2331_v17, %v2330_v16  ;;  %4944 = vmatpush3.bf16.msra.mxu0 %v4943_v9  ;;  %v4987_v63 = vpack.c.bf16 %v2321_v60, %v2320_v58  ;;  %v2486_v5 = vld [vmem:[#allocation23] sm:$0xff]  ;;  %v2495_v16 = vld [vmem:[#allocation23 + $0x48] sm:$0xff] }
 0x469   :  { %4946 = vmatprep.subr.bf16.mxu0 %v4945_v22  ;;  %v4991_v11 = vpack.c.bf16 %v2489_v10, %v2486_v5  ;;  %v4995_v9 = vpack.c.bf16 %v2495_v16, %v2492_v15  ;;  %v2499_v17 = vld [vmem:[#allocation23 + $0x68] sm:$0xff]  ;;  %v2501_v22 = vld [vmem:[#allocation23 + $0x78] sm:$0xff] }
 0x46a   :  { %v4999_v23 = vpack.c.bf16 %v2501_v22, %v2498_v20 }
 0x46b   :  { %4972 = vmatpush3.bf16.msra.mxu1 %v4971_v14  ;;  %v2496_v14 = vld [vmem:[#allocation23 + $0x50] sm:$0xff] }
 0x46c   :  { %4974 = vmatprep.subr.bf16.mxu1 %v4973_v21  ;;  %4948 = vmatpush3.bf16.msra.mxu0 %v4947_v28  ;;  %v4993_v38 = vpack.c.bf16 %v2496_v14, %v2493_v12  ;;  %v4997_v21 = vpack.c.bf16 %v2502_v18, %v2499_v17  ;;  %v2511_v28 = vld [vmem:[#allocation23 + $0xc8] sm:$0xff] }
 0x46d   :  { %4950 = vmatprep.subr.bf16.mxu0 %v4949_v49  ;;  %v5005_v40 = vpack.c.bf16 %v2514_v29, %v2511_v28 }
 0x46f   :  { %4976 = vmatpush3.bf16.msra.mxu1 %v4975_v51  ;;  %v5003_v51 = vpack.c.bf16 %v2507_v27, %v2504_v13 }
 0x470   :  { %4978 = vmatprep.subr.bf16.mxu1 %v4977_v30  ;;  %4952 = vmatpush3.bf16.msra.mxu0 %v4951_v59  ;;  %v2513_v30 = vld [vmem:[#allocation23 + $0xd8] sm:$0xff] }
 0x471   :  { %4954 = vmatprep.subr.bf16.mxu0 %v4953_v6  ;;  %v5007_v49 = vpack.c.bf16 %v2513_v30, %v2510_v36 }
 0x473   :  { %4980 = vmatpush3.bf16.msra.mxu1 %v4979_v54 }
 0x474   :  { %4982 = vmatprep.subr.bf16.mxu1 %v4981_v3  ;;  %4956 = vmatpush3.bf16.msra.mxu0 %v4955_v50  ;;  %v1472_v54 = vpop.xlane.xlu1 %1471 }
 0x475   :  { %4990 = vmatprep.subr.bf16.mxu0 %v4989_v8  ;;  %v1777_v59 = vmax.f32 %v1396_v42, %v1472_v54 }
 0x477   :  { %4984 = vmatpush3.bf16.msra.mxu1 %v4983_v43  ;;  %2410 = vmatmul.mubr.f32.vlgmr.msra.gmra.mrb[22].mxu0 %v303_v61  ;;  %v1778_v6 = vmax.f32 %v1777_v59, %v1548_v62 }
 0x478   :  { %4986 = vmatprep.subr.bf16.mxu1 %v4985_v57  ;;  %2615 = vmatprep.mubr.f32.mxu0 %v5705_v1 }
 0x479   :  { %4992 = vmatpush1.bf16.msra.mxu0 %v4991_v11 }
 0x47a   :  { %4994 = vmatprep.subr.bf16.mxu0 %v4993_v38 }
 0x47b   :  { %4988 = vmatpush3.bf16.msra.mxu1 %v4987_v63 }
 0x47c   :  { %5021 = vmatprep.subr.bf16.mxu1 %v5703_v0 }
 0x47d   :  { %4996 = vmatpush1.bf16.msra.mxu0 %v4995_v9 }
 0x47e   :  { %4998 = vmatprep.subr.bf16.mxu0 %v4997_v21 }
 0x481   :  { %5000 = vmatpush1.bf16.msra.mxu0 %v4999_v23 }
 0x482   :  { %5002 = vmatprep.subr.bf16.mxu0 %v5001_v37 }
 0x485   :  { %5004 = vmatpush1.bf16.msra.mxu0 %v5003_v51 }
 0x486   :  { %5006 = vmatprep.subr.bf16.mxu0 %v5005_v40 }
 0x489   :  { %5008 = vmatpush1.bf16.msra.mxu0 %v5007_v49 }
 0x48a   :  { %5010 = vmatprep.subr.bf16.mxu0 %v5009_v35 }
 0x48d   :  { %5012 = vmatpush1.bf16.msra.mxu0 %v5011_v25 }
 0x48e   :  { %5014 = vmatprep.subr.bf16.mxu0 %v5013_v34  ;;  %v2521_v34 = vld [vmem:[#allocation23 + $0x118] sm:$0xff] }
 0x494   :  { %v1624_v3 = vpop.xlane.xlu1 %1623 }
 0x495   :  { %v1779_v44 = vmax.f32 %v1778_v6, %v1624_v3 }
 0x497   :  { %v1780_v46 = vmax.f32 %v1779_v44, %v1700_v31 }
 0x4b4   :  { %v1776_v45 = vpop.xlane.xlu1 %1775 }
 0x4b5   :  { %v1781_v47 = vmax.f32 %v1780_v46, %v1776_v45 }
 0x4b7   :  { %v1782_v43 = vsub.f32 %v1396_v42, %v1781_v47  ;;  %v1785_v50 = vsub.f32 %v1472_v54, %v1781_v47  ;;  %v1788_v60 = vsub.f32 %v1548_v62, %v1781_v47  ;;  %v1791_v63 = vsub.f32 %v1624_v3, %v1781_v47 }
 0x4b8   :  { %v1794_v4 = vsub.f32 %v1700_v31, %v1781_v47  ;;  %v1797_v11 = vsub.f32 %v1776_v45, %v1781_v47  ;;  %v2090_v17 = vpop.xlane.xlu1 %2089  ;;  %v5257_v45 = vld [vmem:[#allocation8] sm:$0xff]  ;;  %v5258_v47 = vld [vmem:[#allocation8 + $0x8] sm:$0xff] }
 0x4b9   :  { %v1783_v57 = vmul.f32 1.442695, %v1782_v43  ;;  %v1786_v58 = vmul.f32 1.442695, %v1785_v50  ;;  %v1789_v61 = vmul.f32 1.442695, %v1788_v60 }
 0x4ba   :  { %v1792_v2 = vmul.f32 1.442695, %v1791_v63  ;;  %v1795_v10 = vmul.f32 1.442695, %v1794_v4  ;;  %v1798_v14 = vmul.f32 1.442695, %v1797_v11 }
 0x4bb   :  { %5212 = vpow2.f32 %v1783_v57 }
 0x4bc   :  { %5214 = vpow2.f32 %v1786_v58  ;;  %v2242_v26 = vpop.xlane.xlu1 %2241  ;;  %v5259_v58 = vld [vmem:[#allocation8 + $0x10] sm:$0xff] }
 0x4bd   :  { %5216 = vpow2.f32 %v1789_v61 }
 0x4be   :  { %5218 = vpow2.f32 %v1792_v2 }
 0x4bf   :  { %5220 = vpow2.f32 %v1795_v10 }
 0x4c0   :  { %5222 = vpow2.f32 %v1798_v14 }
 0x4c5   :  { %v5213_v5 = vpop.eup %5212 }
 0x4c6   :  { %v5215_v8 = vpop.eup %5214 }
 0x4c7   :  { %v1800_v12 = vadd.f32 %v5215_v8, %v5213_v5  ;;  %v5217_v15 = vpop.eup %5216 }
 0x4c8   :  { %v5219_v16 = vpop.eup %5218 }
 0x4c9   :  { %v1801_v38 = vadd.f32 %v5217_v15, %v1800_v12  ;;  %v5221_v20 = vpop.eup %5220 }
 0x4ca   :  { %v5223_v13 = vpop.eup %5222 }
 0x4cb   :  { %v1802_v9 = vadd.f32 %v5219_v16, %v1801_v38  ;;  %v5260_v38 = vld [vmem:[#allocation10 + $0x8] sm:$0xff] }
 0x4cd   :  { %v1803_v22 = vadd.f32 %v5221_v20, %v1802_v9 }
 0x4cf   :  { %v1804_v27 = vadd.f32 %v5223_v13, %v1803_v22 }
 0x4d1   :  { %5224 = vrcp.f32 %v1804_v27 }
 0x4d4   :  { %v2014_v18 = vpop.xlane.xlu0 %2013 }
 0x4d5   :  { %v2243_v21 = vmax.f32 %v2014_v18, %v2090_v17 }
 0x4db   :  { %v5225_v35 = vpop.eup %5224 }
 0x4dc   :  { %v1807_v3 = vmul.f32 %v5225_v35, %v5213_v5  ;;  %v1809_v6 = vmul.f32 %v5225_v35, %v5215_v8  ;;  %v1812_v50 = vmul.f32 %v5225_v35, %v5217_v15  ;;  %v1815_v61 = vmul.f32 %v5225_v35, %v5219_v16 }
 0x4dd   :  { %v1818_v10 = vmul.f32 %v5225_v35, %v5221_v20 }
 0x4de   :  { %v1808_v46 = vmul.f32 %v5257_v45, %v1807_v3  ;;  %v1810_v43 = vmul.f32 %v5258_v47, %v1809_v6  ;;  %v1813_v60 = vmul.f32 %v5259_v58, %v1812_v50  ;;  %v1816_v4 = vmul.f32 %v1815_v61, %v6487_v39  ;;  %v2524_v3 = vld [vmem:[#allocation23 + $0x130] sm:$0xff]  ;;  %v2527_v6 = vld [vmem:[#allocation23 + $0x148] sm:$0xff]  ;;  %v2529_v45 = vld [vmem:[#allocation23 + $0x158] sm:$0xff] }
 0x4df   :  { %v2531_v50 = vld [vmem:[#allocation23 + $0x168] sm:$0xff]  ;;  %v2530_v58 = vld [vmem:[#allocation23 + $0x160] sm:$0xff] }
 0x4e0   :  { %v1811_v57 = vadd.f32 %v1810_v43, %v1808_v46  ;;  %v2532_v46 = vld [vmem:[#allocation23 + $0x170] sm:$0xff]  ;;  %v2693_v61 = vld [vmem:[#allocation25 + $0x8] sm:$0xff] }
 0x4e1   :  { %v5017_v47 = vpack.c.bf16 %v2532_v46, %v2529_v45  ;;  %v2528_v43 = vld [vmem:[#allocation23 + $0x150] sm:$0xff]  ;;  %v2723_v45 = vld [vmem:[#allocation25 + $0xf8] sm:$0xff] }
 0x4e2   :  { %v1814_v63 = vadd.f32 %v1813_v60, %v1811_v57  ;;  %v5019_v57 = vpack.c.bf16 %v2531_v50, %v2528_v43  ;;  %v2533_v60 = vld [vmem:[#allocation23 + $0x178] sm:$0xff]  ;;  %v2726_v46 = vld [vmem:[#allocation25 + $0x110] sm:$0xff] }
 0x4e3   :  { %v2722_v43 = vld [vmem:[#allocation25 + $0xf0] sm:$0xff] }
 0x4e4   :  { %v1817_v12 = vadd.f32 %v1816_v4, %v1814_v63  ;;  %v5043_v63 = vpack.c.bf16 %v2533_v60, %v2530_v58  ;;  %v2725_v58 = vld [vmem:[#allocation25 + $0x108] sm:$0xff]  ;;  %v2724_v60 = vld [vmem:[#allocation25 + $0x100] sm:$0xff] }
 0x4f4   :  { %v2166_v23 = vpop.xlane.xlu0 %2165 }
 0x4f5   :  { %v2244_v24 = vmax.f32 %v2243_v21, %v2166_v23  ;;  %v1821_v21 = vmul.f32 %v5225_v35, %v5223_v13 }
 0x4f7   :  { %v2245_v37 = vmax.f32 %v2244_v24, %v2242_v26  ;;  %v2488_v24 = vld [vmem:[#allocation23 + $0x10] sm:$0xff] }
 0x4f9   :  { %v2246_v51 = vsub.f32 %v2014_v18, %v2245_v37  ;;  %v2249_v28 = vsub.f32 %v2090_v17, %v2245_v37  ;;  %v2252_v29 = vsub.f32 %v2166_v23, %v2245_v37  ;;  %v2255_v36 = vsub.f32 %v2242_v26, %v2245_v37  ;;  %v5261_v18 = vld [vmem:[#allocation8 + $0x20] sm:$0xff]  ;;  %v2491_v26 = vld [vmem:[#allocation23 + $0x28] sm:$0xff] }
 0x4fa   :  { %v1819_v15 = vmul.f32 %v5261_v18, %v1818_v10  ;;  %v1822_v37 = vmul.f32 %v1821_v21, %v6514_v48  ;;  %v2506_v48 = vld [vmem:[#allocation23 + $0xa0] sm:$0xff]  ;;  %v2699_v18 = vld [vmem:[#allocation25 + $0x38] sm:$0xff] }
 0x4fb   :  { %v2247_v40 = vmul.f32 1.442695, %v2246_v51  ;;  %v2250_v30 = vmul.f32 1.442695, %v2249_v28  ;;  %v2253_v49 = vmul.f32 1.442695, %v2252_v29  ;;  %v5022_v51 = vpack.c.bf16 %v2491_v26, %v2488_v24 }
 0x4fc   :  { %v2256_v33 = vmul.f32 1.442695, %v2255_v36  ;;  %v1820_v23 = vadd.f32 %v1819_v15, %v1817_v12  ;;  %v2494_v28 = vld [vmem:[#allocation23 + $0x40] sm:$0xff]  ;;  %v2497_v29 = vld [vmem:[#allocation23 + $0x58] sm:$0xff]  ;;  %v2503_v36 = vld [vmem:[#allocation23 + $0x88] sm:$0xff] }
 0x4fd   :  { %5226 = vpow2.f32 %v2247_v40  ;;  %v5025_v13 = vpack.c.bf16 %v2497_v29, %v2494_v28  ;;  %v2509_v40 = vld [vmem:[#allocation23 + $0xb8] sm:$0xff]  ;;  %v3067_v10 = vld [vmem:[%s6680_s20] ss:$0 sm:$0xff]  ;;  %v2702_v15 = vld [vmem:[#allocation25 + $0x50] sm:$0xff] }
 0x4fe   :  { %5228 = vpow2.f32 %v2250_v30  ;;  %v5031_v30 = vpack.c.bf16 %v2509_v40, %v2506_v48  ;;  %v2692_v12 = vld [vmem:[#allocation25] sm:$0xff]  ;;  %v5049_v26 = vpack.c.bf16 %v2702_v15, %v2699_v18  ;;  %v2711_v48 = vld [vmem:[#allocation25 + $0x98] sm:$0xff]  ;;  %v2714_v40 = vld [vmem:[#allocation25 + $0xb0] sm:$0xff] }
 0x4ff   :  { %5230 = vpow2.f32 %v2253_v49  ;;  %v2512_v49 = vld [vmem:[#allocation23 + $0xd0] sm:$0xff]  ;;  %v2704_v28 = vld [vmem:[#allocation25 + $0x60] sm:$0xff] }
 0x500   :  { %5232 = vpow2.f32 %v2256_v33  ;;  %v5034_v19 = vpack.c.bf16 %v2515_v32, %v2512_v49  ;;  %v2518_v33 = vld [vmem:[#allocation23 + $0x100] sm:$0xff]  ;;  %v2710_v49 = vld [vmem:[#allocation25 + $0x90] sm:$0xff] }
 0x501   :  { %v5037_v35 = vpack.c.bf16 %v2521_v34, %v2518_v33  ;;  %v2713_v33 = vld [vmem:[#allocation25 + $0xa8] sm:$0xff]  ;;  %v2712_v34 = vld [vmem:[#allocation25 + $0xa0] sm:$0xff]  ;;  %v2734_v18 = vld [vmem:[#allocation25 + $0x150] sm:$0xff] }
 0x507   :  { %v5227_v25 = vpop.eup %5226 }
 0x508   :  { %v5229_v42 = vpop.eup %5228 }
 0x509   :  { %v2258_v54 = vadd.f32 %v5229_v42, %v5227_v25  ;;  %v5231_v59 = vpop.eup %5230 }
 0x50a   :  { %v5233_v44 = vpop.eup %5232 }
 0x50b   :  { %v2259_v62 = vadd.f32 %v5231_v59, %v2258_v54 }
 0x50d   :  { %v2260_v31 = vadd.f32 %v5233_v44, %v2259_v62 }
 0x50f   :  { %5234 = vrcp.f32 %v2260_v31  ;;  %v5040_v31 = vpack.c.bf16 %v2527_v6, %v2524_v3  ;;  %v2719_v6 = vld [vmem:[#allocation25 + $0xd8] sm:$0xff] }
 0x519   :  { %v5235_v2 = vpop.eup %5234 }
 0x51a   :  { %v2263_v11 = vmul.f32 %v5235_v2, %v5227_v25  ;;  %v2265_v5 = vmul.f32 %v5235_v2, %v5229_v42  ;;  %v2268_v8 = vmul.f32 %v5235_v2, %v5231_v59  ;;  %v2271_v17 = vmul.f32 %v5235_v2, %v5233_v44  ;;  %v2522_v25 = vld [vmem:[#allocation23 + $0x120] sm:$0xff]  ;;  %v2525_v42 = vld [vmem:[#allocation23 + $0x138] sm:$0xff] }
 0x51b   :  { %v5015_v59 = vpack.c.bf16 %v2525_v42, %v2522_v25  ;;  %v2696_v2 = vld [vmem:[#allocation25 + $0x20] sm:$0xff]  ;;  %v2717_v25 = vld [vmem:[#allocation25 + $0xc8] sm:$0xff] }
 0x51c   :  { %v2264_v14 = vmul.f32 %v2263_v11, %v6537_v56  ;;  %v2266_v9 = vmul.f32 %v5260_v38, %v2265_v5  ;;  %v2269_v16 = vmul.f32 %v2268_v8, %v6558_v7  ;;  %v2272_v20 = vmul.f32 %v2271_v17, %v6493_v41  ;;  %v2500_v7 = vld [vmem:[#allocation23 + $0x70] sm:$0xff]  ;;  %v2695_v38 = vld [vmem:[#allocation25 + $0x18] sm:$0xff]  ;;  %v2697_v17 = vld [vmem:[#allocation25 + $0x28] sm:$0xff] }
 0x51d   :  { %v1823_v56 = vadd.f32 %v1822_v37, %v1820_v23  ;;  %v5028_v41 = vpack.c.bf16 %v2503_v36, %v2500_v7  ;;  %5016 = vmatpush1.bf16.msra.mxu0 %v5015_v59  ;;  %v5045_v4 = vpack.c.bf16 %v2696_v2, %v2693_v61  ;;  %v2703_v37 = vld [vmem:[#allocation25 + $0x58] sm:$0xff]  ;;  %v2706_v36 = vld [vmem:[#allocation25 + $0x70] sm:$0xff]  ;;  %v2720_v42 = vld [vmem:[#allocation25 + $0xe0] sm:$0xff] }
 0x51e   :  { %v2267_v22 = vadd.f32 %v2266_v9, %v2264_v14  ;;  %5018 = vmatprep.subr.bf16.mxu0 %v5017_v47  ;;  %v2694_v9 = vld [vmem:[#allocation25 + $0x10] sm:$0xff]  ;;  %v2707_v7 = vld [vmem:[#allocation25 + $0x78] sm:$0xff]  ;;  %v2716_v59 = vld [vmem:[#allocation25 + $0xc0] sm:$0xff]  ;;  %v5061_v3 = vpack.c.bf16 %v2720_v42, %v2717_v25 }
 0x51f   :  { %v5078_v23 = vpack.c.bf16 %v2697_v17, %v2694_v9  ;;  %v5063_v47 = vpack.c.bf16 %v2719_v6, %v2716_v59  ;;  %v2727_v61 = vld [vmem:[#allocation25 + $0x118] sm:$0xff]  ;;  %v2732_v2 = vld [vmem:[#allocation25 + $0x140] sm:$0xff]  ;;  %v2738_v9 = vld [vmem:[#allocation25 + $0x170] sm:$0xff] }
 0x520   :  { %v2270_v39 = vadd.f32 %v2269_v16, %v2267_v22  ;;  %v5047_v22 = vpack.c.bf16 %v2695_v38, %v2692_v12  ;;  %v2698_v16 = vld [vmem:[#allocation25 + $0x30] sm:$0xff]  ;;  %v2735_v38 = vld [vmem:[#allocation25 + $0x158] sm:$0xff]  ;;  %v2534_v6 = vld [vmem:[%s6683_s23] sm:$0x7] }
 0x521   :  { %5020 = vmatpush1.bf16.msra.mxu0 %v5019_v57  ;;  %v5065_v57 = vpack.c.bf16 %v2726_v46, %v2723_v45  ;;  %v2730_v12 = vld [vmem:[#allocation25 + $0x130] sm:$0xff]  ;;  %v2935_v42 = vld [vmem:[#allocation26 + $0x78] sm:$0xff]  ;;  %v2543_v45 = vrot.slane %v2534_v6, %v6394_v55 }
 0x522   :  { %v2273_v27 = vadd.f32 %v2272_v20, %v2270_v39  ;;  %5046 = vmatprep.subr.bf16.mxu0 %v5045_v4  ;;  %v2701_v39 = vld [vmem:[#allocation25 + $0x48] sm:$0xff]  ;;  %v2700_v20 = vld [vmem:[#allocation25 + $0x40] sm:$0xff]  ;;  %v5067_v4 = vpack.c.bf16 %v2725_v58, %v2722_v43  ;;  %v2934_v25 = vld [vmem:[#allocation26 + $0x70] sm:$0xff] }
 0x523   :  { %v5081_v29 = vpack.c.bf16 %v2703_v37, %v2700_v20  ;;  %v2920_v20 = vld [vmem:[#allocation26] sm:$0xff]  ;;  %v2921_v37 = vld [vmem:[#allocation26 + $0x8] sm:$0xff] }
 0x524   :  { %2479 = vmatprep.mubr.f32.mxu1 %v2273_v27  ;;  %v2705_v27 = vld [vmem:[#allocation25 + $0x68] sm:$0xff] }
 0x525   :  { %2480 = vmatmul.mubr.f32.vlgmr.msra.gmra.mrb[22].mxu1 %v1823_v56  ;;  %v5051_v56 = vpack.c.bf16 %v2701_v39, %v2698_v16  ;;  %v2736_v16 = vld [vmem:[#allocation25 + $0x160] sm:$0xff]  ;;  %v6608_v39 = vld [vmem:[#allocation5] sm:$0xff] }
 0x526   :  { %5023 = vmatpush3.bf16.msra.mxu1 %v5022_v51  ;;  %4316 = vmatprep.mubr.msk.f32.mxu1 %vm5704_vm0, %v5705_v1  ;;  %v2708_v51 = vld [vmem:[#allocation25 + $0x80] sm:$0xff] }
 0x527   :  { %5024 = vmatprep.subr.bf16.mxu1 %v5703_v0 }
 0x52a   :  { %5026 = vmatpush3.bf16.msra.mxu1 %v5025_v13  ;;  %v5053_v13 = vpack.c.bf16 %v2708_v51, %v2705_v27  ;;  %v5102_v27 = vpack.c.bf16 %v2921_v37, %v2920_v20  ;;  %v2922_v51 = vld [vmem:[#allocation26 + $0x10] sm:$0xff] }
 0x52b   :  { %5027 = vmatprep.subr.bf16.mxu1 %v5703_v0 }
 0x52e   :  { %5029 = vmatpush3.bf16.msra.mxu1 %v5028_v41  ;;  %v2709_v41 = vld [vmem:[#allocation25 + $0x88] sm:$0xff] }
 0x52f   :  { %5030 = vmatprep.subr.bf16.mxu1 %v5703_v0  ;;  %v5084_v32 = vpack.c.bf16 %v2709_v41, %v2706_v36  ;;  %v2926_v36 = vld [vmem:[#allocation26 + $0x30] sm:$0xff] }
 0x532   :  { %5032 = vmatpush3.bf16.msra.mxu1 %v5031_v30  ;;  %v5055_v30 = vpack.c.bf16 %v2707_v7, %v2704_v28 }
 0x533   :  { %5033 = vmatprep.subr.bf16.mxu1 %v5703_v0 }
 0x536   :  { %5035 = vmatpush3.bf16.msra.mxu1 %v5034_v19  ;;  %v5057_v19 = vpack.c.bf16 %v2714_v40, %v2711_v48  ;;  %v2928_v48 = vld [vmem:[#allocation26 + $0x40] sm:$0xff]  ;;  %v2929_v40 = vld [vmem:[#allocation26 + $0x48] sm:$0xff] }
 0x537   :  { %5036 = vmatprep.subr.bf16.mxu1 %v5703_v0 }
 0x53a   :  { %5038 = vmatpush3.bf16.msra.mxu1 %v5037_v35  ;;  %v2715_v35 = vld [vmem:[#allocation25 + $0xb8] sm:$0xff] }
 0x53b   :  { %5039 = vmatprep.subr.bf16.mxu1 %v5703_v0 }
 0x53e   :  { %5041 = vmatpush3.bf16.msra.mxu1 %v5040_v31  ;;  %v2721_v31 = vld [vmem:[#allocation25 + $0xe8] sm:$0xff] }
 0x53f   :  { %5042 = vmatprep.subr.bf16.mxu1 %v5703_v0 }
 0x542   :  { %5044 = vmatpush3.bf16.msra.mxu1 %v5043_v63  ;;  %v2729_v63 = vld [vmem:[#allocation25 + $0x128] sm:$0xff] }
 0x543   :  { %5077 = vmatprep.subr.bf16.mxu1 %v5703_v0 }
 0x54a   :  { %v3460_v54 = vpop.f32.mrb[22].mxu0 }
 0x54b   :  { %v3461_v62 = vpop.f32.mrb[23].mxu0 }
 0x54c   :  { %v3462_v44 = vadd.f32 %v3461_v62, %v3460_v54  ;;  %v5059_v54 = vpack.c.bf16 %v2713_v33, %v2710_v49  ;;  %v5087_v62 = vpack.c.bf16 %v2715_v35, %v2712_v34  ;;  %v5114_v49 = vpack.c.bf16 %v2929_v40, %v2928_v48  ;;  %v2932_v33 = vld [vmem:[#allocation26 + $0x60] sm:$0xff]  ;;  %v2933_v34 = vld [vmem:[#allocation26 + $0x68] sm:$0xff] }
 0x54d   :  { %v5120_v35 = vpack.c.bf16 %v2933_v34, %v2932_v33 }
 0x54e   :  { %v2412_v11 = vadd.f32 %v3462_v44, %v3067_v10  ;;  %v2718_v44 = vld [vmem:[#allocation25 + $0xd0] sm:$0xff]  ;;  %v2728_v10 = vld [vmem:[#allocation25 + $0x120] sm:$0xff] }
 0x54f   :  { %v5090_v50 = vpack.c.bf16 %v2721_v31, %v2718_v44  ;;  %v2539_v44 = vrot.slane %v2534_v6, %v6388_v53 }
 0x5f8   :  { %v3495_v5 = vpop.f32.mrb[22].mxu1 }
 0x5f9   :  { %v3496_v8 = vpop.f32.mrb[23].mxu1 }
 0x5fa   :  { %v3497_v14 = vadd.f32 %v3496_v8, %v3495_v5  ;;  %v5069_v5 = vpack.c.bf16 %v2732_v2, %v2729_v63  ;;  %v2731_v8 = vld [vmem:[#allocation25 + $0x138] sm:$0xff] }
 0x5fb   :  { %v5071_v17 = vpack.c.bf16 %v2731_v8, %v2728_v10 }
 0x5fc   :  { %v2482_v21 = vadd.f32 %v3497_v14, %v2412_v11  ;;  %v5093_v11 = vpack.c.bf16 %v2727_v61, %v2724_v60  ;;  %v2733_v14 = vld [vmem:[#allocation25 + $0x148] sm:$0xff] }
 0x5fd   :  { %v5096_v15 = vpack.c.bf16 %v2733_v14, %v2730_v12 }
 0x5fe   :  { %v2485_v24 = vmax.f32 %v2482_v21, 0.0  ;;  %v5073_v21 = vpack.c.bf16 %v2738_v9, %v2735_v38 }
 0x600   :  { %2616 = vmatmul.mubr.f32.vlgmr.msra.gmra.mrb[24].mxu0 %v2485_v24  ;;  %4317 = vmatmul.mubr.f32.vlgmr.msra.gmra.mrb[24].mxu1 %v2485_v24 }
 0x601   :  { %5048 = vmatpush1.bf16.msra.mxu0 %v5047_v22  ;;  %5079 = vmatpush3.bf16.msra.mxu1 %v5078_v23  ;;  %v2737_v22 = vld [vmem:[#allocation25 + $0x168] sm:$0xff]  ;;  %v2739_v23 = vld [vmem:[#allocation25 + $0x178] sm:$0xff] }
 0x602   :  { %5050 = vmatprep.subr.bf16.mxu0 %v5049_v26  ;;  %5080 = vmatprep.subr.bf16.mxu1 %v5703_v0  ;;  %v5075_v24 = vpack.c.bf16 %v2737_v22, %v2734_v18  ;;  %v5099_v26 = vpack.c.bf16 %v2739_v23, %v2736_v16 }
 0x603   :  { %2821 = vmatprep.mubr.f32.mxu0 %v5705_v1  ;;  %4351 = vmatprep.mubr.msk.f32.mxu1 %vm5704_vm0, %v5705_v1 }
 0x605   :  { %5052 = vmatpush1.bf16.msra.mxu0 %v5051_v56  ;;  %5082 = vmatpush3.bf16.msra.mxu1 %v5081_v29  ;;  %v2923_v56 = vld [vmem:[#allocation26 + $0x18] sm:$0xff]  ;;  %v2924_v29 = vld [vmem:[#allocation26 + $0x20] sm:$0xff] }
 0x606   :  { %5054 = vmatprep.subr.bf16.mxu0 %v5053_v13  ;;  %5083 = vmatprep.subr.bf16.mxu1 %v5703_v0  ;;  %v5105_v28 = vpack.c.bf16 %v2923_v56, %v2922_v51  ;;  %v2925_v13 = vld [vmem:[#allocation26 + $0x28] sm:$0xff] }
 0x607   :  { %v5108_v7 = vpack.c.bf16 %v2925_v13, %v2924_v29 }
 0x609   :  { %5056 = vmatpush1.bf16.msra.mxu0 %v5055_v30  ;;  %5085 = vmatpush3.bf16.msra.mxu1 %v5084_v32  ;;  %v2930_v30 = vld [vmem:[#allocation26 + $0x50] sm:$0xff]  ;;  %v2931_v32 = vld [vmem:[#allocation26 + $0x58] sm:$0xff] }
 0x60a   :  { %5058 = vmatprep.subr.bf16.mxu0 %v5057_v19  ;;  %5086 = vmatprep.subr.bf16.mxu1 %v5703_v0  ;;  %v5117_v19 = vpack.c.bf16 %v2931_v32, %v2930_v30 }
 0x60d   :  { %5060 = vmatpush1.bf16.msra.mxu0 %v5059_v54  ;;  %5088 = vmatpush3.bf16.msra.mxu1 %v5087_v62  ;;  %v5123_v54 = vpack.c.bf16 %v2935_v42, %v2934_v25 }
 0x60e   :  { %5062 = vmatprep.subr.bf16.mxu0 %v5061_v3  ;;  %5089 = vmatprep.subr.bf16.mxu1 %v5703_v0  ;;  %v2740_v3 = vld [vmem:[%s6684_s24] sm:$0x7] }
 0x60f   :  { %v2745_v31 = vrot.slane %v2740_v3, %v6388_v53  ;;  %v2749_v46 = vrot.slane %v2740_v3, %v6394_v55  ;;  %v2546_v53 = vsub.s32 2, %v6385_v52  ;;  %v3070_v52 = vld [vmem:[%s6736_s30] ss:$0 sm:$0xff] }
 0x611   :  { %5064 = vmatpush1.bf16.msra.mxu0 %v5063_v47  ;;  %5091 = vmatpush3.bf16.msra.mxu1 %v5090_v50  ;;  %v5127_v43 = vadd.f32 %v2749_v46, %v2543_v45  ;;  %v2547_v55 = vrot.slane %v2534_v6, %v2546_v53 }
 0x612   :  { %5066 = vmatprep.subr.bf16.mxu0 %v5065_v57  ;;  %5092 = vmatprep.subr.bf16.mxu1 %v5703_v0 }
 0x615   :  { %5068 = vmatpush1.bf16.msra.mxu0 %v5067_v4  ;;  %5094 = vmatpush3.bf16.msra.mxu1 %v5093_v11  ;;  %v2753_v11 = vrot.slane %v2740_v3, %v2546_v53 }
 0x616   :  { %5070 = vmatprep.subr.bf16.mxu0 %v5069_v5  ;;  %5095 = vmatprep.subr.bf16.mxu1 %v5703_v0 }
 0x619   :  { %5072 = vmatpush1.bf16.msra.mxu0 %v5071_v17  ;;  %5097 = vmatpush3.bf16.msra.mxu1 %v5096_v15 }
 0x61a   :  { %5074 = vmatprep.subr.bf16.mxu0 %v5073_v21  ;;  %5098 = vmatprep.subr.bf16.mxu1 %v5703_v0 }
 0x61d   :  { %5076 = vmatpush1.bf16.msra.mxu0 %v5075_v24  ;;  %5100 = vmatpush3.bf16.msra.mxu1 %v5099_v26 }
 0x61e   :  { %5101 = vmatprep.subr.bf16.mxu0 %v5703_v0 }
 0x620   :  { %2822 = vmatmul.mubr.f32.vlgmr.msra.gmra.mrb[24].mxu0 %v6608_v39  ;;  %4352 = vmatmul.mubr.f32.vlgmr.msra.gmra.mrb[26].mxu1 %v6608_v39 }
 0x621   :  { %4386 = vmatprep.mubr.msk.f32.mxu0 %vm5704_vm0, %v5705_v1  ;;  %5103 = vmatpush3.bf16.msra.mxu0 %v5102_v27  ;;  %v2927_v1 = vld [vmem:[#allocation26 + $0x38] sm:$0xff] }
 0x622   :  { %5104 = vmatprep.subr.bf16.mxu0 %v5703_v0  ;;  %v5111_v41 = vpack.c.bf16 %v2927_v1, %v2926_v36 }
 0x625   :  { %5106 = vmatpush3.bf16.msra.mxu0 %v5105_v28 }
 0x626   :  { %5107 = vmatprep.subr.bf16.mxu0 %v5703_v0 }
 0x629   :  { %5109 = vmatpush3.bf16.msra.mxu0 %v5108_v7 }
 0x62a   :  { %5110 = vmatprep.subr.bf16.mxu0 %v5703_v0 }
 0x62d   :  { %5112 = vmatpush3.bf16.msra.mxu0 %v5111_v41 }
 0x62e   :  { %5113 = vmatprep.subr.bf16.mxu0 %v5703_v0 }
 0x631   :  { %5115 = vmatpush3.bf16.msra.mxu0 %v5114_v49 }
 0x632   :  { %5116 = vmatprep.subr.bf16.mxu0 %v5703_v0 }
 0x635   :  { %5118 = vmatpush3.bf16.msra.mxu0 %v5117_v19 }
 0x636   :  { %5119 = vmatprep.subr.bf16.mxu0 %v5703_v0 }
 0x639   :  { %5121 = vmatpush3.bf16.msra.mxu0 %v5120_v35 }
 0x63a   :  { %5122 = vmatprep.subr.bf16.mxu0 %v5703_v0  ;;  %v5125_v0 = vadd.f32 %v2745_v31, %v2539_v44 }
 0x63d   :  { %5124 = vmatpush3.bf16.msra.mxu0 %v5123_v54 }
 0x6d3   :  { %v2688_v59 = vpop.f32.mrb[24].mxu1 }
 0x6d4   :  { %v4318_v62 = vpop.f32.mrb[25].mxu1  ;;  %v2689_v38 = vadd.f32 %v2688_v59, %v2547_v55 }
 0x6f3   :  { %v2823_v47 = vpop.f32.mrb[24].mxu0  ;;  %v2894_v50 = vpop.f32.mrb[26].mxu1 }
 0x6f4   :  { %v5126_v57 = vadd.f32 %v5125_v0, %v2823_v47  ;;  %v2825_v58 = vpop.f32.mrb[25].mxu0  ;;  %v4353_v60 = vpop.f32.mrb[27].mxu1  ;;  %v2895_v12 = vadd.f32 %v2894_v50, %v2753_v11 }
 0x6f5   :  { %v5128_v63 = vadd.f32 %v5127_v43, %v2825_v58 }
 0x6f6   :  { %v3068_v61 = vmul.f32 -1.442695, %v5126_v57 }
 0x6f7   :  { %v3069_v2 = vmul.f32 -1.442695, %v5128_v63 }
 0x6f8   :  { %5236 = vpow2.f32 %v3068_v61 }
 0x6f9   :  { %5238 = vpow2.f32 %v3069_v2 }
 0x702   :  { %v5237_v4 = vpop.eup %5236 }
 0x703   :  { %v2902_v10 = vadd.f32 1.0, %v5237_v4  ;;  %v5239_v5 = vpop.eup %5238 }
 0x704   :  { %v2909_v8 = vadd.f32 1.0, %v5239_v5 }
 0x705   :  { %5240 = vrcp.f32 %v2902_v10 }
 0x706   :  { %5242 = vrcp.f32 %v2909_v8 }
 0x70f   :  { %v5241_v14 = vpop.eup %5240 }
 0x710   :  { %v2912_v9 = vmul.f32 %v5241_v14, %v2895_v12  ;;  %v5243_v18 = vpop.eup %5242 }
 0x711   :  { %v2915_v15 = vsub.f32 1.0, %v5243_v18  ;;  %v2917_v16 = vmul.f32 %v6608_v39, %v5243_v18 }
 0x712   :  { %v2913_v17 = vadd.f32 %v2912_v9, %v2689_v38 }
 0x714   :  { %5244 = vtanh.f32 %v2913_v17 }
 0x71e   :  { %v5245_v21 = vpop.eup %5244 }
 0x71f   :  { %v2916_v22 = vmul.f32 %v5245_v21, %v2915_v15 }
 0x721   :  { %v2918_v23 = vadd.f32 %v2917_v16, %v2916_v22 }
 0x723   :  { %4387 = vmatmul.mubr.f32.vlgmr.msra.gmra.mrb[26].mxu0 %v2918_v23  ;;  %2919 = vst [vmem:[#allocation29] sm:$0xff] %v2918_v23 }
 0x7f6   :  { %v3009_v24 = vpop.f32.mrb[26].mxu0 }
 0x7f7   :  { %v3010_v26 = vadd.f32 %v3070_v52, %v3009_v24  ;;  %v4388_v20 = vpop.f32.mrb[27].mxu0 }
 0x7f9   :  { %3013 = vmax.xlane.f32.xlu0 %v3010_v26 }
 0x886   :  { %v3014_v37 = vpop.xlane.xlu0 %3013 }
 0x887   :  { %v3015_v27 = vsub.f32 %v3010_v26, %v3014_v37 }
 0x889   :  { %v3016_v51 = vmul.f32 1.442695, %v3015_v27 }
 0x88b   :  { %5246 = vpow2.f32 %v3016_v51 }
 0x895   :  { %v5247_v56 = vpop.eup %5246 }
 0x896   :  { %3018 = vadd.xlane.f32.xlu1 %v5247_v56 }
 0x897   :  { %5626 = shalt.err (!%p5623_p6)
}
 0x898   :  { %s6737_s25 = sld [smem:[#allocation57_spill]] }
 0x89e   :  { %s5627_s6 = scalar_lea.hbm %s6737_s25, 128 }
 0x89f   :  { %p5628_p7 = scmp.ne.s32.totalorder %s6737_s25, %s5627_s6  ;;  %p5631_p8 = scmp.lt.u32.totalorder %s5627_s6, %s6737_s25 }
 0x8a1   :  { %p5633_p9 = pnand %p5631_p8, %p5628_p7 }
 0x8a3   :  { %5636 = shalt.err (!%p5633_p9)
}
 0x8a4   :  { %3043 = dma.vmem_to_hbm [thread:$0]  %s3041_s28, 128, %s6737_s25, [#allocation30]  }
 0x8a5   :  { %s5707_s1 = smov [#allocation28]  }
 0x8a6   :  { %s3030_s7 = sshll.u32 %s5707_s1, 4  ;;  %s3031_s7 = int_to_ptr.vmem [resolvable:$true] %s3030_s7 }
 0x8a7   :  { %s5637_s19 = scalar_lea.vmem %s3031_s7, 128  ;;  %p5642_p11 = scmp.lt.s32.totalorder %s3031_s7, %s3031_s7 }
 0x8a8   :  { %p5638_p10 = scmp.ne.s32.totalorder %s3031_s7, %s5637_s19  ;;  %p5643_p12 = scmp.lt.s32.totalorder %s5637_s19, %s5637_s19 }
 0x8aa   :  { %p5644_p13 = por %p5643_p12, %p5642_p11 }
 0x8ac   :  { %p5645_p0 = pnand %p5644_p13, %p5638_p10 }
 0x923   :  { %v3019_v39 = vpop.xlane.xlu1 %3018 }
 0x924   :  { %5248 = vlog2.f32 %v3019_v39 }
 0x92e   :  { %v5249_v28 = vpop.eup %5248 }
 0x92f   :  { %v3021_v29 = vmul.f32 0.6931472, %v5249_v28 }
 0x931   :  { %v3022_v13 = vsub.f32 %v3015_v27, %v3021_v29 }
 0x933   :  { %3023 = vst [vmem:[#allocation28] sm:$0xff] %v3022_v13 }
 0x934   :  { %5648 = shalt.err (!%p5645_p0)
}
 0x935   :  { %s6738_s2 = sld [smem:[#allocation56_spill]] }
 0x93b   :  { %s5649_s4 = scalar_lea.hbm %s6738_s2, 128 }
 0x93c   :  { %p5650_p1 = scmp.ne.s32.totalorder %s6738_s2, %s5649_s4  ;;  %p5653_p2 = scmp.lt.u32.totalorder %s5649_s4, %s6738_s2 }
 0x93e   :  { %p5655_p3 = pnand %p5653_p2, %p5650_p1 }
 0x940   :  { %5658 = shalt.err (!%p5655_p3)
}
 0x941   :  { %3033 = dma.vmem_to_hbm [thread:$0]  %s3031_s7, 128, %s6738_s2, [#allocation4]  }
 0x942   :  { %5677 = dma.done.wait [#allocation4], 128  }
 0x943   :  { %5678 = vsyncadd [#allocation4], 4294967168 }
 0x944   :  { %5679 = dma.done.wait [#allocation30], 128  }
 0x945   :  { %5680 = vsyncadd [#allocation30], 4294967168 }
 0x946   :  { %3050 = vsyncpa [#allocation3], 1 }
 0x947   :  { %3051 = vsyncpa [#allocation6], 1 }
 0x948   :  { %3052 = vsyncpa [#allocation9], 1 }
 0x949   :  { %3053 = vsyncpa [#allocation12], 1 }
 0x94a   :  { %3054 = vsyncpa [#allocation15], 1 }
 0x94b   :  { %3055 = vsyncpa [#allocation18], 1 }
 0x94c   :  { %3056 = vsyncpa [#allocation21], 1 }
 0x94d   :  { %3057 = vsyncpa [#allocation24], 1 }
 0x94e   :  { %3058 = vsyncpa [#allocation27], 1 }
 0x94f   :  { %3059 = vsyncpa [#allocation4], 1 }
 0x950   :  { %3060 = vsyncpa [#allocation30], 1 }

</bundles_post_ra>
